<compile_context>
chip_gen: v6e
topology: v6e:2x2x1
jax: 0.10.0
libtpu: 0.0.40
codegen_flags: <defaults>
</compile_context>

<pallas_src>
import jax
import jax.numpy as jnp
from jax import lax
from jax.experimental import pallas as pl
from jax.experimental.pallas import tpu as pltpu

_RPP = 8                 # rows per spatial pixel (sublane-aligned group)
_NB = _RPP               # batch rows handled per grid step
_HALO_W = 6              # 4x4 interior + 1-pixel zero halo
_M = 16 * _RPP           # 128 lane-dense output rows per grid step
_SPAN = 22 * _RPP        # contiguous 6x6-flat positions 7..28 cover the interior
# Halo (border) row groups of the 6x6 layout, as (start_pos, num_pos) chunks.
_HALO_CHUNKS = ((0, 7), (11, 2), (17, 2), (23, 2), (29, 7))


def _leaky(v):
    return jnp.where(v >= 0.0, v, 0.2 * v)


def _pixel_norm(v):
    return v * lax.rsqrt(jnp.mean(v * v, axis=-1, keepdims=True) + 1e-8)


def _generator_fused_kernel(x_ref, w1_ref, b1_ref, w2_ref, b2_ref,
                            wrgb_ref, brgb_ref, o_ref, h_ref, acc_ref):
    """Fused conv4x4(pad3)+LReLU+PixelNorm -> conv3x3(pad1)+LReLU+PixelNorm ->
    conv1x1 (ToRGB).  The intermediate activation stays resident in VMEM
    (h_ref, zero-halo 6x6 layout, compute dtype)."""
    cdt = w1_ref.dtype
    c1 = w2_ref.shape[1]

    # Zero only the halo rows; the 16 interior groups are fully overwritten.
    for start, num in _HALO_CHUNKS:
        h_ref[pl.ds(start * _RPP, num * _RPP), :] = jnp.zeros(
            (num * _RPP, c1), h_ref.dtype)

    # ---- layer 1: WSConv2d 4x4, pad=3, on a 1x1 spatial input ----------------
    # Output pixel (i, j) only sees the single real input pixel through weight
    # tap (3-i, 3-j); all 16 pixels come from ONE (8, Cin) @ (Cin, 16*C1) dot.
    # WS scale is folded into the packed weights; PixelNorm uses EUP rsqrt.
    y_all = jnp.dot(x_ref[...], w1_ref[...], preferred_element_type=jnp.float32)
    b1 = b1_ref[...]
    for p in range(16):                               # p = i*4 + j (static)
        i, j = p // 4, p % 4
        y = _pixel_norm(_leaky(y_all[:, p * c1:(p + 1) * c1] + b1))
        fi = (i + 1) * _HALO_W + (j + 1)              # interior 6x6 position
        h_ref[pl.ds(fi * _RPP, _RPP), :] = y.astype(cdt)

    # ---- layer 2: WSConv2d 3x3, pad=1, over the VMEM-resident 6x6 halo map ---
    # Each of the 9 taps is an in-bounds shifted read of 22 contiguous flat
    # positions (rows covering the whole interior): no validity masks, 8-row
    # aligned starts, one MXU push per tap, f32 accumulation in VMEM scratch.
    for t in range(9):                                # t = kdi*3 + kdj
        di, dj = t // 3 - 1, t % 3 - 1
        start = (7 + di * _HALO_W + dj) * _RPP
        lhs = h_ref[pl.ds(start, _SPAN), :]
        contrib = jnp.dot(lhs, w2_ref[t], preferred_element_type=jnp.float32)
        if t == 0:
            acc_ref[...] = contrib
        else:
            acc_ref[...] += contrib

    # Gather the 16 interior groups (4 static chunks of 4 contiguous groups).
    h2 = jnp.concatenate(
        [acc_ref[pl.ds(6 * i * _RPP, 4 * _RPP), :] for i in range(4)], axis=0)
    h2 = _pixel_norm(_leaky(h2 + b2_ref[...]))

    # ---- ToRGB: WSConv2d 1x1, lane-dense (Crgb, 128) output ------------------
    rgb = jnp.einsum("oc,mc->om", wrgb_ref[...], h2.astype(cdt),
                     preferred_element_type=jnp.float32)
    o_ref[...] = rgb + brgb_ref[...]


def pack_generator_params(params, compute_dtype=jnp.bfloat16):
    """One-time offline packing of the WSConv2d weights (tap flip, transpose,
    WS-scale fold, dtype cast).  NOT part of the per-call forward."""
    w1, b1 = params["w1"], params["b1"]
    w2, b2 = params["w2"], params["b2"]
    wrgb, brgb = params["wrgb"], params["brgb"]
    c1, c_in = w1.shape[0], w1.shape[1]
    c2 = w2.shape[0]
    c_rgb = wrgb.shape[0]
    assert w1.shape == (c1, c_in, 4, 4)
    assert w2.shape == (c2, c1, 3, 3)
    assert wrgb.shape == (c_rgb, c2, 1, 1)

    # torch WSConv2d: scale = (2 / (in_channels * kernel_size[0] ** 2)) ** 0.5
    s1 = (2.0 / (c_in * 4 * 4)) ** 0.5
    s2 = (2.0 / (c1 * 3 * 3)) ** 0.5
    s3 = (2.0 / (c2 * 1 * 1)) ** 0.5

    # w1p[c, p*c1 + o] = w1[o, c, 3-i, 3-j] * s1,  p = i*4 + j (flipped taps)
    w1p = (w1[:, :, ::-1, ::-1] * s1).transpose(2, 3, 1, 0)         # (4,4,Cin,C1)
    w1p = w1p.reshape(16, c_in, c1).transpose(1, 0, 2).reshape(c_in, 16 * c1)
    # w2p[t, c, o] = w2[o, c, kdi, kdj] * s2,      t = kdi*3 + kdj
    w2p = (w2 * s2).transpose(2, 3, 1, 0).reshape(9, c1, c2)
    wrgbp = (wrgb * s3).reshape(c_rgb, c2)
    return {
        "w1p": jnp.asarray(w1p, compute_dtype),
        "b1": jnp.asarray(b1, jnp.float32).reshape(1, c1),
        "w2p": jnp.asarray(w2p, compute_dtype),
        "b2": jnp.asarray(b2, jnp.float32).reshape(1, c2),
        "wrgbp": jnp.asarray(wrgbp, compute_dtype),
        "brgb": jnp.asarray(brgb, jnp.float32).reshape(c_rgb, 1),
    }


def _generator_forward(x, packed):
    """Generator initial-block forward (depth=1, alpha=1) — one fused kernel."""
    n, c_in, hh, ww = x.shape
    assert hh == 1 and ww == 1, "ProGAN initial block expects a (N, z, 1, 1) latent"
    w1p, b1 = packed["w1p"], packed["b1"]
    w2p, b2 = packed["w2p"], packed["b2"]
    wrgbp, brgb = packed["wrgbp"], packed["brgb"]
    c1, c2 = w2p.shape[1], w2p.shape[2]
    c_rgb = wrgbp.shape[0]
    cdt = w1p.dtype

    nblocks = -(-n // _NB)                    # batch blocks of 8 rows
    x2 = x.reshape(n, c_in)
    if nblocks * _NB != n:
        x2 = jnp.pad(x2, ((0, nblocks * _NB - n), (0, 0)))
    x2 = x2.astype(cdt)

    rgb_rows = pl.pallas_call(
        _generator_fused_kernel,
        out_shape=jax.ShapeDtypeStruct((c_rgb, nblocks * _M), jnp.float32),
        grid=(nblocks,),
        in_specs=[
            pl.BlockSpec((_NB, c_in), lambda b: (b, 0)),
            pl.BlockSpec((c_in, 16 * c1), lambda b: (0, 0)),
            pl.BlockSpec((1, c1), lambda b: (0, 0)),
            pl.BlockSpec((9, c1, c2), lambda b: (0, 0, 0)),
            pl.BlockSpec((1, c2), lambda b: (0, 0)),
            pl.BlockSpec((c_rgb, c2), lambda b: (0, 0)),
            pl.BlockSpec((c_rgb, 1), lambda b: (0, 0)),
        ],
        out_specs=pl.BlockSpec((c_rgb, _M), lambda b: (0, b)),
        scratch_shapes=[
            pltpu.VMEM((36 * _RPP, c1), cdt),       # 6x6 zero-halo activation
            pltpu.VMEM((_SPAN, c2), jnp.float32),   # layer-2 f32 accumulator
        ],
        compiler_params=pltpu.CompilerParams(
            dimension_semantics=("parallel",),      # v7x: shard batch blocks
            vmem_limit_bytes=48 * 1024 * 1024,
        ),
    )(x2, w1p, b1, w2p, b2, wrgbp, brgb)

    # lanes within a block: l = i*32 + j*8 + n_local  ->  NCHW (N, Crgb, 4, 4)
    rows = rgb_rows.reshape(c_rgb, nblocks, 4, 4, _NB)
    return rows.transpose(1, 4, 0, 2, 3).reshape(nblocks * _NB, c_rgb, 4, 4)[:n]


generator_forward = jax.jit(_generator_forward)


# ----------------------------- pure-JAX reference -----------------------------
def _ref_ws_conv(x, w, b, stride, pad):
    o, c, kh, kw = w.shape
    scale = (2.0 / (c * kh * kh)) ** 0.5
    y = lax.conv_general_dilated(x, w * scale, (stride, stride),
                                 [(pad, pad), (pad, pad)],
                                 dimension_numbers=("NCHW", "OIHW", "NCHW"))
    return y + b.reshape(1, o, 1, 1)


def _ref_forward(x, p):
    def leaky(v):
        return jnp.where(v >= 0, v, 0.2 * v)

    def pn(v):
        return v / jnp.sqrt(jnp.mean(v * v, axis=1, keepdims=True) + 1e-8)

    h = pn(leaky(_ref_ws_conv(x, p["w1"], p["b1"], 1, 3)))
    h = pn(leaky(_ref_ws_conv(h, p["w2"], p["b2"], 1, 1)))
    return _ref_ws_conv(h, p["wrgb"], p["brgb"], 1, 0)


if __name__ == "__main__":
    key = jax.random.PRNGKey(0)
    batch, z_dim = 2, 32          # small z_dim stand-in for the 512-wide latent
    k1, k2, k3, kx = jax.random.split(key, 4)

    # Deterministic params matching WSConv2d.__init__: normal weights, zero bias.
    params = {
        "w1":   jax.random.normal(k1, (z_dim, z_dim, 4, 4), jnp.float32),
        "b1":   jnp.zeros((z_dim,), jnp.float32),
        "w2":   jax.random.normal(k2, (z_dim, z_dim, 3, 3), jnp.float32),
        "b2":   jnp.zeros((z_dim,), jnp.float32),
        "wrgb": jax.random.normal(k3, (1, z_dim, 1, 1), jnp.float32),
        "brgb": jnp.zeros((1,), jnp.float32),
    }

    # ProGAN latent input: (N, z_dim, 1, 1)
    x = jax.random.normal(kx, (batch, z_dim, 1, 1), jnp.float32)

    ref = jax.block_until_ready(_ref_forward(x, params))

    # f32 MXU-input path.
    packed_f32 = pack_generator_params(params, compute_dtype=jnp.float32)
    out = jax.block_until_ready(generator_forward(x, packed_f32))
    assert out.shape == (batch, 1, 4, 4), out.shape
    assert jnp.allclose(out, ref, rtol=1e-2, atol=1e-2), \
        float(jnp.max(jnp.abs(out - ref)))

    # bf16 MXU-input path (default): f32 accumulation, looser tolerance.
    packed_bf16 = pack_generator_params(params)
    out_bf16 = jax.block_until_ready(generator_forward(x, packed_bf16))
    assert out_bf16.shape == (batch, 1, 4, 4), out_bf16.shape
    assert jnp.allclose(out_bf16, ref, rtol=5e-2, atol=5e-2), \
        float(jnp.max(jnp.abs(out_bf16 - ref)))

    print("KERNEL_OK")
</pallas_src>

<mosaic_0001>
module attributes {stable_mosaic.version = 11 : i64} {
  func.func @_generator_fused_kernel(%arg0: i32, %arg1: memref<8x32xf32, #tpu.memory_space<vmem>>, %arg2: memref<32x512xf32, #tpu.memory_space<vmem>>, %arg3: memref<1x32xf32, #tpu.memory_space<vmem>>, %arg4: memref<9x32x32xf32, #tpu.memory_space<vmem>>, %arg5: memref<1x32xf32, #tpu.memory_space<vmem>>, %arg6: memref<1x32xf32, #tpu.memory_space<vmem>>, %arg7: memref<1x1xf32, #tpu.memory_space<vmem>>, %arg8: memref<1x128xf32, #tpu.memory_space<vmem>>, %arg9: memref<288x32xf32, #tpu.memory_space<vmem>>, %arg10: memref<176x32xf32, #tpu.memory_space<vmem>>) attributes {dimension_semantics = [#tpu.dimension_semantics<parallel>], iteration_bounds = array<i64: 1>, scalar_prefetch = 0 : i64, scratch_operands = 2 : i64, tpu.core_type = #tpu.core_type<tc>, window_params = [{transform_indices = @transform_0, window_bounds = array<i64: 8, 32>}, {pipeline_mode = #tpu.pipeline_mode<synchronous>, transform_indices = @transform_1, window_bounds = array<i64: 32, 512>}, {pipeline_mode = #tpu.pipeline_mode<synchronous>, transform_indices = @transform_2, window_bounds = array<i64: 1, 32>}, {pipeline_mode = #tpu.pipeline_mode<synchronous>, transform_indices = @transform_3, window_bounds = array<i64: 9, 32, 32>}, {pipeline_mode = #tpu.pipeline_mode<synchronous>, transform_indices = @transform_4, window_bounds = array<i64: 1, 32>}, {pipeline_mode = #tpu.pipeline_mode<synchronous>, transform_indices = @transform_5, window_bounds = array<i64: 1, 32>}, {pipeline_mode = #tpu.pipeline_mode<synchronous>, transform_indices = @transform_6, window_bounds = array<i64: 1, 1>}, {transform_indices = @transform_7, window_bounds = array<i64: 1, 128>}]} {
    %cst = arith.constant 0.000000e+00 : f32
    %0 = vector.broadcast %cst : f32 to vector<56x32xf32>
    %c0 = arith.constant 0 : index
    %c0_0 = arith.constant 0 : index
    %1 = vector.load %arg9[%c0, %c0_0] : memref<288x32xf32, #tpu.memory_space<vmem>>, vector<56x32xf32>
    tpu.vector_store %arg9[%c0, %c0_0], %0 {strides = array<i32>} : memref<288x32xf32, #tpu.memory_space<vmem>>, vector<56x32xf32>,
    %cst_1 = arith.constant 0.000000e+00 : f32
    %2 = vector.broadcast %cst_1 : f32 to vector<16x32xf32>
    %c88 = arith.constant 88 : index
    %c0_2 = arith.constant 0 : index
    %3 = vector.load %arg9[%c88, %c0_2] : memref<288x32xf32, #tpu.memory_space<vmem>>, vector<16x32xf32>
    tpu.vector_store %arg9[%c88, %c0_2], %2 {strides = array<i32>} : memref<288x32xf32, #tpu.memory_space<vmem>>, vector<16x32xf32>,
    %cst_3 = arith.constant 0.000000e+00 : f32
    %4 = vector.broadcast %cst_3 : f32 to vector<16x32xf32>
    %c136 = arith.constant 136 : index
    %c0_4 = arith.constant 0 : index
    %5 = vector.load %arg9[%c136, %c0_4] : memref<288x32xf32, #tpu.memory_space<vmem>>, vector<16x32xf32>
    tpu.vector_store %arg9[%c136, %c0_4], %4 {strides = array<i32>} : memref<288x32xf32, #tpu.memory_space<vmem>>, vector<16x32xf32>,
    %cst_5 = arith.constant 0.000000e+00 : f32
    %6 = vector.broadcast %cst_5 : f32 to vector<16x32xf32>
    %c184 = arith.constant 184 : index
    %c0_6 = arith.constant 0 : index
    %7 = vector.load %arg9[%c184, %c0_6] : memref<288x32xf32, #tpu.memory_space<vmem>>, vector<16x32xf32>
    tpu.vector_store %arg9[%c184, %c0_6], %6 {strides = array<i32>} : memref<288x32xf32, #tpu.memory_space<vmem>>, vector<16x32xf32>,
    %cst_7 = arith.constant 0.000000e+00 : f32
    %8 = vector.broadcast %cst_7 : f32 to vector<56x32xf32>
    %c232 = arith.constant 232 : index
    %c0_8 = arith.constant 0 : index
    %9 = vector.load %arg9[%c232, %c0_8] : memref<288x32xf32, #tpu.memory_space<vmem>>, vector<56x32xf32>
    tpu.vector_store %arg9[%c232, %c0_8], %8 {strides = array<i32>} : memref<288x32xf32, #tpu.memory_space<vmem>>, vector<56x32xf32>,
    %c0_9 = arith.constant 0 : index
    %c0_10 = arith.constant 0 : index
    %10 = vector.load %arg1[%c0_9, %c0_10] : memref<8x32xf32, #tpu.memory_space<vmem>>, vector<8x32xf32>
    %c0_11 = arith.constant 0 : index
    %c0_12 = arith.constant 0 : index
    %11 = vector.load %arg2[%c0_11, %c0_12] : memref<32x512xf32, #tpu.memory_space<vmem>>, vector<32x512xf32>
    %cst_13 = arith.constant dense<0.000000e+00> : vector<8x512xf32>
    %12 = tpu.matmul %10, %11, %cst_13 {dimension_numbers = #tpu.dot_dimension_numbers<[1], [0], [0], [1], [0, 0, 1, 1], [], []>} : vector<8x32xf32>, vector<32x512xf32>, vector<8x512xf32> -> vector<8x512xf32>
    %c0_14 = arith.constant 0 : index
    %c0_15 = arith.constant 0 : index
    %13 = vector.load %arg3[%c0_14, %c0_15] : memref<1x32xf32, #tpu.memory_space<vmem>>, vector<1x32xf32>
    %14 = vector.extract_strided_slice %12 {offsets = [0, 0], sizes = [8, 32], strides = [1, 1]} : vector<8x512xf32> to vector<8x32xf32>
    %15 = vector.broadcast %13 : vector<1x32xf32> to vector<8x32xf32>
    %16 = arith.addf %14, %15 : vector<8x32xf32>
    %cst_16 = arith.constant 0.000000e+00 : f32
    %17 = vector.broadcast %cst_16 : f32 to vector<8x32xf32>
    %18 = arith.cmpf oge, %16, %17 : vector<8x32xf32>
    %cst_17 = arith.constant 2.000000e-01 : f32
    %19 = vector.broadcast %cst_17 : f32 to vector<8x32xf32>
    %20 = arith.mulf %19, %16 : vector<8x32xf32>
    %21 = arith.select %18, %16, %20 : vector<8x32xi1>, vector<8x32xf32>
    %22 = arith.mulf %21, %21 : vector<8x32xf32>
    %cst_18 = arith.constant dense<0.000000e+00> : vector<8xf32>
    %23 = vector.multi_reduction <add>, %22, %cst_18 [1] : vector<8x32xf32> to vector<8xf32>
    %24 = vector.shape_cast %23 : vector<8xf32> to vector<8x1xf32>
    %cst_19 = arith.constant 3.200000e+01 : f32
    %25 = vector.broadcast %cst_19 : f32 to vector<8x1xf32>
    %26 = arith.divf %24, %25 : vector<8x1xf32>
    %cst_20 = arith.constant 9.99999993E-9 : f32
    %27 = vector.broadcast %cst_20 : f32 to vector<8x1xf32>
    %28 = arith.addf %26, %27 : vector<8x1xf32>
    %29 = math.rsqrt %28 : vector<8x1xf32>
    %30 = vector.broadcast %29 : vector<8x1xf32> to vector<8x32xf32>
    %31 = arith.mulf %21, %30 : vector<8x32xf32>
    %c56 = arith.constant 56 : index
    %c0_21 = arith.constant 0 : index
    %32 = vector.load %arg9[%c56, %c0_21] : memref<288x32xf32, #tpu.memory_space<vmem>>, vector<8x32xf32>
    tpu.vector_store %arg9[%c56, %c0_21], %31 {strides = array<i32>} : memref<288x32xf32, #tpu.memory_space<vmem>>, vector<8x32xf32>,
    %33 = vector.extract_strided_slice %12 {offsets = [0, 32], sizes = [8, 32], strides = [1, 1]} : vector<8x512xf32> to vector<8x32xf32>
    %34 = vector.broadcast %13 : vector<1x32xf32> to vector<8x32xf32>
    %35 = arith.addf %33, %34 : vector<8x32xf32>
    %cst_22 = arith.constant 0.000000e+00 : f32
    %36 = vector.broadcast %cst_22 : f32 to vector<8x32xf32>
    %37 = arith.cmpf oge, %35, %36 : vector<8x32xf32>
    %cst_23 = arith.constant 2.000000e-01 : f32
    %38 = vector.broadcast %cst_23 : f32 to vector<8x32xf32>
    %39 = arith.mulf %38, %35 : vector<8x32xf32>
    %40 = arith.select %37, %35, %39 : vector<8x32xi1>, vector<8x32xf32>
    %41 = arith.mulf %40, %40 : vector<8x32xf32>
    %cst_24 = arith.constant dense<0.000000e+00> : vector<8xf32>
    %42 = vector.multi_reduction <add>, %41, %cst_24 [1] : vector<8x32xf32> to vector<8xf32>
    %43 = vector.shape_cast %42 : vector<8xf32> to vector<8x1xf32>
    %cst_25 = arith.constant 3.200000e+01 : f32
    %44 = vector.broadcast %cst_25 : f32 to vector<8x1xf32>
    %45 = arith.divf %43, %44 : vector<8x1xf32>
    %cst_26 = arith.constant 9.99999993E-9 : f32
    %46 = vector.broadcast %cst_26 : f32 to vector<8x1xf32>
    %47 = arith.addf %45, %46 : vector<8x1xf32>
    %48 = math.rsqrt %47 : vector<8x1xf32>
    %49 = vector.broadcast %48 : vector<8x1xf32> to vector<8x32xf32>
    %50 = arith.mulf %40, %49 : vector<8x32xf32>
    %c64 = arith.constant 64 : index
    %c0_27 = arith.constant 0 : index
    %51 = vector.load %arg9[%c64, %c0_27] : memref<288x32xf32, #tpu.memory_space<vmem>>, vector<8x32xf32>
    tpu.vector_store %arg9[%c64, %c0_27], %50 {strides = array<i32>} : memref<288x32xf32, #tpu.memory_space<vmem>>, vector<8x32xf32>,
    %52 = vector.extract_strided_slice %12 {offsets = [0, 64], sizes = [8, 32], strides = [1, 1]} : vector<8x512xf32> to vector<8x32xf32>
    %53 = vector.broadcast %13 : vector<1x32xf32> to vector<8x32xf32>
    %54 = arith.addf %52, %53 : vector<8x32xf32>
    %cst_28 = arith.constant 0.000000e+00 : f32
    %55 = vector.broadcast %cst_28 : f32 to vector<8x32xf32>
    %56 = arith.cmpf oge, %54, %55 : vector<8x32xf32>
    %cst_29 = arith.constant 2.000000e-01 : f32
    %57 = vector.broadcast %cst_29 : f32 to vector<8x32xf32>
    %58 = arith.mulf %57, %54 : vector<8x32xf32>
    %59 = arith.select %56, %54, %58 : vector<8x32xi1>, vector<8x32xf32>
    %60 = arith.mulf %59, %59 : vector<8x32xf32>
    %cst_30 = arith.constant dense<0.000000e+00> : vector<8xf32>
    %61 = vector.multi_reduction <add>, %60, %cst_30 [1] : vector<8x32xf32> to vector<8xf32>
    %62 = vector.shape_cast %61 : vector<8xf32> to vector<8x1xf32>
    %cst_31 = arith.constant 3.200000e+01 : f32
    %63 = vector.broadcast %cst_31 : f32 to vector<8x1xf32>
    %64 = arith.divf %62, %63 : vector<8x1xf32>
    %cst_32 = arith.constant 9.99999993E-9 : f32
    %65 = vector.broadcast %cst_32 : f32 to vector<8x1xf32>
    %66 = arith.addf %64, %65 : vector<8x1xf32>
    %67 = math.rsqrt %66 : vector<8x1xf32>
    %68 = vector.broadcast %67 : vector<8x1xf32> to vector<8x32xf32>
    %69 = arith.mulf %59, %68 : vector<8x32xf32>
    %c72 = arith.constant 72 : index
    %c0_33 = arith.constant 0 : index
    %70 = vector.load %arg9[%c72, %c0_33] : memref<288x32xf32, #tpu.memory_space<vmem>>, vector<8x32xf32>
    tpu.vector_store %arg9[%c72, %c0_33], %69 {strides = array<i32>} : memref<288x32xf32, #tpu.memory_space<vmem>>, vector<8x32xf32>,
    %71 = vector.extract_strided_slice %12 {offsets = [0, 96], sizes = [8, 32], strides = [1, 1]} : vector<8x512xf32> to vector<8x32xf32>
    %72 = vector.broadcast %13 : vector<1x32xf32> to vector<8x32xf32>
    %73 = arith.addf %71, %72 : vector<8x32xf32>
    %cst_34 = arith.constant 0.000000e+00 : f32
    %74 = vector.broadcast %cst_34 : f32 to vector<8x32xf32>
    %75 = arith.cmpf oge, %73, %74 : vector<8x32xf32>
    %cst_35 = arith.constant 2.000000e-01 : f32
    %76 = vector.broadcast %cst_35 : f32 to vector<8x32xf32>
    %77 = arith.mulf %76, %73 : vector<8x32xf32>
    %78 = arith.select %75, %73, %77 : vector<8x32xi1>, vector<8x32xf32>
    %79 = arith.mulf %78, %78 : vector<8x32xf32>
    %cst_36 = arith.constant dense<0.000000e+00> : vector<8xf32>
    %80 = vector.multi_reduction <add>, %79, %cst_36 [1] : vector<8x32xf32> to vector<8xf32>
    %81 = vector.shape_cast %80 : vector<8xf32> to vector<8x1xf32>
    %cst_37 = arith.constant 3.200000e+01 : f32
    %82 = vector.broadcast %cst_37 : f32 to vector<8x1xf32>
    %83 = arith.divf %81, %82 : vector<8x1xf32>
    %cst_38 = arith.constant 9.99999993E-9 : f32
    %84 = vector.broadcast %cst_38 : f32 to vector<8x1xf32>
    %85 = arith.addf %83, %84 : vector<8x1xf32>
    %86 = math.rsqrt %85 : vector<8x1xf32>
    %87 = vector.broadcast %86 : vector<8x1xf32> to vector<8x32xf32>
    %88 = arith.mulf %78, %87 : vector<8x32xf32>
    %c80 = arith.constant 80 : index
    %c0_39 = arith.constant 0 : index
    %89 = vector.load %arg9[%c80, %c0_39] : memref<288x32xf32, #tpu.memory_space<vmem>>, vector<8x32xf32>
    tpu.vector_store %arg9[%c80, %c0_39], %88 {strides = array<i32>} : memref<288x32xf32, #tpu.memory_space<vmem>>, vector<8x32xf32>,
    %90 = vector.extract_strided_slice %12 {offsets = [0, 128], sizes = [8, 32], strides = [1, 1]} : vector<8x512xf32> to vector<8x32xf32>
    %91 = vector.broadcast %13 : vector<1x32xf32> to vector<8x32xf32>
    %92 = arith.addf %90, %91 : vector<8x32xf32>
    %cst_40 = arith.constant 0.000000e+00 : f32
    %93 = vector.broadcast %cst_40 : f32 to vector<8x32xf32>
    %94 = arith.cmpf oge, %92, %93 : vector<8x32xf32>
    %cst_41 = arith.constant 2.000000e-01 : f32
    %95 = vector.broadcast %cst_41 : f32 to vector<8x32xf32>
    %96 = arith.mulf %95, %92 : vector<8x32xf32>
    %97 = arith.select %94, %92, %96 : vector<8x32xi1>, vector<8x32xf32>
    %98 = arith.mulf %97, %97 : vector<8x32xf32>
    %cst_42 = arith.constant dense<0.000000e+00> : vector<8xf32>
    %99 = vector.multi_reduction <add>, %98, %cst_42 [1] : vector<8x32xf32> to vector<8xf32>
    %100 = vector.shape_cast %99 : vector<8xf32> to vector<8x1xf32>
    %cst_43 = arith.constant 3.200000e+01 : f32
    %101 = vector.broadcast %cst_43 : f32 to vector<8x1xf32>
    %102 = arith.divf %100, %101 : vector<8x1xf32>
    %cst_44 = arith.constant 9.99999993E-9 : f32
    %103 = vector.broadcast %cst_44 : f32 to vector<8x1xf32>
    %104 = arith.addf %102, %103 : vector<8x1xf32>
    %105 = math.rsqrt %104 : vector<8x1xf32>
    %106 = vector.broadcast %105 : vector<8x1xf32> to vector<8x32xf32>
    %107 = arith.mulf %97, %106 : vector<8x32xf32>
    %c104 = arith.constant 104 : index
    %c0_45 = arith.constant 0 : index
    %108 = vector.load %arg9[%c104, %c0_45] : memref<288x32xf32, #tpu.memory_space<vmem>>, vector<8x32xf32>
    tpu.vector_store %arg9[%c104, %c0_45], %107 {strides = array<i32>} : memref<288x32xf32, #tpu.memory_space<vmem>>, vector<8x32xf32>,
    %109 = vector.extract_strided_slice %12 {offsets = [0, 160], sizes = [8, 32], strides = [1, 1]} : vector<8x512xf32> to vector<8x32xf32>
    %110 = vector.broadcast %13 : vector<1x32xf32> to vector<8x32xf32>
    %111 = arith.addf %109, %110 : vector<8x32xf32>
    %cst_46 = arith.constant 0.000000e+00 : f32
    %112 = vector.broadcast %cst_46 : f32 to vector<8x32xf32>
    %113 = arith.cmpf oge, %111, %112 : vector<8x32xf32>
    %cst_47 = arith.constant 2.000000e-01 : f32
    %114 = vector.broadcast %cst_47 : f32 to vector<8x32xf32>
    %115 = arith.mulf %114, %111 : vector<8x32xf32>
    %116 = arith.select %113, %111, %115 : vector<8x32xi1>, vector<8x32xf32>
    %117 = arith.mulf %116, %116 : vector<8x32xf32>
    %cst_48 = arith.constant dense<0.000000e+00> : vector<8xf32>
    %118 = vector.multi_reduction <add>, %117, %cst_48 [1] : vector<8x32xf32> to vector<8xf32>
    %119 = vector.shape_cast %118 : vector<8xf32> to vector<8x1xf32>
    %cst_49 = arith.constant 3.200000e+01 : f32
    %120 = vector.broadcast %cst_49 : f32 to vector<8x1xf32>
    %121 = arith.divf %119, %120 : vector<8x1xf32>
    %cst_50 = arith.constant 9.99999993E-9 : f32
    %122 = vector.broadcast %cst_50 : f32 to vector<8x1xf32>
    %123 = arith.addf %121, %122 : vector<8x1xf32>
    %124 = math.rsqrt %123 : vector<8x1xf32>
    %125 = vector.broadcast %124 : vector<8x1xf32> to vector<8x32xf32>
    %126 = arith.mulf %116, %125 : vector<8x32xf32>
    %c112 = arith.constant 112 : index
    %c0_51 = arith.constant 0 : index
    %127 = vector.load %arg9[%c112, %c0_51] : memref<288x32xf32, #tpu.memory_space<vmem>>, vector<8x32xf32>
    tpu.vector_store %arg9[%c112, %c0_51], %126 {strides = array<i32>} : memref<288x32xf32, #tpu.memory_space<vmem>>, vector<8x32xf32>,
    %128 = vector.extract_strided_slice %12 {offsets = [0, 192], sizes = [8, 32], strides = [1, 1]} : vector<8x512xf32> to vector<8x32xf32>
    %129 = vector.broadcast %13 : vector<1x32xf32> to vector<8x32xf32>
    %130 = arith.addf %128, %129 : vector<8x32xf32>
    %cst_52 = arith.constant 0.000000e+00 : f32
    %131 = vector.broadcast %cst_52 : f32 to vector<8x32xf32>
    %132 = arith.cmpf oge, %130, %131 : vector<8x32xf32>
    %cst_53 = arith.constant 2.000000e-01 : f32
    %133 = vector.broadcast %cst_53 : f32 to vector<8x32xf32>
    %134 = arith.mulf %133, %130 : vector<8x32xf32>
    %135 = arith.select %132, %130, %134 : vector<8x32xi1>, vector<8x32xf32>
    %136 = arith.mulf %135, %135 : vector<8x32xf32>
    %cst_54 = arith.constant dense<0.000000e+00> : vector<8xf32>
    %137 = vector.multi_reduction <add>, %136, %cst_54 [1] : vector<8x32xf32> to vector<8xf32>
    %138 = vector.shape_cast %137 : vector<8xf32> to vector<8x1xf32>
    %cst_55 = arith.constant 3.200000e+01 : f32
    %139 = vector.broadcast %cst_55 : f32 to vector<8x1xf32>
    %140 = arith.divf %138, %139 : vector<8x1xf32>
    %cst_56 = arith.constant 9.99999993E-9 : f32
    %141 = vector.broadcast %cst_56 : f32 to vector<8x1xf32>
    %142 = arith.addf %140, %141 : vector<8x1xf32>
    %143 = math.rsqrt %142 : vector<8x1xf32>
    %144 = vector.broadcast %143 : vector<8x1xf32> to vector<8x32xf32>
    %145 = arith.mulf %135, %144 : vector<8x32xf32>
    %c120 = arith.constant 120 : index
    %c0_57 = arith.constant 0 : index
    %146 = vector.load %arg9[%c120, %c0_57] : memref<288x32xf32, #tpu.memory_space<vmem>>, vector<8x32xf32>
    tpu.vector_store %arg9[%c120, %c0_57], %145 {strides = array<i32>} : memref<288x32xf32, #tpu.memory_space<vmem>>, vector<8x32xf32>,
    %147 = vector.extract_strided_slice %12 {offsets = [0, 224], sizes = [8, 32], strides = [1, 1]} : vector<8x512xf32> to vector<8x32xf32>
    %148 = vector.broadcast %13 : vector<1x32xf32> to vector<8x32xf32>
    %149 = arith.addf %147, %148 : vector<8x32xf32>
    %cst_58 = arith.constant 0.000000e+00 : f32
    %150 = vector.broadcast %cst_58 : f32 to vector<8x32xf32>
    %151 = arith.cmpf oge, %149, %150 : vector<8x32xf32>
    %cst_59 = arith.constant 2.000000e-01 : f32
    %152 = vector.broadcast %cst_59 : f32 to vector<8x32xf32>
    %153 = arith.mulf %152, %149 : vector<8x32xf32>
    %154 = arith.select %151, %149, %153 : vector<8x32xi1>, vector<8x32xf32>
    %155 = arith.mulf %154, %154 : vector<8x32xf32>
    %cst_60 = arith.constant dense<0.000000e+00> : vector<8xf32>
    %156 = vector.multi_reduction <add>, %155, %cst_60 [1] : vector<8x32xf32> to vector<8xf32>
    %157 = vector.shape_cast %156 : vector<8xf32> to vector<8x1xf32>
    %cst_61 = arith.constant 3.200000e+01 : f32
    %158 = vector.broadcast %cst_61 : f32 to vector<8x1xf32>
    %159 = arith.divf %157, %158 : vector<8x1xf32>
    %cst_62 = arith.constant 9.99999993E-9 : f32
    %160 = vector.broadcast %cst_62 : f32 to vector<8x1xf32>
    %161 = arith.addf %159, %160 : vector<8x1xf32>
    %162 = math.rsqrt %161 : vector<8x1xf32>
    %163 = vector.broadcast %162 : vector<8x1xf32> to vector<8x32xf32>
    %164 = arith.mulf %154, %163 : vector<8x32xf32>
    %c128 = arith.constant 128 : index
    %c0_63 = arith.constant 0 : index
    %165 = vector.load %arg9[%c128, %c0_63] : memref<288x32xf32, #tpu.memory_space<vmem>>, vector<8x32xf32>
    tpu.vector_store %arg9[%c128, %c0_63], %164 {strides = array<i32>} : memref<288x32xf32, #tpu.memory_space<vmem>>, vector<8x32xf32>,
    %166 = vector.extract_strided_slice %12 {offsets = [0, 256], sizes = [8, 32], strides = [1, 1]} : vector<8x512xf32> to vector<8x32xf32>
    %167 = vector.broadcast %13 : vector<1x32xf32> to vector<8x32xf32>
    %168 = arith.addf %166, %167 : vector<8x32xf32>
    %cst_64 = arith.constant 0.000000e+00 : f32
    %169 = vector.broadcast %cst_64 : f32 to vector<8x32xf32>
    %170 = arith.cmpf oge, %168, %169 : vector<8x32xf32>
    %cst_65 = arith.constant 2.000000e-01 : f32
    %171 = vector.broadcast %cst_65 : f32 to vector<8x32xf32>
    %172 = arith.mulf %171, %168 : vector<8x32xf32>
    %173 = arith.select %170, %168, %172 : vector<8x32xi1>, vector<8x32xf32>
    %174 = arith.mulf %173, %173 : vector<8x32xf32>
    %cst_66 = arith.constant dense<0.000000e+00> : vector<8xf32>
    %175 = vector.multi_reduction <add>, %174, %cst_66 [1] : vector<8x32xf32> to vector<8xf32>
    %176 = vector.shape_cast %175 : vector<8xf32> to vector<8x1xf32>
    %cst_67 = arith.constant 3.200000e+01 : f32
    %177 = vector.broadcast %cst_67 : f32 to vector<8x1xf32>
    %178 = arith.divf %176, %177 : vector<8x1xf32>
    %cst_68 = arith.constant 9.99999993E-9 : f32
    %179 = vector.broadcast %cst_68 : f32 to vector<8x1xf32>
    %180 = arith.addf %178, %179 : vector<8x1xf32>
    %181 = math.rsqrt %180 : vector<8x1xf32>
    %182 = vector.broadcast %181 : vector<8x1xf32> to vector<8x32xf32>
    %183 = arith.mulf %173, %182 : vector<8x32xf32>
    %c152 = arith.constant 152 : index
    %c0_69 = arith.constant 0 : index
    %184 = vector.load %arg9[%c152, %c0_69] : memref<288x32xf32, #tpu.memory_space<vmem>>, vector<8x32xf32>
    tpu.vector_store %arg9[%c152, %c0_69], %183 {strides = array<i32>} : memref<288x32xf32, #tpu.memory_space<vmem>>, vector<8x32xf32>,
    %185 = vector.extract_strided_slice %12 {offsets = [0, 288], sizes = [8, 32], strides = [1, 1]} : vector<8x512xf32> to vector<8x32xf32>
    %186 = vector.broadcast %13 : vector<1x32xf32> to vector<8x32xf32>
    %187 = arith.addf %185, %186 : vector<8x32xf32>
    %cst_70 = arith.constant 0.000000e+00 : f32
    %188 = vector.broadcast %cst_70 : f32 to vector<8x32xf32>
    %189 = arith.cmpf oge, %187, %188 : vector<8x32xf32>
    %cst_71 = arith.constant 2.000000e-01 : f32
    %190 = vector.broadcast %cst_71 : f32 to vector<8x32xf32>
    %191 = arith.mulf %190, %187 : vector<8x32xf32>
    %192 = arith.select %189, %187, %191 : vector<8x32xi1>, vector<8x32xf32>
    %193 = arith.mulf %192, %192 : vector<8x32xf32>
    %cst_72 = arith.constant dense<0.000000e+00> : vector<8xf32>
    %194 = vector.multi_reduction <add>, %193, %cst_72 [1] : vector<8x32xf32> to vector<8xf32>
    %195 = vector.shape_cast %194 : vector<8xf32> to vector<8x1xf32>
    %cst_73 = arith.constant 3.200000e+01 : f32
    %196 = vector.broadcast %cst_73 : f32 to vector<8x1xf32>
    %197 = arith.divf %195, %196 : vector<8x1xf32>
    %cst_74 = arith.constant 9.99999993E-9 : f32
    %198 = vector.broadcast %cst_74 : f32 to vector<8x1xf32>
    %199 = arith.addf %197, %198 : vector<8x1xf32>
    %200 = math.rsqrt %199 : vector<8x1xf32>
    %201 = vector.broadcast %200 : vector<8x1xf32> to vector<8x32xf32>
    %202 = arith.mulf %192, %201 : vector<8x32xf32>
    %c160 = arith.constant 160 : index
    %c0_75 = arith.constant 0 : index
    %203 = vector.load %arg9[%c160, %c0_75] : memref<288x32xf32, #tpu.memory_space<vmem>>, vector<8x32xf32>
    tpu.vector_store %arg9[%c160, %c0_75], %202 {strides = array<i32>} : memref<288x32xf32, #tpu.memory_space<vmem>>, vector<8x32xf32>,
    %204 = vector.extract_strided_slice %12 {offsets = [0, 320], sizes = [8, 32], strides = [1, 1]} : vector<8x512xf32> to vector<8x32xf32>
    %205 = vector.broadcast %13 : vector<1x32xf32> to vector<8x32xf32>
    %206 = arith.addf %204, %205 : vector<8x32xf32>
    %cst_76 = arith.constant 0.000000e+00 : f32
    %207 = vector.broadcast %cst_76 : f32 to vector<8x32xf32>
    %208 = arith.cmpf oge, %206, %207 : vector<8x32xf32>
    %cst_77 = arith.constant 2.000000e-01 : f32
    %209 = vector.broadcast %cst_77 : f32 to vector<8x32xf32>
    %210 = arith.mulf %209, %206 : vector<8x32xf32>
    %211 = arith.select %208, %206, %210 : vector<8x32xi1>, vector<8x32xf32>
    %212 = arith.mulf %211, %211 : vector<8x32xf32>
    %cst_78 = arith.constant dense<0.000000e+00> : vector<8xf32>
    %213 = vector.multi_reduction <add>, %212, %cst_78 [1] : vector<8x32xf32> to vector<8xf32>
    %214 = vector.shape_cast %213 : vector<8xf32> to vector<8x1xf32>
    %cst_79 = arith.constant 3.200000e+01 : f32
    %215 = vector.broadcast %cst_79 : f32 to vector<8x1xf32>
    %216 = arith.divf %214, %215 : vector<8x1xf32>
    %cst_80 = arith.constant 9.99999993E-9 : f32
    %217 = vector.broadcast %cst_80 : f32 to vector<8x1xf32>
    %218 = arith.addf %216, %217 : vector<8x1xf32>
    %219 = math.rsqrt %218 : vector<8x1xf32>
    %220 = vector.broadcast %219 : vector<8x1xf32> to vector<8x32xf32>
    %221 = arith.mulf %211, %220 : vector<8x32xf32>
    %c168 = arith.constant 168 : index
    %c0_81 = arith.constant 0 : index
    %222 = vector.load %arg9[%c168, %c0_81] : memref<288x32xf32, #tpu.memory_space<vmem>>, vector<8x32xf32>
    tpu.vector_store %arg9[%c168, %c0_81], %221 {strides = array<i32>} : memref<288x32xf32, #tpu.memory_space<vmem>>, vector<8x32xf32>,
    %223 = vector.extract_strided_slice %12 {offsets = [0, 352], sizes = [8, 32], strides = [1, 1]} : vector<8x512xf32> to vector<8x32xf32>
    %224 = vector.broadcast %13 : vector<1x32xf32> to vector<8x32xf32>
    %225 = arith.addf %223, %224 : vector<8x32xf32>
    %cst_82 = arith.constant 0.000000e+00 : f32
    %226 = vector.broadcast %cst_82 : f32 to vector<8x32xf32>
    %227 = arith.cmpf oge, %225, %226 : vector<8x32xf32>
    %cst_83 = arith.constant 2.000000e-01 : f32
    %228 = vector.broadcast %cst_83 : f32 to vector<8x32xf32>
    %229 = arith.mulf %228, %225 : vector<8x32xf32>
    %230 = arith.select %227, %225, %229 : vector<8x32xi1>, vector<8x32xf32>
    %231 = arith.mulf %230, %230 : vector<8x32xf32>
    %cst_84 = arith.constant dense<0.000000e+00> : vector<8xf32>
    %232 = vector.multi_reduction <add>, %231, %cst_84 [1] : vector<8x32xf32> to vector<8xf32>
    %233 = vector.shape_cast %232 : vector<8xf32> to vector<8x1xf32>
    %cst_85 = arith.constant 3.200000e+01 : f32
    %234 = vector.broadcast %cst_85 : f32 to vector<8x1xf32>
    %235 = arith.divf %233, %234 : vector<8x1xf32>
    %cst_86 = arith.constant 9.99999993E-9 : f32
    %236 = vector.broadcast %cst_86 : f32 to vector<8x1xf32>
    %237 = arith.addf %235, %236 : vector<8x1xf32>
    %238 = math.rsqrt %237 : vector<8x1xf32>
    %239 = vector.broadcast %238 : vector<8x1xf32> to vector<8x32xf32>
    %240 = arith.mulf %230, %239 : vector<8x32xf32>
    %c176 = arith.constant 176 : index
    %c0_87 = arith.constant 0 : index
    %241 = vector.load %arg9[%c176, %c0_87] : memref<288x32xf32, #tpu.memory_space<vmem>>, vector<8x32xf32>
    tpu.vector_store %arg9[%c176, %c0_87], %240 {strides = array<i32>} : memref<288x32xf32, #tpu.memory_space<vmem>>, vector<8x32xf32>,
    %242 = vector.extract_strided_slice %12 {offsets = [0, 384], sizes = [8, 32], strides = [1, 1]} : vector<8x512xf32> to vector<8x32xf32>
    %243 = vector.broadcast %13 : vector<1x32xf32> to vector<8x32xf32>
    %244 = arith.addf %242, %243 : vector<8x32xf32>
    %cst_88 = arith.constant 0.000000e+00 : f32
    %245 = vector.broadcast %cst_88 : f32 to vector<8x32xf32>
    %246 = arith.cmpf oge, %244, %245 : vector<8x32xf32>
    %cst_89 = arith.constant 2.000000e-01 : f32
    %247 = vector.broadcast %cst_89 : f32 to vector<8x32xf32>
    %248 = arith.mulf %247, %244 : vector<8x32xf32>
    %249 = arith.select %246, %244, %248 : vector<8x32xi1>, vector<8x32xf32>
    %250 = arith.mulf %249, %249 : vector<8x32xf32>
    %cst_90 = arith.constant dense<0.000000e+00> : vector<8xf32>
    %251 = vector.multi_reduction <add>, %250, %cst_90 [1] : vector<8x32xf32> to vector<8xf32>
    %252 = vector.shape_cast %251 : vector<8xf32> to vector<8x1xf32>
    %cst_91 = arith.constant 3.200000e+01 : f32
    %253 = vector.broadcast %cst_91 : f32 to vector<8x1xf32>
    %254 = arith.divf %252, %253 : vector<8x1xf32>
    %cst_92 = arith.constant 9.99999993E-9 : f32
    %255 = vector.broadcast %cst_92 : f32 to vector<8x1xf32>
    %256 = arith.addf %254, %255 : vector<8x1xf32>
    %257 = math.rsqrt %256 : vector<8x1xf32>
    %258 = vector.broadcast %257 : vector<8x1xf32> to vector<8x32xf32>
    %259 = arith.mulf %249, %258 : vector<8x32xf32>
    %c200 = arith.constant 200 : index
    %c0_93 = arith.constant 0 : index
    %260 = vector.load %arg9[%c200, %c0_93] : memref<288x32xf32, #tpu.memory_space<vmem>>, vector<8x32xf32>
    tpu.vector_store %arg9[%c200, %c0_93], %259 {strides = array<i32>} : memref<288x32xf32, #tpu.memory_space<vmem>>, vector<8x32xf32>,
    %261 = vector.extract_strided_slice %12 {offsets = [0, 416], sizes = [8, 32], strides = [1, 1]} : vector<8x512xf32> to vector<8x32xf32>
    %262 = vector.broadcast %13 : vector<1x32xf32> to vector<8x32xf32>
    %263 = arith.addf %261, %262 : vector<8x32xf32>
    %cst_94 = arith.constant 0.000000e+00 : f32
    %264 = vector.broadcast %cst_94 : f32 to vector<8x32xf32>
    %265 = arith.cmpf oge, %263, %264 : vector<8x32xf32>
    %cst_95 = arith.constant 2.000000e-01 : f32
    %266 = vector.broadcast %cst_95 : f32 to vector<8x32xf32>
    %267 = arith.mulf %266, %263 : vector<8x32xf32>
    %268 = arith.select %265, %263, %267 : vector<8x32xi1>, vector<8x32xf32>
    %269 = arith.mulf %268, %268 : vector<8x32xf32>
    %cst_96 = arith.constant dense<0.000000e+00> : vector<8xf32>
    %270 = vector.multi_reduction <add>, %269, %cst_96 [1] : vector<8x32xf32> to vector<8xf32>
    %271 = vector.shape_cast %270 : vector<8xf32> to vector<8x1xf32>
    %cst_97 = arith.constant 3.200000e+01 : f32
    %272 = vector.broadcast %cst_97 : f32 to vector<8x1xf32>
    %273 = arith.divf %271, %272 : vector<8x1xf32>
    %cst_98 = arith.constant 9.99999993E-9 : f32
    %274 = vector.broadcast %cst_98 : f32 to vector<8x1xf32>
    %275 = arith.addf %273, %274 : vector<8x1xf32>
    %276 = math.rsqrt %275 : vector<8x1xf32>
    %277 = vector.broadcast %276 : vector<8x1xf32> to vector<8x32xf32>
    %278 = arith.mulf %268, %277 : vector<8x32xf32>
    %c208 = arith.constant 208 : index
    %c0_99 = arith.constant 0 : index
    %279 = vector.load %arg9[%c208, %c0_99] : memref<288x32xf32, #tpu.memory_space<vmem>>, vector<8x32xf32>
    tpu.vector_store %arg9[%c208, %c0_99], %278 {strides = array<i32>} : memref<288x32xf32, #tpu.memory_space<vmem>>, vector<8x32xf32>,
    %280 = vector.extract_strided_slice %12 {offsets = [0, 448], sizes = [8, 32], strides = [1, 1]} : vector<8x512xf32> to vector<8x32xf32>
    %281 = vector.broadcast %13 : vector<1x32xf32> to vector<8x32xf32>
    %282 = arith.addf %280, %281 : vector<8x32xf32>
    %cst_100 = arith.constant 0.000000e+00 : f32
    %283 = vector.broadcast %cst_100 : f32 to vector<8x32xf32>
    %284 = arith.cmpf oge, %282, %283 : vector<8x32xf32>
    %cst_101 = arith.constant 2.000000e-01 : f32
    %285 = vector.broadcast %cst_101 : f32 to vector<8x32xf32>
    %286 = arith.mulf %285, %282 : vector<8x32xf32>
    %287 = arith.select %284, %282, %286 : vector<8x32xi1>, vector<8x32xf32>
    %288 = arith.mulf %287, %287 : vector<8x32xf32>
    %cst_102 = arith.constant dense<0.000000e+00> : vector<8xf32>
    %289 = vector.multi_reduction <add>, %288, %cst_102 [1] : vector<8x32xf32> to vector<8xf32>
    %290 = vector.shape_cast %289 : vector<8xf32> to vector<8x1xf32>
    %cst_103 = arith.constant 3.200000e+01 : f32
    %291 = vector.broadcast %cst_103 : f32 to vector<8x1xf32>
    %292 = arith.divf %290, %291 : vector<8x1xf32>
    %cst_104 = arith.constant 9.99999993E-9 : f32
    %293 = vector.broadcast %cst_104 : f32 to vector<8x1xf32>
    %294 = arith.addf %292, %293 : vector<8x1xf32>
    %295 = math.rsqrt %294 : vector<8x1xf32>
    %296 = vector.broadcast %295 : vector<8x1xf32> to vector<8x32xf32>
    %297 = arith.mulf %287, %296 : vector<8x32xf32>
    %c216 = arith.constant 216 : index
    %c0_105 = arith.constant 0 : index
    %298 = vector.load %arg9[%c216, %c0_105] : memref<288x32xf32, #tpu.memory_space<vmem>>, vector<8x32xf32>
    tpu.vector_store %arg9[%c216, %c0_105], %297 {strides = array<i32>} : memref<288x32xf32, #tpu.memory_space<vmem>>, vector<8x32xf32>,
    %299 = vector.extract_strided_slice %12 {offsets = [0, 480], sizes = [8, 32], strides = [1, 1]} : vector<8x512xf32> to vector<8x32xf32>
    %300 = vector.broadcast %13 : vector<1x32xf32> to vector<8x32xf32>
    %301 = arith.addf %299, %300 : vector<8x32xf32>
    %cst_106 = arith.constant 0.000000e+00 : f32
    %302 = vector.broadcast %cst_106 : f32 to vector<8x32xf32>
    %303 = arith.cmpf oge, %301, %302 : vector<8x32xf32>
    %cst_107 = arith.constant 2.000000e-01 : f32
    %304 = vector.broadcast %cst_107 : f32 to vector<8x32xf32>
    %305 = arith.mulf %304, %301 : vector<8x32xf32>
    %306 = arith.select %303, %301, %305 : vector<8x32xi1>, vector<8x32xf32>
    %307 = arith.mulf %306, %306 : vector<8x32xf32>
    %cst_108 = arith.constant dense<0.000000e+00> : vector<8xf32>
    %308 = vector.multi_reduction <add>, %307, %cst_108 [1] : vector<8x32xf32> to vector<8xf32>
    %309 = vector.shape_cast %308 : vector<8xf32> to vector<8x1xf32>
    %cst_109 = arith.constant 3.200000e+01 : f32
    %310 = vector.broadcast %cst_109 : f32 to vector<8x1xf32>
    %311 = arith.divf %309, %310 : vector<8x1xf32>
    %cst_110 = arith.constant 9.99999993E-9 : f32
    %312 = vector.broadcast %cst_110 : f32 to vector<8x1xf32>
    %313 = arith.addf %311, %312 : vector<8x1xf32>
    %314 = math.rsqrt %313 : vector<8x1xf32>
    %315 = vector.broadcast %314 : vector<8x1xf32> to vector<8x32xf32>
    %316 = arith.mulf %306, %315 : vector<8x32xf32>
    %c224 = arith.constant 224 : index
    %c0_111 = arith.constant 0 : index
    %317 = vector.load %arg9[%c224, %c0_111] : memref<288x32xf32, #tpu.memory_space<vmem>>, vector<8x32xf32>
    tpu.vector_store %arg9[%c224, %c0_111], %316 {strides = array<i32>} : memref<288x32xf32, #tpu.memory_space<vmem>>, vector<8x32xf32>,
    %c0_112 = arith.constant 0 : index
    %c0_113 = arith.constant 0 : index
    %318 = vector.load %arg9[%c0_112, %c0_113] : memref<288x32xf32, #tpu.memory_space<vmem>>, vector<176x32xf32>
    %c0_114 = arith.constant 0 : index
    %c0_115 = arith.constant 0 : index
    %c0_116 = arith.constant 0 : index
    %319 = vector.load %arg4[%c0_114, %c0_115, %c0_116] : memref<9x32x32xf32, #tpu.memory_space<vmem>>, vector<1x32x32xf32>
    %320 = vector.shape_cast %319 : vector<1x32x32xf32> to vector<32x32xf32>
    %cst_117 = arith.constant dense<0.000000e+00> : vector<176x32xf32>
    %321 = tpu.matmul %318, %320, %cst_117 {dimension_numbers = #tpu.dot_dimension_numbers<[1], [0], [0], [1], [0, 0, 1, 1], [], []>} : vector<176x32xf32>, vector<32x32xf32>, vector<176x32xf32> -> vector<176x32xf32>
    %c0_118 = arith.constant 0 : index
    %c0_119 = arith.constant 0 : index
    %322 = vector.load %arg10[%c0_118, %c0_119] : memref<176x32xf32, #tpu.memory_space<vmem>>, vector<176x32xf32>
    tpu.vector_store %arg10[%c0_118, %c0_119], %321 {strides = array<i32>} : memref<176x32xf32, #tpu.memory_space<vmem>>, vector<176x32xf32>,
    %c8 = arith.constant 8 : index
    %c0_120 = arith.constant 0 : index
    %323 = vector.load %arg9[%c8, %c0_120] : memref<288x32xf32, #tpu.memory_space<vmem>>, vector<176x32xf32>
    %c1 = arith.constant 1 : index
    %c0_121 = arith.constant 0 : index
    %c0_122 = arith.constant 0 : index
    %324 = vector.load %arg4[%c1, %c0_121, %c0_122] : memref<9x32x32xf32, #tpu.memory_space<vmem>>, vector<1x32x32xf32>
    %325 = vector.shape_cast %324 : vector<1x32x32xf32> to vector<32x32xf32>
    %cst_123 = arith.constant dense<0.000000e+00> : vector<176x32xf32>
    %326 = tpu.matmul %323, %325, %cst_123 {dimension_numbers = #tpu.dot_dimension_numbers<[1], [0], [0], [1], [0, 0, 1, 1], [], []>} : vector<176x32xf32>, vector<32x32xf32>, vector<176x32xf32> -> vector<176x32xf32>
    %c0_124 = arith.constant 0 : index
    %c0_125 = arith.constant 0 : index
    %327 = vector.load %arg10[%c0_124, %c0_125] : memref<176x32xf32, #tpu.memory_space<vmem>>, vector<176x32xf32>
    %328 = arith.addf %327, %326 : vector<176x32xf32>
    %c0_126 = arith.constant 0 : index
    %c0_127 = arith.constant 0 : index
    %329 = vector.load %arg10[%c0_126, %c0_127] : memref<176x32xf32, #tpu.memory_space<vmem>>, vector<176x32xf32>
    tpu.vector_store %arg10[%c0_126, %c0_127], %328 {strides = array<i32>} : memref<176x32xf32, #tpu.memory_space<vmem>>, vector<176x32xf32>,
    %c16 = arith.constant 16 : index
    %c0_128 = arith.constant 0 : index
    %330 = vector.load %arg9[%c16, %c0_128] : memref<288x32xf32, #tpu.memory_space<vmem>>, vector<176x32xf32>
    %c2 = arith.constant 2 : index
    %c0_129 = arith.constant 0 : index
    %c0_130 = arith.constant 0 : index
    %331 = vector.load %arg4[%c2, %c0_129, %c0_130] : memref<9x32x32xf32, #tpu.memory_space<vmem>>, vector<1x32x32xf32>
    %332 = vector.shape_cast %331 : vector<1x32x32xf32> to vector<32x32xf32>
    %cst_131 = arith.constant dense<0.000000e+00> : vector<176x32xf32>
    %333 = tpu.matmul %330, %332, %cst_131 {dimension_numbers = #tpu.dot_dimension_numbers<[1], [0], [0], [1], [0, 0, 1, 1], [], []>} : vector<176x32xf32>, vector<32x32xf32>, vector<176x32xf32> -> vector<176x32xf32>
    %c0_132 = arith.constant 0 : index
    %c0_133 = arith.constant 0 : index
    %334 = vector.load %arg10[%c0_132, %c0_133] : memref<176x32xf32, #tpu.memory_space<vmem>>, vector<176x32xf32>
    %335 = arith.addf %334, %333 : vector<176x32xf32>
    %c0_134 = arith.constant 0 : index
    %c0_135 = arith.constant 0 : index
    %336 = vector.load %arg10[%c0_134, %c0_135] : memref<176x32xf32, #tpu.memory_space<vmem>>, vector<176x32xf32>
    tpu.vector_store %arg10[%c0_134, %c0_135], %335 {strides = array<i32>} : memref<176x32xf32, #tpu.memory_space<vmem>>, vector<176x32xf32>,
    %c48 = arith.constant 48 : index
    %c0_136 = arith.constant 0 : index
    %337 = vector.load %arg9[%c48, %c0_136] : memref<288x32xf32, #tpu.memory_space<vmem>>, vector<176x32xf32>
    %c3 = arith.constant 3 : index
    %c0_137 = arith.constant 0 : index
    %c0_138 = arith.constant 0 : index
    %338 = vector.load %arg4[%c3, %c0_137, %c0_138] : memref<9x32x32xf32, #tpu.memory_space<vmem>>, vector<1x32x32xf32>
    %339 = vector.shape_cast %338 : vector<1x32x32xf32> to vector<32x32xf32>
    %cst_139 = arith.constant dense<0.000000e+00> : vector<176x32xf32>
    %340 = tpu.matmul %337, %339, %cst_139 {dimension_numbers = #tpu.dot_dimension_numbers<[1], [0], [0], [1], [0, 0, 1, 1], [], []>} : vector<176x32xf32>, vector<32x32xf32>, vector<176x32xf32> -> vector<176x32xf32>
    %c0_140 = arith.constant 0 : index
    %c0_141 = arith.constant 0 : index
    %341 = vector.load %arg10[%c0_140, %c0_141] : memref<176x32xf32, #tpu.memory_space<vmem>>, vector<176x32xf32>
    %342 = arith.addf %341, %340 : vector<176x32xf32>
    %c0_142 = arith.constant 0 : index
    %c0_143 = arith.constant 0 : index
    %343 = vector.load %arg10[%c0_142, %c0_143] : memref<176x32xf32, #tpu.memory_space<vmem>>, vector<176x32xf32>
    tpu.vector_store %arg10[%c0_142, %c0_143], %342 {strides = array<i32>} : memref<176x32xf32, #tpu.memory_space<vmem>>, vector<176x32xf32>,
    %c56_144 = arith.constant 56 : index
    %c0_145 = arith.constant 0 : index
    %344 = vector.load %arg9[%c56_144, %c0_145] : memref<288x32xf32, #tpu.memory_space<vmem>>, vector<176x32xf32>
    %c4 = arith.constant 4 : index
    %c0_146 = arith.constant 0 : index
    %c0_147 = arith.constant 0 : index
    %345 = vector.load %arg4[%c4, %c0_146, %c0_147] : memref<9x32x32xf32, #tpu.memory_space<vmem>>, vector<1x32x32xf32>
    %346 = vector.shape_cast %345 : vector<1x32x32xf32> to vector<32x32xf32>
    %cst_148 = arith.constant dense<0.000000e+00> : vector<176x32xf32>
    %347 = tpu.matmul %344, %346, %cst_148 {dimension_numbers = #tpu.dot_dimension_numbers<[1], [0], [0], [1], [0, 0, 1, 1], [], []>} : vector<176x32xf32>, vector<32x32xf32>, vector<176x32xf32> -> vector<176x32xf32>
    %c0_149 = arith.constant 0 : index
    %c0_150 = arith.constant 0 : index
    %348 = vector.load %arg10[%c0_149, %c0_150] : memref<176x32xf32, #tpu.memory_space<vmem>>, vector<176x32xf32>
    %349 = arith.addf %348, %347 : vector<176x32xf32>
    %c0_151 = arith.constant 0 : index
    %c0_152 = arith.constant 0 : index
    %350 = vector.load %arg10[%c0_151, %c0_152] : memref<176x32xf32, #tpu.memory_space<vmem>>, vector<176x32xf32>
    tpu.vector_store %arg10[%c0_151, %c0_152], %349 {strides = array<i32>} : memref<176x32xf32, #tpu.memory_space<vmem>>, vector<176x32xf32>,
    %c64_153 = arith.constant 64 : index
    %c0_154 = arith.constant 0 : index
    %351 = vector.load %arg9[%c64_153, %c0_154] : memref<288x32xf32, #tpu.memory_space<vmem>>, vector<176x32xf32>
    %c5 = arith.constant 5 : index
    %c0_155 = arith.constant 0 : index
    %c0_156 = arith.constant 0 : index
    %352 = vector.load %arg4[%c5, %c0_155, %c0_156] : memref<9x32x32xf32, #tpu.memory_space<vmem>>, vector<1x32x32xf32>
    %353 = vector.shape_cast %352 : vector<1x32x32xf32> to vector<32x32xf32>
    %cst_157 = arith.constant dense<0.000000e+00> : vector<176x32xf32>
    %354 = tpu.matmul %351, %353, %cst_157 {dimension_numbers = #tpu.dot_dimension_numbers<[1], [0], [0], [1], [0, 0, 1, 1], [], []>} : vector<176x32xf32>, vector<32x32xf32>, vector<176x32xf32> -> vector<176x32xf32>
    %c0_158 = arith.constant 0 : index
    %c0_159 = arith.constant 0 : index
    %355 = vector.load %arg10[%c0_158, %c0_159] : memref<176x32xf32, #tpu.memory_space<vmem>>, vector<176x32xf32>
    %356 = arith.addf %355, %354 : vector<176x32xf32>
    %c0_160 = arith.constant 0 : index
    %c0_161 = arith.constant 0 : index
    %357 = vector.load %arg10[%c0_160, %c0_161] : memref<176x32xf32, #tpu.memory_space<vmem>>, vector<176x32xf32>
    tpu.vector_store %arg10[%c0_160, %c0_161], %356 {strides = array<i32>} : memref<176x32xf32, #tpu.memory_space<vmem>>, vector<176x32xf32>,
    %c96 = arith.constant 96 : index
    %c0_162 = arith.constant 0 : index
    %358 = vector.load %arg9[%c96, %c0_162] : memref<288x32xf32, #tpu.memory_space<vmem>>, vector<176x32xf32>
    %c6 = arith.constant 6 : index
    %c0_163 = arith.constant 0 : index
    %c0_164 = arith.constant 0 : index
    %359 = vector.load %arg4[%c6, %c0_163, %c0_164] : memref<9x32x32xf32, #tpu.memory_space<vmem>>, vector<1x32x32xf32>
    %360 = vector.shape_cast %359 : vector<1x32x32xf32> to vector<32x32xf32>
    %cst_165 = arith.constant dense<0.000000e+00> : vector<176x32xf32>
    %361 = tpu.matmul %358, %360, %cst_165 {dimension_numbers = #tpu.dot_dimension_numbers<[1], [0], [0], [1], [0, 0, 1, 1], [], []>} : vector<176x32xf32>, vector<32x32xf32>, vector<176x32xf32> -> vector<176x32xf32>
    %c0_166 = arith.constant 0 : index
    %c0_167 = arith.constant 0 : index
    %362 = vector.load %arg10[%c0_166, %c0_167] : memref<176x32xf32, #tpu.memory_space<vmem>>, vector<176x32xf32>
    %363 = arith.addf %362, %361 : vector<176x32xf32>
    %c0_168 = arith.constant 0 : index
    %c0_169 = arith.constant 0 : index
    %364 = vector.load %arg10[%c0_168, %c0_169] : memref<176x32xf32, #tpu.memory_space<vmem>>, vector<176x32xf32>
    tpu.vector_store %arg10[%c0_168, %c0_169], %363 {strides = array<i32>} : memref<176x32xf32, #tpu.memory_space<vmem>>, vector<176x32xf32>,
    %c104_170 = arith.constant 104 : index
    %c0_171 = arith.constant 0 : index
    %365 = vector.load %arg9[%c104_170, %c0_171] : memref<288x32xf32, #tpu.memory_space<vmem>>, vector<176x32xf32>
    %c7 = arith.constant 7 : index
    %c0_172 = arith.constant 0 : index
    %c0_173 = arith.constant 0 : index
    %366 = vector.load %arg4[%c7, %c0_172, %c0_173] : memref<9x32x32xf32, #tpu.memory_space<vmem>>, vector<1x32x32xf32>
    %367 = vector.shape_cast %366 : vector<1x32x32xf32> to vector<32x32xf32>
    %cst_174 = arith.constant dense<0.000000e+00> : vector<176x32xf32>
    %368 = tpu.matmul %365, %367, %cst_174 {dimension_numbers = #tpu.dot_dimension_numbers<[1], [0], [0], [1], [0, 0, 1, 1], [], []>} : vector<176x32xf32>, vector<32x32xf32>, vector<176x32xf32> -> vector<176x32xf32>
    %c0_175 = arith.constant 0 : index
    %c0_176 = arith.constant 0 : index
    %369 = vector.load %arg10[%c0_175, %c0_176] : memref<176x32xf32, #tpu.memory_space<vmem>>, vector<176x32xf32>
    %370 = arith.addf %369, %368 : vector<176x32xf32>
    %c0_177 = arith.constant 0 : index
    %c0_178 = arith.constant 0 : index
    %371 = vector.load %arg10[%c0_177, %c0_178] : memref<176x32xf32, #tpu.memory_space<vmem>>, vector<176x32xf32>
    tpu.vector_store %arg10[%c0_177, %c0_178], %370 {strides = array<i32>} : memref<176x32xf32, #tpu.memory_space<vmem>>, vector<176x32xf32>,
    %c112_179 = arith.constant 112 : index
    %c0_180 = arith.constant 0 : index
    %372 = vector.load %arg9[%c112_179, %c0_180] : memref<288x32xf32, #tpu.memory_space<vmem>>, vector<176x32xf32>
    %c8_181 = arith.constant 8 : index
    %c0_182 = arith.constant 0 : index
    %c0_183 = arith.constant 0 : index
    %373 = vector.load %arg4[%c8_181, %c0_182, %c0_183] : memref<9x32x32xf32, #tpu.memory_space<vmem>>, vector<1x32x32xf32>
    %374 = vector.shape_cast %373 : vector<1x32x32xf32> to vector<32x32xf32>
    %cst_184 = arith.constant dense<0.000000e+00> : vector<176x32xf32>
    %375 = tpu.matmul %372, %374, %cst_184 {dimension_numbers = #tpu.dot_dimension_numbers<[1], [0], [0], [1], [0, 0, 1, 1], [], []>} : vector<176x32xf32>, vector<32x32xf32>, vector<176x32xf32> -> vector<176x32xf32>
    %c0_185 = arith.constant 0 : index
    %c0_186 = arith.constant 0 : index
    %376 = vector.load %arg10[%c0_185, %c0_186] : memref<176x32xf32, #tpu.memory_space<vmem>>, vector<176x32xf32>
    %377 = arith.addf %376, %375 : vector<176x32xf32>
    %c0_187 = arith.constant 0 : index
    %c0_188 = arith.constant 0 : index
    %378 = vector.load %arg10[%c0_187, %c0_188] : memref<176x32xf32, #tpu.memory_space<vmem>>, vector<176x32xf32>
    tpu.vector_store %arg10[%c0_187, %c0_188], %377 {strides = array<i32>} : memref<176x32xf32, #tpu.memory_space<vmem>>, vector<176x32xf32>,
    %c0_189 = arith.constant 0 : index
    %c0_190 = arith.constant 0 : index
    %379 = vector.load %arg10[%c0_189, %c0_190] : memref<176x32xf32, #tpu.memory_space<vmem>>, vector<32x32xf32>
    %c48_191 = arith.constant 48 : index
    %c0_192 = arith.constant 0 : index
    %380 = vector.load %arg10[%c48_191, %c0_192] : memref<176x32xf32, #tpu.memory_space<vmem>>, vector<32x32xf32>
    %c96_193 = arith.constant 96 : index
    %c0_194 = arith.constant 0 : index
    %381 = vector.load %arg10[%c96_193, %c0_194] : memref<176x32xf32, #tpu.memory_space<vmem>>, vector<32x32xf32>
    %c144 = arith.constant 144 : index
    %c0_195 = arith.constant 0 : index
    %382 = vector.load %arg10[%c144, %c0_195] : memref<176x32xf32, #tpu.memory_space<vmem>>, vector<32x32xf32>
    %383 = tpu.concatenate %379, %380, %381, %382 in 0 : vector<32x32xf32>, vector<32x32xf32>, vector<32x32xf32>, vector<32x32xf32> -> vector<128x32xf32>
    %c0_196 = arith.constant 0 : index
    %c0_197 = arith.constant 0 : index
    %384 = vector.load %arg5[%c0_196, %c0_197] : memref<1x32xf32, #tpu.memory_space<vmem>>, vector<1x32xf32>
    %385 = vector.broadcast %384 : vector<1x32xf32> to vector<128x32xf32>
    %386 = arith.addf %383, %385 : vector<128x32xf32>
    %cst_198 = arith.constant 0.000000e+00 : f32
    %387 = vector.broadcast %cst_198 : f32 to vector<128x32xf32>
    %388 = arith.cmpf oge, %386, %387 : vector<128x32xf32>
    %cst_199 = arith.constant 2.000000e-01 : f32
    %389 = vector.broadcast %cst_199 : f32 to vector<128x32xf32>
    %390 = arith.mulf %389, %386 : vector<128x32xf32>
    %391 = arith.select %388, %386, %390 : vector<128x32xi1>, vector<128x32xf32>
    %392 = arith.mulf %391, %391 : vector<128x32xf32>
    %cst_200 = arith.constant dense<0.000000e+00> : vector<128xf32>
    %393 = vector.multi_reduction <add>, %392, %cst_200 [1] : vector<128x32xf32> to vector<128xf32>
    %394 = vector.shape_cast %393 : vector<128xf32> to vector<128x1xf32>
    %cst_201 = arith.constant 3.200000e+01 : f32
    %395 = vector.broadcast %cst_201 : f32 to vector<128x1xf32>
    %396 = arith.divf %394, %395 : vector<128x1xf32>
    %cst_202 = arith.constant 9.99999993E-9 : f32
    %397 = vector.broadcast %cst_202 : f32 to vector<128x1xf32>
    %398 = arith.addf %396, %397 : vector<128x1xf32>
    %399 = math.rsqrt %398 : vector<128x1xf32>
    %400 = vector.broadcast %399 : vector<128x1xf32> to vector<128x32xf32>
    %401 = arith.mulf %391, %400 : vector<128x32xf32>
    %c0_203 = arith.constant 0 : index
    %c0_204 = arith.constant 0 : index
    %402 = vector.load %arg6[%c0_203, %c0_204] : memref<1x32xf32, #tpu.memory_space<vmem>>, vector<1x32xf32>
    "tpu.trace_start"() <{level = 10 : i32, message = "oc,mc->om"}> : () -> ()
    %cst_205 = arith.constant dense<0.000000e+00> : vector<1x128xf32>
    %403 = tpu.matmul %402, %401, %cst_205 {dimension_numbers = #tpu.dot_dimension_numbers<[1], [1], [0], [0], [0, 0, 1, 0], [], []>} : vector<1x32xf32>, vector<128x32xf32>, vector<1x128xf32> -> vector<1x128xf32>
    "tpu.trace_stop"() : () -> ()
    %c0_206 = arith.constant 0 : index
    %c0_207 = arith.constant 0 : index
    %404 = vector.load %arg7[%c0_206, %c0_207] : memref<1x1xf32, #tpu.memory_space<vmem>>, vector<1x1xf32>
    %405 = vector.broadcast %404 : vector<1x1xf32> to vector<1x128xf32>
    %406 = arith.addf %403, %405 : vector<1x128xf32>
    %c0_208 = arith.constant 0 : index
    %c0_209 = arith.constant 0 : index
    %407 = vector.load %arg8[%c0_208, %c0_209] : memref<1x128xf32, #tpu.memory_space<vmem>>, vector<1x128xf32>
    tpu.vector_store %arg8[%c0_208, %c0_209], %406 {strides = array<i32>} : memref<1x128xf32, #tpu.memory_space<vmem>>, vector<1x128xf32>,
    return
  }
  func.func @transform_0(%arg0: i32) -> (i32, i32) {
    %c0_i32 = arith.constant 0 : i32
    %c0_i32_0 = arith.constant 0 : i32
    return %arg0, %c0_i32 : i32, i32
  }
  func.func @transform_1(%arg0: i32) -> (i32, i32) {
    %c0_i32 = arith.constant 0 : i32
    %c0_i32_0 = arith.constant 0 : i32
    %c0_i32_1 = arith.constant 0 : i32
    return %c0_i32, %c0_i32_0 : i32, i32
  }
  func.func @transform_2(%arg0: i32) -> (i32, i32) {
    %c0_i32 = arith.constant 0 : i32
    %c0_i32_0 = arith.constant 0 : i32
    %c0_i32_1 = arith.constant 0 : i32
    return %c0_i32, %c0_i32_0 : i32, i32
  }
  func.func @transform_3(%arg0: i32) -> (i32, i32, i32) {
    %c0_i32 = arith.constant 0 : i32
    %c0_i32_0 = arith.constant 0 : i32
    %c0_i32_1 = arith.constant 0 : i32
    %c0_i32_2 = arith.constant 0 : i32
    return %c0_i32, %c0_i32_0, %c0_i32_1 : i32, i32, i32
  }
  func.func @transform_4(%arg0: i32) -> (i32, i32) {
    %c0_i32 = arith.constant 0 : i32
    %c0_i32_0 = arith.constant 0 : i32
    %c0_i32_1 = arith.constant 0 : i32
    return %c0_i32, %c0_i32_0 : i32, i32
  }
  func.func @transform_5(%arg0: i32) -> (i32, i32) {
    %c0_i32 = arith.constant 0 : i32
    %c0_i32_0 = arith.constant 0 : i32
    %c0_i32_1 = arith.constant 0 : i32
    return %c0_i32, %c0_i32_0 : i32, i32
  }
  func.func @transform_6(%arg0: i32) -> (i32, i32) {
    %c0_i32 = arith.constant 0 : i32
    %c0_i32_0 = arith.constant 0 : i32
    %c0_i32_1 = arith.constant 0 : i32
    return %c0_i32, %c0_i32_0 : i32, i32
  }
  func.func @transform_7(%arg0: i32) -> (i32, i32) {
    %c0_i32 = arith.constant 0 : i32
    %c0_i32_0 = arith.constant 0 : i32
    return %c0_i32, %arg0 : i32, i32
  }
}

</mosaic_0001>

<bundles_post_ra>
// kernel: _generator_forward.1
= control target key start
LH: loop header
LB: loop body
LE: loop exit
PB: predicated region body
PF: predicated region fallthrough
CT: control target
= control target key end

     0   :  { %s5986_s0 = inlined_call_operand.vmem [shape: f32[8,32], index: 0, kind: input, shape index: {}]   ;;  %s5987_s1 = inlined_call_operand.hbm [shape: f32[32,512], index: 1, kind: input, shape index: {}]   ;;  %s5988_s2 = inlined_call_operand.vmem [shape: f32[1,32], index: 2, kind: input, shape index: {}]   ;;  %s5989_s3 = inlined_call_operand.hbm [shape: f32[9,32,32], index: 3, kind: input, shape index: {}]   ;;  %s5990_s4 = inlined_call_operand.vmem [shape: f32[1,32], index: 4, kind: input, shape index: {}]   ;;  %s5991_s5 = inlined_call_operand.vmem [shape: f32[1,32], index: 5, kind: input, shape index: {}]   ;;  %s5992_s6 = inlined_call_operand.<no memory space> [shape: f32[1,1], index: 6, kind: input, shape index: {}]   ;;  %s5993_s7 = inlined_call_operand.vmem [shape: f32[1,128], index: 7, kind: output, shape index: {}]  }
   0x1   :  { %v12_v0 = vstv %s5992_s6 }
   0x2   :  { %13 = vst [vmem:[#allocation4] sm:$0x1] %v12_v0 }
   0x3   :  { %14 = vsyncpa [#allocation6], 0 }
   0x4   :  { %15 = vsyncpa [#allocation8], 0  ;;  %s4869_s26 = smov [#allocation5]  }
   0x5   :  { %s23_s27 = sshll.u32 %s4869_s26, 4  ;;  %s24_s27 = int_to_ptr.vmem [resolvable:$true] %s23_s27 }
   0x6   :  { %s4833_s28 = scalar_lea.vmem %s24_s27, 2048  ;;  %p4838_p1 = scmp.lt.s32.totalorder %s24_s27, %s24_s27 }
   0x7   :  { %p4834_p0 = scmp.ne.s32.totalorder %s24_s27, %s4833_s28  ;;  %p4839_p2 = scmp.lt.s32.totalorder %s4833_s28, %s4833_s28 }
   0x9   :  { %p4840_p3 = por %p4839_p2, %p4838_p1 }
   0xb   :  { %p4841_p4 = pnand %p4840_p3, %p4834_p0 }
   0xd   :  { %4844 = shalt.err (!%p4841_p4)
}
   0xe   :  { %s4870_s29 = smov 512   ;;  %s4871_s30 = smov 32  }
   0xf   :  { %29 = dma.hbm_to_vmem [thread:$0]  %s5987_s1, 2048, %s24_s27, [#allocation6], %s4870_s29, %s4870_s29, %s4871_s30  }
  0x10   :  { %s4872_s6 = smov [#allocation7]  }
  0x11   :  { %s37_s10 = sshll.u32 %s4872_s6, 4  ;;  %s38_s10 = int_to_ptr.vmem [resolvable:$true] %s37_s10 }
  0x12   :  { %s4853_s11 = scalar_lea.vmem %s38_s10, 4608  ;;  %p4858_p6 = scmp.lt.s32.totalorder %s38_s10, %s38_s10 }
  0x13   :  { %p4854_p5 = scmp.ne.s32.totalorder %s38_s10, %s4853_s11  ;;  %p4859_p7 = scmp.lt.s32.totalorder %s4853_s11, %s4853_s11 }
  0x15   :  { %p4860_p8 = por %p4859_p7, %p4858_p6 }
  0x17   :  { %p4861_p9 = pnand %p4860_p8, %p4854_p5 }
  0x19   :  { %4864 = shalt.err (!%p4861_p9)
}
  0x1a   :  { %s4873_s12 = smov 128   ;;  %s4874_s13 = smov 8  }
  0x1b   :  { %43 = dma.hbm_to_vmem [thread:$0]  %s5989_s3, 4608, %s38_s10, [#allocation8], %s4873_s12, %s4873_s12, %s4874_s13  }
  0x1c   :  { %4865 = dma.done.wait [#allocation6], 2048  }
  0x1d   :  { %4866 = vsyncadd [#allocation6], 4294965248 }
  0x1e   :  { %4867 = dma.done.wait [#allocation8], 4608  }
  0x1f   :  { %4868 = vsyncadd [#allocation8], 4294962688  ;;  %vm56_vm0 = vcmask 261120   ;;  %v4875_v1 = vmov 0.0   ;;  %v91_v2 = vld [vmem:[#allocation5 + $0x68] sm:$0xff]  ;;  %v90_v3 = vld [vmem:[#allocation5 + $0x60] sm:$0xff] }
  0x20   :  { %161 = vmatprep.mubr.f32.mxu1 %v4875_v1  ;;  %57 = vst.msk [vmem:[#allocation2] sm:$0xff] %vm56_vm0, %v4875_v1  ;;  %58 = vst.msk [vmem:[#allocation2 + $0x8] sm:$0xff] %vm56_vm0, %v4875_v1  ;;  %v87_v4 = vld [vmem:[#allocation5 + $0x48] sm:$0xff]  ;;  %121 = vmatprep.subr.mxu1 %v91_v2  ;;  %v86_v5 = vld [vmem:[#allocation5 + $0x40] sm:$0xff]  ;;  %s4876_s18 = smov 96  }
  0x21   :  { %59 = vst.msk [vmem:[#allocation2 + $0x10] sm:$0xff] %vm56_vm0, %v4875_v1  ;;  %60 = vst.msk [vmem:[#allocation2 + $0x18] sm:$0xff] %vm56_vm0, %v4875_v1  ;;  %122 = vmatpush1.msra.mxu1 %v90_v3  ;;  %v83_v6 = vld [vmem:[#allocation5 + $0x28] sm:$0xff]  ;;  %v82_v7 = vld [vmem:[#allocation5 + $0x20] sm:$0xff] }
  0x22   :  { %61 = vst.msk [vmem:[#allocation2 + $0x20] sm:$0xff] %vm56_vm0, %v4875_v1  ;;  %62 = vst.msk [vmem:[#allocation2 + $0x28] sm:$0xff] %vm56_vm0, %v4875_v1  ;;  %123 = vmatprep.subr.mxu1 %v87_v4  ;;  %v79_v8 = vld [vmem:[#allocation5 + $0x8] sm:$0xff]  ;;  %v78_v9 = vld [vmem:[#allocation5] sm:$0xff] }
  0x23   :  { %63 = vst.msk [vmem:[#allocation2 + $0x30] sm:$0xff] %vm56_vm0, %v4875_v1  ;;  %64 = vst.msk [vmem:[#allocation2 + $0x58] sm:$0xff] %vm56_vm0, %v4875_v1  ;;  %124 = vmatpush1.msra.mxu1 %v86_v5  ;;  %v4974_v10 = vld [vmem:[%s5988_s2] ss:$0 sm:$0xff]  ;;  %v93_v12 = vld [vmem:[#allocation5 + $0x78] sm:$0xff] }
  0x24   :  { %65 = vst.msk [vmem:[#allocation2 + $0x60] sm:$0xff] %vm56_vm0, %v4875_v1  ;;  %66 = vst.msk [vmem:[#allocation2 + $0x88] sm:$0xff] %vm56_vm0, %v4875_v1  ;;  %125 = vmatprep.subr.mxu1 %v83_v6  ;;  %v77_v11 = vld [vmem:[%s5986_s0] sm:$0xff]  ;;  %260 = vrot.lane.b32.xlu0 %v4974_v10, %s4871_s30  ;;  %v89_v14 = vld [vmem:[#allocation5 + $0x58] sm:$0xff]  ;;  %s4877_s0 = smov 64  }
  0x25   :  { %67 = vst.msk [vmem:[#allocation2 + $0x90] sm:$0xff] %vm56_vm0, %v4875_v1  ;;  %68 = vst.msk [vmem:[#allocation2 + $0xb8] sm:$0xff] %vm56_vm0, %v4875_v1  ;;  %126 = vmatpush1.msra.mxu1 %v82_v7  ;;  %v92_v13 = vld [vmem:[#allocation5 + $0x70] sm:$0xff]  ;;  %308 = vrot.lane.b32.xlu1 %v4974_v10, %s4876_s18  ;;  %v85_v16 = vld [vmem:[#allocation5 + $0x38] sm:$0xff] }
  0x26   :  { %69 = vst.msk [vmem:[#allocation2 + $0xc0] sm:$0xff] %vm56_vm0, %v4875_v1  ;;  %70 = vst.msk [vmem:[#allocation2 + $0xe8] sm:$0xff] %vm56_vm0, %v4875_v1  ;;  %127 = vmatprep.subr.mxu1 %v79_v8  ;;  %v88_v15 = vld [vmem:[#allocation5 + $0x50] sm:$0xff]  ;;  %v81_v18 = vld [vmem:[#allocation5 + $0x18] sm:$0xff] }
  0x27   :  { %71 = vst.msk [vmem:[#allocation2 + $0xf0] sm:$0xff] %vm56_vm0, %v4875_v1  ;;  %72 = vst.msk [vmem:[#allocation2 + $0xf8] sm:$0xff] %vm56_vm0, %v4875_v1  ;;  %128 = vmatpush1.msra.mxu1 %v78_v9  ;;  %v84_v17 = vld [vmem:[#allocation5 + $0x30] sm:$0xff] }
  0x28   :  { %73 = vst.msk [vmem:[#allocation2 + $0x100] sm:$0xff] %vm56_vm0, %v4875_v1  ;;  %74 = vst.msk [vmem:[#allocation2 + $0x108] sm:$0xff] %vm56_vm0, %v4875_v1  ;;  %3875 = vmatmul.mubr.msk.f32.vlgmr.msra.gmra.mxu1 %vm56_vm0, %v77_v11  ;;  %192 = vmatprep.subr.mxu1 %v93_v12  ;;  %v80_v19 = vld [vmem:[#allocation5 + $0x10] sm:$0xff] }
  0x29   :  { %75 = vst.msk [vmem:[#allocation2 + $0x110] sm:$0xff] %vm56_vm0, %v4875_v1  ;;  %76 = vst.msk [vmem:[#allocation2 + $0x118] sm:$0xff] %vm56_vm0, %v4875_v1  ;;  %193 = vmatpush1.msra.mxu1 %v92_v13  ;;  %232 = vmatprep.mubr.f32.mxu1 %v4875_v1 }
  0x2a   :  { %194 = vmatprep.subr.mxu1 %v89_v14  ;;  %284 = vrot.lane.b32.xlu0 %v4974_v10, %s4877_s0 }
  0x2b   :  { %195 = vmatpush1.msra.mxu1 %v88_v15 }
  0x2c   :  { %196 = vmatprep.subr.mxu1 %v85_v16 }
  0x2d   :  { %197 = vmatpush1.msra.mxu1 %v84_v17 }
  0x2e   :  { %198 = vmatprep.subr.mxu1 %v81_v18 }
  0x2f   :  { %199 = vmatpush1.msra.mxu1 %v80_v19 }
  0x30   :  { %3876 = vmatmul.mubr.msk.f32.vlgmr.msra.gmra.mxu1 %vm56_vm0, %v77_v11 }
  0x96   :  { %v4988_v20 = vpop.permute.xlu0 %260 }
  0x97   :  { %v4990_v21 = vpop.permute.xlu1 %308 }
  0x9c   :  { %v4992_v22 = vpop.permute.xlu0 %284 }
  0xe8   :  { %v163_v23 = vpop.f32.mrf.mxu1 }
  0xe9   :  { %v263_v24 = vadd.f32 %v4988_v20, %v163_v23  ;;  %v287_v25 = vadd.f32 %v4992_v22, %v163_v23  ;;  %v311_v26 = vadd.f32 %v4990_v21, %v163_v23  ;;  %v246_v57 = vadd.f32 %v4974_v10, %v163_v23  ;;  %v585_v23 = vld [vmem:[#allocation7 + $0x18] sm:$0xff] }
  0xea   :  { %v165_v27 = vpop.f32.mrf.mxu1  ;;  %4345 = vmatprep.subr.mxu0 %v585_v23 }
  0xeb   :  { %v345_v28 = vadd.f32 %v4988_v20, %v165_v27  ;;  %v366_v29 = vadd.f32 %v4992_v22, %v165_v27  ;;  %v387_v30 = vadd.f32 %v4990_v21, %v165_v27  ;;  %vm288_vm1 = vcmp.ge.f32.partialorder %v287_v25, 0.0  ;;  %4346 = vmatpush3.msra.mxu0 %v585_v23 }
  0xec   :  { %v289_v31 = vmul.f32 0.2, %v287_v25  ;;  %vm264_vm2 = vcmp.ge.f32.partialorder %v263_v24, 0.0  ;;  %v265_v32 = vmul.f32 0.2, %v263_v24  ;;  %vm312_vm3 = vcmp.ge.f32.partialorder %v311_v26, 0.0 }
  0xed   :  { %v313_v33 = vmul.f32 0.2, %v311_v26  ;;  %vm346_vm4 = vcmp.ge.f32.partialorder %v345_v28, 0.0  ;;  %v347_v34 = vmul.f32 0.2, %v345_v28  ;;  %vm367_vm5 = vcmp.ge.f32.partialorder %v366_v29, 0.0 }
  0xee   :  { %v5000_v35 = vsel %vm288_vm1, %v287_v25, %v289_v31  ;;  %v5002_v36 = vsel %vm264_vm2, %v263_v24, %v265_v32  ;;  %v368_v42 = vmul.f32 0.2, %v366_v29  ;;  %vm388_vm6 = vcmp.ge.f32.partialorder %v387_v30, 0.0  ;;  %v584_v24 = vld [vmem:[#allocation7 + $0x10] sm:$0xff]  ;;  %v875_v25 = vld [vmem:[#allocation7 + $0x38] sm:$0xff]  ;;  %v872_v32 = vld [vmem:[#allocation7 + $0x20] sm:$0xff] }
  0xef   :  { %v291_v37 = vmul.f32 %v5000_v35, %v5000_v35  ;;  %v267_v38 = vmul.f32 %v5002_v36, %v5002_v36  ;;  %v5010_v40 = vsel %vm312_vm3, %v311_v26, %v313_v33  ;;  %v5012_v41 = vsel %vm346_vm4, %v345_v28, %v347_v34  ;;  %4347 = vmatprep.subr.mxu0 %v584_v24  ;;  %v583_v26 = vld [vmem:[#allocation7 + $0x8] sm:$0xff]  ;;  %v582_v28 = vld [vmem:[#allocation7] sm:$0xff]  ;;  %v561_v31 = vld [vmem:[#allocation2 + $0x8] sm:$0xff] }
  0xf0   :  { %v5008_v39 = vpop.f32.mrf.mxu1  ;;  %v389_v44 = vmul.f32 0.2, %v387_v30  ;;  %v315_v45 = vmul.f32 %v5010_v40, %v5010_v40  ;;  %v349_v46 = vmul.f32 %v5012_v41, %v5012_v41  ;;  %v5022_v47 = vsel %vm367_vm5, %v366_v29, %v368_v42  ;;  %4348 = vmatpush3.msra.mxu0 %v584_v24  ;;  %4386 = vmatprep.subr.mxu1 %v875_v25  ;;  %v560_v29 = vld [vmem:[#allocation2] sm:$0xff]  ;;  %v5089_v33 = vld [vmem:[#allocation2 + $0x10] sm:$0xff]  ;;  %v5093_v34 = vld [vmem:[#allocation2 + $0x18] sm:$0xff] }
  0xf1   :  { %293 = vrot.lane.b32.xlu0 %v291_v37, %s4877_s0  ;;  %269 = vrot.lane.b32.xlu1 %v267_v38, %s4876_s18  ;;  %v421_v43 = vadd.f32 %v4988_v20, %v5008_v39  ;;  %v370_v50 = vmul.f32 %v5022_v47, %v5022_v47  ;;  %v332_v54 = vadd.f32 %v4974_v10, %v165_v27  ;;  %v248_v59 = vmul.f32 0.2, %v246_v57  ;;  %v874_v27 = vld [vmem:[#allocation7 + $0x30] sm:$0xff]  ;;  %v5109_v42 = vld [vmem:[#allocation2 + $0x30] sm:$0xff] }
  0xf2   :  { %v5024_v48 = vsel %vm388_vm6, %v387_v30, %v389_v44  ;;  %vm247_vm9 = vcmp.ge.f32.partialorder %v246_v57, 0.0  ;;  %v442_v0 = vadd.f32 %v4992_v22, %v5008_v39  ;;  %v5053_v2 = vpop.f32.mrf.mxu1  ;;  %v463_v3 = vadd.f32 %v4990_v21, %v5008_v39  ;;  %4349 = vmatprep.subr.mxu0 %v583_v26  ;;  %4387 = vmatpush3.msra.mxu1 %v875_v25  ;;  %v873_v30 = vld [vmem:[#allocation7 + $0x28] sm:$0xff]  ;;  %v5107_v38 = vld [vmem:[#allocation2 + $0x28] sm:$0xff] }
  0xf3   :  { %v423_v49 = vmul.f32 0.2, %v421_v43  ;;  %vm422_vm7 = vcmp.ge.f32.partialorder %v421_v43, 0.0  ;;  %v391_v51 = vmul.f32 %v5024_v48, %v5024_v48  ;;  %v334_v55 = vmul.f32 0.2, %v332_v54  ;;  %4350 = vmatpush3.msra.mxu0 %v583_v26  ;;  %4388 = vmatprep.subr.mxu1 %v874_v27  ;;  %v5097_v37 = vld [vmem:[#allocation2 + $0x20] sm:$0xff] }
  0xf4   :  { %vm333_vm8 = vcmp.ge.f32.partialorder %v332_v54, 0.0  ;;  %v5046_v61 = vsel %vm247_vm9, %v246_v57, %v248_v59  ;;  %v497_v4 = vadd.f32 %v4988_v20, %v5053_v2  ;;  %v444_v5 = vmul.f32 0.2, %v442_v0  ;;  %4351 = vmatprep.subr.mxu0 %v582_v28  ;;  %4389 = vmatpush3.msra.mxu1 %v874_v27 }
  0xf5   :  { %317 = vrot.lane.b32.xlu1 %v315_v45, %s4871_s30  ;;  %351 = vrot.lane.b32.xlu0 %v349_v46, %s4876_s18  ;;  %v5032_v52 = vsel %vm422_vm7, %v421_v43, %v423_v49  ;;  %v5040_v56 = vsel %vm333_vm8, %v332_v54, %v334_v55  ;;  %v250_v62 = vmul.f32 %v5046_v61, %v5046_v61  ;;  %vm443_vm10 = vcmp.ge.f32.partialorder %v442_v0, 0.0 }
  0xf6   :  { %v425_v53 = vmul.f32 %v5032_v52, %v5032_v52  ;;  %v336_v58 = vmul.f32 %v5040_v56, %v5040_v56  ;;  %v518_v6 = vadd.f32 %v4992_v22, %v5053_v2  ;;  %v539_v7 = vadd.f32 %v4990_v21, %v5053_v2  ;;  %4352 = vmatpush3.msra.mxu0 %v582_v28 }
  0xf7   :  { %v251_v63 = vsel %vm56_vm0, %v250_v62, 0.0  ;;  %v5063_v8 = vsel %vm443_vm10, %v442_v0, %v444_v5  ;;  %v465_v9 = vmul.f32 0.2, %v463_v3  ;;  %v499_v11 = vmul.f32 0.2, %v497_v4  ;;  %4353 = vmatprep.mubr.msk.f32.mxu0 %vm56_vm0, %v560_v29  ;;  %4390 = vmatprep.subr.mxu1 %v873_v30 }
  0xf8   :  { %v337_v60 = vsel %vm56_vm0, %v336_v58, 0.0  ;;  %vm464_vm11 = vcmp.ge.f32.partialorder %v463_v3, 0.0  ;;  %vm498_vm12 = vcmp.ge.f32.partialorder %v497_v4, 0.0  ;;  %v446_v12 = vmul.f32 %v5063_v8, %v5063_v8  ;;  %4354 = vmatmul.mubr.msk.f32.vlgmr.msra.gmra.mxu0 %vm56_vm0, %v561_v31  ;;  %4391 = vmatpush3.msra.mxu1 %v873_v30 }
  0xf9   :  { %372 = vrot.lane.b32.xlu1 %v370_v50, %s4877_s0  ;;  %393 = vrot.lane.b32.xlu0 %v391_v51, %s4871_s30  ;;  %v5067_v13 = vsel %vm464_vm11, %v463_v3, %v465_v9  ;;  %v5069_v14 = vsel %vm498_vm12, %v497_v4, %v499_v11  ;;  %v520_v15 = vmul.f32 0.2, %v518_v6  ;;  %v541_v16 = vmul.f32 0.2, %v539_v7 }
  0xfa   :  { %vm519_vm13 = vcmp.ge.f32.partialorder %v518_v6, 0.0  ;;  %vm540_vm14 = vcmp.ge.f32.partialorder %v539_v7, 0.0  ;;  %v467_v17 = vmul.f32 %v5067_v13, %v5067_v13  ;;  %v501_v18 = vmul.f32 %v5069_v14, %v5069_v14  ;;  %4394 = vmatprep.mubr.msk.f32.mxu1 %vm56_vm0, %v561_v31  ;;  %4392 = vmatprep.subr.mxu1 %v872_v32 }
  0xfb   :  { %v5076_v19 = vsel %vm519_vm13, %v518_v6, %v520_v15  ;;  %v5078_v20 = vsel %vm540_vm14, %v539_v7, %v541_v16  ;;  %4356 = vmatprep.mubr.msk.f32.mxu0 %vm56_vm0, %v5089_v33  ;;  %4393 = vmatpush3.msra.mxu1 %v872_v32  ;;  %v408_v43 = vadd.f32 %v4974_v10, %v5008_v39 }
  0xfc   :  { %v522_v21 = vmul.f32 %v5076_v19, %v5076_v19  ;;  %v543_v22 = vmul.f32 %v5078_v20, %v5078_v20  ;;  %4395 = vmatmul.mubr.msk.f32.vlgmr.msra.gmra.mxu1 %vm56_vm0, %v5089_v33  ;;  %4357 = vmatmul.mubr.msk.f32.gmra.mxu0 %vm56_vm0, %v5093_v34 }
  0xfd   :  { %427 = vrot.lane.b32.xlu1 %v425_v53, %s4876_s18  ;;  %4397 = vmatprep.mubr.msk.f32.mxu1 %vm56_vm0, %v5093_v34  ;;  %v410_v44 = vmul.f32 0.2, %v408_v43  ;;  %vm409_vm15 = vcmp.ge.f32.partialorder %v408_v43, 0.0 }
  0xfe   :  { %4359 = vmatprep.mubr.msk.f32.mxu0 %vm56_vm0, %v5097_v37 }
  0xff   :  { %v5125_v51 = vsel %vm409_vm15, %v408_v43, %v410_v44 }
 0x100   :  { %4398 = vmatmul.mubr.msk.f32.gmra.mxu1 %vm56_vm0, %v5097_v37  ;;  %4360 = vmatmul.mubr.msk.f32.gmra.mxu0 %vm56_vm0, %v5107_v38  ;;  %v412_v39 = vmul.f32 %v5125_v51, %v5125_v51 }
 0x101   :  { %4400 = vmatprep.mubr.msk.f32.mxu1 %vm56_vm0, %v5107_v38  ;;  %4362 = vmatprep.mubr.msk.f32.mxu0 %vm56_vm0, %v5109_v42 }
 0x102   :  { %v413_v62 = vsel %vm56_vm0, %v412_v39, 0.0 }
 0x104   :  { %4401 = vmatmul.mubr.msk.f32.gmra.mxu1 %vm56_vm0, %v5109_v42 }
 0x118   :  { %338 = vadd.xlane.f32.xlu0 %v337_v60 }
 0x121   :  { %252 = vadd.xlane.f32.xlu1 %v251_v63 }
 0x12e   :  { %448 = vrot.lane.b32.xlu0 %v446_v12, %s4877_s0 }
 0x132   :  { %469 = vrot.lane.b32.xlu0 %v467_v17, %s4871_s30  ;;  %503 = vrot.lane.b32.xlu1 %v501_v18, %s4876_s18 }
 0x136   :  { %524 = vrot.lane.b32.xlu0 %v522_v21, %s4877_s0  ;;  %545 = vrot.lane.b32.xlu1 %v543_v22, %s4871_s30 }
 0x163   :  { %v294_v45 = vpop.permute.xlu0 %293  ;;  %v270_v46 = vpop.permute.xlu1 %269 }
 0x164   :  { %v296_v49 = vsel %vm56_vm0, %v294_v45, 0.0  ;;  %v272_v50 = vsel %vm56_vm0, %v270_v46, 0.0 }
 0x165   :  { %297 = vadd.xlane.f32.xlu0 %v296_v49  ;;  %273 = vadd.xlane.f32.xlu1 %v272_v50 }
 0x167   :  { %v318_v53 = vpop.permute.xlu1 %317  ;;  %v352_v54 = vpop.permute.xlu0 %351 }
 0x168   :  { %v354_v55 = vsel %vm56_vm0, %v352_v54, 0.0  ;;  %v320_v57 = vsel %vm56_vm0, %v318_v53, 0.0 }
 0x169   :  { %355 = vadd.xlane.f32.xlu0 %v354_v55  ;;  %321 = vadd.xlane.f32.xlu1 %v320_v57 }
 0x16b   :  { %v373_v58 = vpop.permute.xlu1 %372  ;;  %v394_v59 = vpop.permute.xlu0 %393 }
 0x16c   :  { %v396_v60 = vsel %vm56_vm0, %v394_v59, 0.0  ;;  %v375_v63 = vsel %vm56_vm0, %v373_v58, 0.0 }
 0x16d   :  { %397 = vadd.xlane.f32.xlu0 %v396_v60  ;;  %414 = vadd.xlane.f32.xlu1 %v413_v62 }
 0x16f   :  { %v428_v0 = vpop.permute.xlu1 %427 }
 0x170   :  { %v430_v3 = vsel %vm56_vm0, %v428_v0, 0.0 }
 0x171   :  { %376 = vadd.xlane.f32.xlu1 %v375_v63 }
 0x175   :  { %431 = vadd.xlane.f32.xlu1 %v430_v3 }
 0x1a1   :  { %v339_v4 = vpop.xlane.xlu0 %338 }
 0x1a2   :  { %v340_v5 = vmul.f32 0.03125, %v339_v4 }
 0x1a4   :  { %v341_v6 = vadd.f32 1e-08, %v340_v5 }
 0x1a5   :  { %v449_v7 = vpop.permute.xlu0 %448 }
 0x1a6   :  { %4761 = vrsqrt.f32 %v341_v6  ;;  %v451_v9 = vsel %vm56_vm0, %v449_v7, 0.0 }
 0x1a7   :  { %452 = vadd.xlane.f32.xlu0 %v451_v9 }
 0x1a9   :  { %v470_v11 = vpop.permute.xlu0 %469 }
 0x1aa   :  { %v253_v12 = vpop.xlane.xlu1 %252  ;;  %v472_v15 = vsel %vm56_vm0, %v470_v11, 0.0 }
 0x1ab   :  { %v255_v16 = vmul.f32 0.03125, %v253_v12  ;;  %473 = vadd.xlane.f32.xlu0 %v472_v15 }
 0x1ad   :  { %v256_v17 = vadd.f32 1e-08, %v255_v16  ;;  %v525_v26 = vpop.permute.xlu0 %524 }
 0x1ae   :  { %v504_v25 = vpop.permute.xlu1 %503  ;;  %v527_v7 = vsel %vm56_vm0, %v525_v26, 0.0 }
 0x1af   :  { %4763 = vrsqrt.f32 %v256_v17  ;;  %v506_v15 = vsel %vm56_vm0, %v504_v25, 0.0 }
 0x1b2   :  { %v5147_v27 = vpop.permute.xlu1 %545 }
 0x1b3   :  { %v4762_v18 = vpop.eup %4761 }
 0x1b4   :  { %v343_v21 = vmul.f32 %v4762_v18, %v5040_v56 }
 0x1b6   :  { %344 = vst.msk [vmem:[#allocation2 + $0x68] sm:$0xff] %vm56_vm0, %v343_v21 }
 0x1b8   :  { %v4355_v57 = vpop.f32.mrf.mxu0 }
 0x1b9   :  { %828 = vst.msk [vmem:[#allocation3 + $0x8] sm:$0xff] %vm56_vm0, %v4355_v57  ;;  %v1206_v57 = vld [vmem:[#allocation7 + $0x40] sm:$0xff] }
 0x1ba   :  { %v718_v59 = vpop.f32.mrf.mxu0 }
 0x1bb   :  { %827 = vst.msk [vmem:[#allocation3] sm:$0xff] %vm56_vm0, %v718_v59  ;;  %v1541_v59 = vld [vmem:[#allocation7 + $0x68] sm:$0xff] }
 0x1bc   :  { %v4764_v22 = vpop.eup %4763  ;;  %v4358_v60 = vpop.f32.mrf.mxu0 }
 0x1bd   :  { %v258_v23 = vmul.f32 %v4764_v22, %v5046_v61  ;;  %830 = vst.msk [vmem:[#allocation3 + $0x18] sm:$0xff] %vm56_vm0, %v4358_v60 }
 0x1bf   :  { %259 = vst.msk [vmem:[#allocation2 + $0x38] sm:$0xff] %vm56_vm0, %v258_v23 }
 0x1c6   :  { %v5141_v24 = vld [vmem:[#allocation2 + $0x38] sm:$0xff] }
 0x1c7   :  { %4363 = vmatmul.mubr.msk.f32.gmra.mxu0 %vm56_vm0, %v5141_v24  ;;  %4403 = vmatprep.mubr.msk.f32.mxu1 %vm56_vm0, %v5141_v24 }
 0x1ee   :  { %v298_v56 = vpop.xlane.xlu0 %297  ;;  %v274_v28 = vpop.xlane.xlu1 %273 }
 0x1ef   :  { %v299_v29 = vmul.f32 0.03125, %v298_v56  ;;  %v275_v30 = vmul.f32 0.03125, %v274_v28 }
 0x1f1   :  { %v300_v31 = vadd.f32 1e-08, %v299_v29  ;;  %v276_v61 = vadd.f32 1e-08, %v275_v30 }
 0x1f2   :  { %v322_v32 = vpop.xlane.xlu1 %321  ;;  %v356_v0 = vpop.xlane.xlu0 %355 }
 0x1f3   :  { %4765 = vrsqrt.f32 %v300_v31  ;;  %v323_v43 = vmul.f32 0.03125, %v322_v32  ;;  %v357_v3 = vmul.f32 0.03125, %v356_v0 }
 0x1f4   :  { %4767 = vrsqrt.f32 %v276_v61 }
 0x1f5   :  { %v324_v44 = vadd.f32 1e-08, %v323_v43  ;;  %v358_v9 = vadd.f32 1e-08, %v357_v3  ;;  %v5219_v3 = vld [vmem:[#allocation2 + $0x68] sm:$0xff] }
 0x1f6   :  { %v415_v45 = vpop.xlane.xlu1 %414  ;;  %v398_v4 = vpop.xlane.xlu0 %397 }
 0x1f7   :  { %v416_v46 = vmul.f32 0.03125, %v415_v45  ;;  %4769 = vrsqrt.f32 %v324_v44  ;;  %v399_v6 = vmul.f32 0.03125, %v398_v4  ;;  %v484_v45 = vadd.f32 %v4974_v10, %v5053_v2  ;;  %v1543_v2 = vld [vmem:[#allocation7 + $0x78] sm:$0xff] }
 0x1f8   :  { %4468 = vmatprep.subr.mxu1 %v1543_v2 }
 0x1f9   :  { %v417_v49 = vadd.f32 1e-08, %v416_v46  ;;  %v400_v11 = vadd.f32 1e-08, %v399_v6  ;;  %v486_v46 = vmul.f32 0.2, %v484_v45  ;;  %4469 = vmatpush3.msra.mxu1 %v1543_v2 }
 0x1fa   :  { %v377_v5 = vpop.xlane.xlu1 %376  ;;  %vm485_vm1 = vcmp.ge.f32.partialorder %v484_v45, 0.0 }
 0x1fb   :  { %4771 = vrsqrt.f32 %v417_v49  ;;  %v1209_v49 = vld [vmem:[#allocation7 + $0x58] sm:$0xff] }
 0x1fc   :  { %4773 = vrsqrt.f32 %v358_v9  ;;  %4427 = vmatprep.subr.mxu0 %v1209_v49  ;;  %v4396_v9 = vpop.f32.mrf.mxu1 }
 0x1fd   :  { %4775 = vrsqrt.f32 %v400_v11  ;;  %4428 = vmatpush3.msra.mxu0 %v1209_v49  ;;  %v5251_v49 = vld [vmem:[#allocation2 + $0x88] sm:$0xff] }
 0x1fe   :  { %v432_v43 = vpop.xlane.xlu1 %431 }
 0x1ff   :  { %v433_v44 = vmul.f32 0.03125, %v432_v43 }
 0x200   :  { %v4766_v50 = vpop.eup %4765 }
 0x201   :  { %v4768_v53 = vpop.eup %4767  ;;  %v302_v54 = vmul.f32 %v4766_v50, %v5000_v35  ;;  %v1208_v50 = vld [vmem:[#allocation7 + $0x50] sm:$0xff] }
 0x202   :  { %v278_v55 = vmul.f32 %v4768_v53, %v5002_v36  ;;  %v728_v36 = vpop.f32.mrf.mxu0  ;;  %4429 = vmatprep.subr.mxu0 %v1208_v50 }
 0x203   :  { %304 = vrot.lane.b32.xlu1 %v302_v54, %s4877_s0  ;;  %829 = vst.msk [vmem:[#allocation3 + $0x10] sm:$0xff] %vm56_vm0, %v728_v36  ;;  %4430 = vmatpush3.msra.mxu0 %v1208_v50  ;;  %v1207_v54 = vld [vmem:[#allocation7 + $0x48] sm:$0xff] }
 0x204   :  { %280 = vrot.lane.b32.xlu0 %v278_v55, %s4876_s18  ;;  %v4770_v39 = vpop.eup %4769  ;;  %v4361_v63 = vpop.f32.mrf.mxu0  ;;  %v1542_v55 = vld [vmem:[#allocation7 + $0x70] sm:$0xff]  ;;  %4431 = vmatprep.subr.mxu0 %v1207_v54  ;;  %v5201_v36 = vld [vmem:[#allocation2 + $0x58] sm:$0xff] }
 0x205   :  { %v326_v58 = vmul.f32 %v4770_v39, %v5010_v40  ;;  %832 = vst.msk [vmem:[#allocation3 + $0x28] sm:$0xff] %vm56_vm0, %v4361_v63  ;;  %4432 = vmatpush3.msra.mxu0 %v1207_v54  ;;  %4470 = vmatprep.subr.mxu1 %v1542_v55 }
 0x206   :  { %v738_v40 = vpop.f32.mrf.mxu0  ;;  %4433 = vmatprep.subr.mxu0 %v1206_v57  ;;  %4471 = vmatpush3.msra.mxu1 %v1542_v55 }
 0x207   :  { %328 = vrot.lane.b32.xlu1 %v326_v58, %s4871_s30  ;;  %831 = vst.msk [vmem:[#allocation3 + $0x20] sm:$0xff] %vm56_vm0, %v738_v40  ;;  %4434 = vmatpush3.msra.mxu0 %v1206_v57  ;;  %v5205_v40 = vld [vmem:[#allocation2 + $0x60] sm:$0xff] }
 0x208   :  { %v4772_v62 = vpop.eup %4771  ;;  %4472 = vmatprep.subr.mxu1 %v1541_v59 }
 0x209   :  { %v419_v35 = vmul.f32 %v4772_v62, %v5125_v51  ;;  %v378_v51 = vmul.f32 0.03125, %v377_v5  ;;  %v4774_v21 = vpop.eup %4773  ;;  %4473 = vmatpush3.msra.mxu1 %v1541_v59  ;;  %v5227_v5 = vld [vmem:[#allocation7 + $0x98] sm:$0xff] }
 0x20a   :  { %v4776_v56 = vpop.eup %4775  ;;  %v360_v28 = vmul.f32 %v4774_v21, %v5012_v41  ;;  %4509 = vmatprep.subr.mxu0 %v5227_v5  ;;  %v1120_v21 = vld [vmem:[#allocation3 + $0x18] sm:$0xff] }
 0x20b   :  { %420 = vst.msk [vmem:[#allocation2 + $0x98] sm:$0xff] %vm56_vm0, %v419_v35  ;;  %v379_v12 = vadd.f32 1e-08, %v378_v51  ;;  %v402_v30 = vmul.f32 %v4776_v56, %v5024_v48  ;;  %v548_v48 = vsel %vm56_vm0, %v5147_v27, 0.0  ;;  %v1540_v35 = vld [vmem:[#allocation7 + $0x60] sm:$0xff]  ;;  %v1118_v51 = vld [vmem:[#allocation3 + $0x8] sm:$0xff] }
 0x20c   :  { %4474 = vmatprep.subr.mxu1 %v1540_v35  ;;  %v1140_v11 = vadd.f32 %v4396_v9, %v1118_v51 }
 0x20d   :  { %4777 = vrsqrt.f32 %v379_v12  ;;  %4475 = vmatpush3.msra.mxu1 %v1540_v35 }
 0x20e   :  { %1162 = vst.msk [vmem:[#allocation3 + $0x8] sm:$0xff] %vm56_vm0, %v1140_v11  ;;  %v1875_v11 = vld [vmem:[#allocation7 + $0x88] sm:$0xff] }
 0x212   :  { %v5271_v2 = vld [vmem:[#allocation2 + $0x98] sm:$0xff] }
 0x21a   :  { %v4778_v29 = vpop.eup %4777 }
 0x21b   :  { %v381_v25 = vmul.f32 %v4778_v29, %v5022_v47  ;;  %v434_v47 = vadd.f32 1e-08, %v433_v44 }
 0x223   :  { %528 = vadd.xlane.f32.xlu0 %v527_v7 }
 0x22b   :  { %507 = vadd.xlane.f32.xlu1 %v506_v15  ;;  %v1008_v15 = vpop.f32.mrf.mxu1 }
 0x230   :  { %v453_v16 = vpop.xlane.xlu0 %452 }
 0x231   :  { %v454_v17 = vmul.f32 0.03125, %v453_v16  ;;  %v1117_v16 = vld [vmem:[#allocation3] sm:$0xff] }
 0x233   :  { %v455_v18 = vadd.f32 1e-08, %v454_v17 }
 0x234   :  { %v474_v22 = vpop.xlane.xlu0 %473 }
 0x235   :  { %4779 = vrsqrt.f32 %v455_v18  ;;  %v475_v23 = vmul.f32 0.03125, %v474_v22  ;;  %v1139_v18 = vadd.f32 %v1117_v16, %v1008_v15  ;;  %v5344_v15 = vld [vmem:[#allocation7 + $0xf8] sm:$0xff]  ;;  %v5380_v16 = vld [vmem:[#allocation2 + $0xc0] sm:$0xff] }
 0x237   :  { %v476_v26 = vadd.f32 1e-08, %v475_v23  ;;  %v4399_v23 = vpop.f32.mrf.mxu1  ;;  %1161 = vst.msk [vmem:[#allocation3] sm:$0xff] %vm56_vm0, %v1139_v18  ;;  %v2544_v18 = vld [vmem:[#allocation7 + $0xd0] sm:$0xff] }
 0x239   :  { %4781 = vrsqrt.f32 %v476_v26  ;;  %362 = vrot.lane.b32.xlu0 %v360_v28, %s4876_s18  ;;  %v1142_v26 = vadd.f32 %v4399_v23, %v1120_v21  ;;  %v2543_v21 = vld [vmem:[#allocation7 + $0xc8] sm:$0xff] }
 0x23a   :  { %4783 = vrsqrt.f32 %v434_v47 }
 0x23b   :  { %1164 = vst.msk [vmem:[#allocation3 + $0x18] sm:$0xff] %vm56_vm0, %v1142_v26 }
 0x23c   :  { %404 = vrot.lane.b32.xlu1 %v402_v30, %s4871_s30 }
 0x23d   :  { %383 = vrot.lane.b32.xlu0 %v381_v25, %s4877_s0  ;;  %v1018_v25 = vpop.f32.mrf.mxu1 }
 0x23f   :  { %v4402_v43 = vpop.f32.mrf.mxu1 }
 0x242   :  { %v4780_v31 = vpop.eup %4779 }
 0x243   :  { %v457_v61 = vmul.f32 %v4780_v31, %v5063_v8  ;;  %v5179_v8 = vsel %vm485_vm1, %v484_v45, %v486_v46  ;;  %v1119_v31 = vld [vmem:[#allocation3 + $0x10] sm:$0xff]  ;;  %v1028_v45 = vpop.f32.mrf.mxu1  ;;  %v1121_v46 = vld [vmem:[#allocation3 + $0x20] sm:$0xff] }
 0x245   :  { %459 = vrot.lane.b32.xlu1 %v457_v61, %s4877_s0  ;;  %v1122_v61 = vld [vmem:[#allocation3 + $0x28] sm:$0xff] }
 0x246   :  { %v4782_v32 = vpop.eup %4781  ;;  %v1144_v44 = vadd.f32 %v4402_v43, %v1122_v61 }
 0x247   :  { %v478_v41 = vmul.f32 %v4782_v32, %v5067_v13  ;;  %v488_v13 = vmul.f32 %v5179_v8, %v5179_v8  ;;  %v4784_v27 = vpop.eup %4783 }
 0x248   :  { %v436_v10 = vmul.f32 %v4784_v27, %v5032_v52  ;;  %1166 = vst.msk [vmem:[#allocation3 + $0x28] sm:$0xff] %vm56_vm0, %v1144_v44  ;;  %v5256_v27 = vld [vmem:[#allocation2 + $0x90] sm:$0xff] }
 0x249   :  { %480 = vrot.lane.b32.xlu1 %v478_v41, %s4871_s30  ;;  %v489_v53 = vsel %vm56_vm0, %v488_v13, 0.0  ;;  %v1141_v41 = vadd.f32 %v1119_v31, %v1018_v25  ;;  %v1143_v13 = vadd.f32 %v1121_v46, %v1028_v45 }
 0x24b   :  { %1163 = vst.msk [vmem:[#allocation3 + $0x10] sm:$0xff] %vm56_vm0, %v1141_v41  ;;  %1165 = vst.msk [vmem:[#allocation3 + $0x20] sm:$0xff] %vm56_vm0, %v1143_v13 }
 0x25c   :  { %549 = vadd.xlane.f32.xlu0 %v548_v48 }
 0x26d   :  { %490 = vadd.xlane.f32.xlu1 %v489_v53 }
 0x272   :  { %438 = vrot.lane.b32.xlu0 %v436_v10, %s4876_s18  ;;  %v2211_v10 = vld [vmem:[#allocation7 + $0xb8] sm:$0xff] }
 0x273   :  { %4550 = vmatprep.subr.mxu1 %v2211_v10 }
 0x275   :  { %v305_v39 = vpop.permute.xlu1 %304 }
 0x276   :  { %v281_v58 = vpop.permute.xlu0 %280  ;;  %307 = vst.msk [vmem:[#allocation2 + $0x48] sm:$0xff] %vm56_vm0, %v305_v39 }
 0x277   :  { %283 = vst.msk [vmem:[#allocation2 + $0x40] sm:$0xff] %vm56_vm0, %v281_v58 }
 0x279   :  { %v329_v52 = vpop.permute.xlu1 %328 }
 0x27a   :  { %331 = vst.msk [vmem:[#allocation2 + $0x50] sm:$0xff] %vm56_vm0, %v329_v52 }
 0x27d   :  { %v5189_v60 = vld [vmem:[#allocation2 + $0x48] sm:$0xff] }
 0x27e   :  { %v5191_v62 = vld [vmem:[#allocation2 + $0x40] sm:$0xff] }
 0x27f   :  { %4365 = vmatprep.mubr.msk.f32.mxu0 %vm56_vm0, %v5191_v62  ;;  %4404 = vmatmul.mubr.msk.f32.gmra.mxu1 %vm56_vm0, %v5191_v62 }
 0x280   :  { %4366 = vmatmul.mubr.msk.f32.gmra.mxu0 %vm56_vm0, %v5189_v60  ;;  %4406 = vmatprep.mubr.msk.f32.mxu1 %vm56_vm0, %v5189_v60 }
 0x281   :  { %v5203_v63 = vld [vmem:[#allocation2 + $0x50] sm:$0xff] }
 0x282   :  { %4368 = vmatprep.mubr.msk.f32.mxu0 %vm56_vm0, %v5203_v63 }
 0x283   :  { %4407 = vmatmul.mubr.msk.f32.gmra.mxu1 %vm56_vm0, %v5203_v63 }
 0x284   :  { %4369 = vmatmul.mubr.msk.f32.gmra.mxu0 %vm56_vm0, %v5201_v36  ;;  %4409 = vmatprep.mubr.msk.f32.mxu1 %vm56_vm0, %v5201_v36 }
 0x285   :  { %4371 = vmatprep.mubr.msk.f32.mxu0 %vm56_vm0, %v5205_v40 }
 0x287   :  { %4410 = vmatmul.mubr.msk.f32.gmra.mxu1 %vm56_vm0, %v5205_v40  ;;  %v4364_v0 = vpop.f32.mrf.mxu0 }
 0x288   :  { %834 = vst.msk [vmem:[#allocation3 + $0x38] sm:$0xff] %vm56_vm0, %v4364_v0  ;;  %4372 = vmatmul.mubr.msk.f32.gmra.mxu0 %vm56_vm0, %v5219_v3  ;;  %4412 = vmatprep.mubr.msk.f32.mxu1 %vm56_vm0, %v5219_v3 }
 0x289   :  { %v748_v4 = vpop.f32.mrf.mxu0 }
 0x28a   :  { %833 = vst.msk [vmem:[#allocation3 + $0x30] sm:$0xff] %vm56_vm0, %v748_v4 }
 0x28f   :  { %v1124_v26 = vld [vmem:[#allocation3 + $0x38] sm:$0xff] }
 0x291   :  { %v1123_v61 = vld [vmem:[#allocation3 + $0x30] sm:$0xff] }
 0x2ac   :  { %v529_v6 = vpop.xlane.xlu0 %528 }
 0x2ad   :  { %v530_v12 = vmul.f32 0.03125, %v529_v6  ;;  %v1876_v6 = vld [vmem:[#allocation7 + $0x90] sm:$0xff] }
 0x2af   :  { %v531_v28 = vadd.f32 1e-08, %v530_v12 }
 0x2b0   :  { %v363_v7 = vpop.permute.xlu0 %362 }
 0x2b1   :  { %365 = vst.msk [vmem:[#allocation2 + $0x70] sm:$0xff] %vm56_vm0, %v363_v7 }
 0x2b4   :  { %v384_v17 = vpop.permute.xlu0 %383  ;;  %v508_v22 = vpop.xlane.xlu1 %507 }
 0x2b5   :  { %386 = vst.msk [vmem:[#allocation2 + $0x78] sm:$0xff] %vm56_vm0, %v384_v17  ;;  %v509_v56 = vmul.f32 0.03125, %v508_v22  ;;  %v2542_v22 = vld [vmem:[#allocation7 + $0xc0] sm:$0xff] }
 0x2b7   :  { %v510_v29 = vadd.f32 1e-08, %v509_v56 }
 0x2b8   :  { %v5234_v30 = vld [vmem:[#allocation2 + $0x70] sm:$0xff]  ;;  %v405_v32 = vpop.permute.xlu1 %404 }
 0x2b9   :  { %4374 = vmatprep.mubr.msk.f32.mxu0 %vm56_vm0, %v5234_v30  ;;  %4413 = vmatmul.mubr.msk.f32.gmra.mxu1 %vm56_vm0, %v5234_v30  ;;  %4785 = vrsqrt.f32 %v510_v29  ;;  %407 = vst.msk [vmem:[#allocation2 + $0x80] sm:$0xff] %vm56_vm0, %v405_v32 }
 0x2ba   :  { %4787 = vrsqrt.f32 %v531_v28 }
 0x2bc   :  { %v5243_v48 = vld [vmem:[#allocation2 + $0x78] sm:$0xff]  ;;  %v460_v47 = vpop.permute.xlu1 %459 }
 0x2bd   :  { %4375 = vmatmul.mubr.msk.f32.gmra.mxu0 %vm56_vm0, %v5243_v48  ;;  %4415 = vmatprep.mubr.msk.f32.mxu1 %vm56_vm0, %v5243_v48  ;;  %462 = vst.msk [vmem:[#allocation2 + $0xa8] sm:$0xff] %vm56_vm0, %v460_v47 }
 0x2c0   :  { %v481_v50 = vpop.permute.xlu1 %480  ;;  %v5254_v53 = vld [vmem:[#allocation2 + $0x80] sm:$0xff] }
 0x2c1   :  { %483 = vst.msk [vmem:[#allocation2 + $0xb0] sm:$0xff] %vm56_vm0, %v481_v50  ;;  %4377 = vmatprep.mubr.msk.f32.mxu0 %vm56_vm0, %v5254_v53  ;;  %4416 = vmatmul.mubr.msk.f32.gmra.mxu1 %vm56_vm0, %v5254_v53 }
 0x2c2   :  { %4378 = vmatmul.mubr.msk.f32.gmra.mxu0 %vm56_vm0, %v5251_v49  ;;  %4418 = vmatprep.mubr.msk.f32.mxu1 %vm56_vm0, %v5251_v49 }
 0x2c3   :  { %4380 = vmatprep.mubr.msk.f32.mxu0 %vm56_vm0, %v5256_v27 }
 0x2c5   :  { %4419 = vmatmul.mubr.msk.f32.gmra.mxu1 %vm56_vm0, %v5256_v27 }
 0x2c6   :  { %v4786_v54 = vpop.eup %4785  ;;  %4381 = vmatmul.mubr.msk.f32.gmra.mxu0 %vm56_vm0, %v5271_v2  ;;  %4421 = vmatprep.mubr.msk.f32.mxu1 %vm56_vm0, %v5271_v2 }
 0x2c7   :  { %v512_v55 = vmul.f32 %v4786_v54, %v5069_v14  ;;  %v4788_v57 = vpop.eup %4787  ;;  %v5288_v14 = vld [vmem:[#allocation2 + $0xa8] sm:$0xff] }
 0x2c8   :  { %v533_v39 = vmul.f32 %v4788_v57, %v5076_v19  ;;  %v5296_v19 = vld [vmem:[#allocation2 + $0xb0] sm:$0xff] }
 0x2c9   :  { %514 = vrot.lane.b32.xlu0 %v512_v55, %s4876_s18 }
 0x2cd   :  { %535 = vrot.lane.b32.xlu0 %v533_v39, %s4877_s0 }
 0x2e5   :  { %v550_v58 = vpop.xlane.xlu0 %549 }
 0x2e6   :  { %v551_v59 = vmul.f32 0.03125, %v550_v58 }
 0x2e8   :  { %v552_v52 = vadd.f32 1e-08, %v551_v59  ;;  %v2878_v59 = vld [vmem:[#allocation7 + $0xf0] sm:$0xff] }
 0x2e9   :  { %v439_v35 = vpop.permute.xlu0 %438 }
 0x2ea   :  { %4789 = vrsqrt.f32 %v552_v52  ;;  %441 = vst.msk [vmem:[#allocation2 + $0xa0] sm:$0xff] %vm56_vm0, %v439_v35 }
 0x2f1   :  { %v5282_v0 = vld [vmem:[#allocation2 + $0xa0] sm:$0xff] }
 0x2f2   :  { %4383 = vmatprep.mubr.msk.f32.mxu0 %vm56_vm0, %v5282_v0  ;;  %4422 = vmatmul.mubr.msk.f32.gmra.mxu1 %vm56_vm0, %v5282_v0 }
 0x2f3   :  { %4384 = vmatmul.mubr.msk.f32.gmra.mxu0 %vm56_vm0, %v5288_v14  ;;  %4424 = vmatprep.mubr.msk.f32.mxu1 %vm56_vm0, %v5288_v14 }
 0x2f4   :  { %4435 = vmatprep.mubr.msk.f32.mxu0 %vm56_vm0, %v5089_v33 }
 0x2f6   :  { %4425 = vmatmul.mubr.msk.f32.gmra.mxu1 %vm56_vm0, %v5296_v19  ;;  %v491_v4 = vpop.xlane.xlu1 %490 }
 0x2f7   :  { %v4790_v7 = vpop.eup %4789  ;;  %v492_v9 = vmul.f32 0.03125, %v491_v4  ;;  %4436 = vmatmul.mubr.msk.f32.vlgmr.msra.gmra.mxu0 %vm56_vm0, %v5093_v34  ;;  %4476 = vmatprep.mubr.msk.f32.mxu1 %vm56_vm0, %v5109_v42  ;;  %v2210_v34 = vld [vmem:[#allocation7 + $0xb0] sm:$0xff] }
 0x2f8   :  { %v554_v51 = vmul.f32 %v4790_v7, %v5078_v20  ;;  %4438 = vmatprep.mubr.msk.f32.mxu0 %vm56_vm0, %v5097_v37  ;;  %4510 = vmatpush3.msra.mxu0 %v5227_v5  ;;  %v1874_v20 = vld [vmem:[#allocation7 + $0x80] sm:$0xff]  ;;  %v2545_v37 = vld [vmem:[#allocation7 + $0xd8] sm:$0xff] }
 0x2f9   :  { %v493_v33 = vadd.f32 1e-08, %v492_v9  ;;  %4511 = vmatprep.subr.mxu0 %v1876_v6  ;;  %v2876_v9 = vld [vmem:[#allocation7 + $0xe0] sm:$0xff] }
 0x2fa   :  { %556 = vrot.lane.b32.xlu0 %v554_v51, %s4871_s30  ;;  %4477 = vmatmul.mubr.msk.f32.vlgmr.msra.gmra.mxu1 %vm56_vm0, %v5141_v24  ;;  %v3212_v51 = vld [vmem:[#allocation7 + $0x110] sm:$0xff] }
 0x2fb   :  { %4791 = vrsqrt.f32 %v493_v33  ;;  %4439 = vmatmul.mubr.msk.f32.gmra.mxu0 %vm56_vm0, %v5107_v38  ;;  %4479 = vmatprep.mubr.msk.f32.mxu1 %vm56_vm0, %v5191_v62  ;;  %v2209_v38 = vld [vmem:[#allocation7 + $0xa8] sm:$0xff] }
 0x2fc   :  { %4441 = vmatprep.mubr.msk.f32.mxu0 %vm56_vm0, %v5109_v42  ;;  %4512 = vmatpush3.msra.mxu0 %v1876_v6  ;;  %v2208_v42 = vld [vmem:[#allocation7 + $0xa0] sm:$0xff] }
 0x2fd   :  { %4513 = vmatprep.subr.mxu0 %v1875_v11  ;;  %4551 = vmatpush3.msra.mxu1 %v2211_v10 }
 0x2fe   :  { %4480 = vmatmul.mubr.msk.f32.gmra.mxu1 %vm56_vm0, %v5189_v60  ;;  %4514 = vmatpush3.msra.mxu0 %v1875_v11 }
 0x2ff   :  { %4442 = vmatmul.mubr.msk.f32.gmra.mxu0 %vm56_vm0, %v5141_v24  ;;  %4482 = vmatprep.mubr.msk.f32.mxu1 %vm56_vm0, %v5203_v63 }
 0x300   :  { %4444 = vmatprep.mubr.msk.f32.mxu0 %vm56_vm0, %v5191_v62  ;;  %4515 = vmatprep.subr.mxu0 %v1874_v20 }
 0x301   :  { %4516 = vmatpush3.msra.mxu0 %v1874_v20  ;;  %4552 = vmatprep.subr.mxu1 %v2210_v34 }
 0x302   :  { %4483 = vmatmul.mubr.msk.f32.gmra.mxu1 %vm56_vm0, %v5201_v36  ;;  %4591 = vmatprep.subr.mxu0 %v2545_v37 }
 0x303   :  { %4445 = vmatmul.mubr.msk.f32.gmra.mxu0 %vm56_vm0, %v5189_v60  ;;  %4485 = vmatprep.mubr.msk.f32.mxu1 %vm56_vm0, %v5205_v40 }
 0x304   :  { %4447 = vmatprep.mubr.msk.f32.mxu0 %vm56_vm0, %v5203_v63  ;;  %4553 = vmatpush3.msra.mxu1 %v2210_v34  ;;  %v3211_v34 = vld [vmem:[#allocation7 + $0x108] sm:$0xff] }
 0x305   :  { %4554 = vmatprep.subr.mxu1 %v2209_v38 }
 0x306   :  { %4486 = vmatmul.mubr.msk.f32.gmra.mxu1 %vm56_vm0, %v5219_v3 }
 0x307   :  { %4448 = vmatmul.mubr.msk.f32.gmra.mxu0 %vm56_vm0, %v5201_v36  ;;  %4488 = vmatprep.mubr.msk.f32.mxu1 %vm56_vm0, %v5234_v30 }
 0x308   :  { %v4792_v5 = vpop.eup %4791  ;;  %4450 = vmatprep.mubr.msk.f32.mxu0 %vm56_vm0, %v5205_v40  ;;  %4555 = vmatpush3.msra.mxu1 %v2209_v38 }
 0x309   :  { %v495_v12 = vmul.f32 %v4792_v5, %v5179_v8  ;;  %4556 = vmatprep.subr.mxu1 %v2208_v42  ;;  %v5376_v8 = vld [vmem:[#allocation2 + $0xb8] sm:$0xff] }
 0x30a   :  { %4489 = vmatmul.mubr.msk.f32.gmra.mxu1 %vm56_vm0, %v5243_v48 }
 0x30b   :  { %496 = vst.msk [vmem:[#allocation2 + $0xc8] sm:$0xff] %vm56_vm0, %v495_v12  ;;  %4451 = vmatmul.mubr.msk.f32.gmra.mxu0 %vm56_vm0, %v5219_v3  ;;  %4491 = vmatprep.mubr.msk.f32.mxu1 %vm56_vm0, %v5254_v53 }
 0x30c   :  { %4453 = vmatprep.mubr.msk.f32.mxu0 %vm56_vm0, %v5234_v30  ;;  %4557 = vmatpush3.msra.mxu1 %v2208_v42 }
 0x30d   :  { %4632 = vmatprep.subr.mxu1 %v5344_v15 }
 0x30e   :  { %4492 = vmatmul.mubr.msk.f32.gmra.mxu1 %vm56_vm0, %v5251_v49 }
 0x30f   :  { %4454 = vmatmul.mubr.msk.f32.gmra.mxu0 %vm56_vm0, %v5243_v48  ;;  %4494 = vmatprep.mubr.msk.f32.mxu1 %vm56_vm0, %v5256_v27 }
 0x310   :  { %4456 = vmatprep.mubr.msk.f32.mxu0 %vm56_vm0, %v5254_v53 }
 0x312   :  { %4495 = vmatmul.mubr.msk.f32.gmra.mxu1 %vm56_vm0, %v5271_v2  ;;  %v5390_v17 = vld [vmem:[#allocation2 + $0xc8] sm:$0xff] }
 0x313   :  { %4457 = vmatmul.mubr.msk.f32.gmra.mxu0 %vm56_vm0, %v5251_v49  ;;  %4497 = vmatprep.mubr.msk.f32.mxu1 %vm56_vm0, %v5282_v0 }
 0x314   :  { %4459 = vmatprep.mubr.msk.f32.mxu0 %vm56_vm0, %v5256_v27 }
 0x316   :  { %4498 = vmatmul.mubr.msk.f32.gmra.mxu1 %vm56_vm0, %v5288_v14 }
 0x317   :  { %4460 = vmatmul.mubr.msk.f32.gmra.mxu0 %vm56_vm0, %v5271_v2  ;;  %4500 = vmatprep.mubr.msk.f32.mxu1 %vm56_vm0, %v5296_v19 }
 0x318   :  { %4462 = vmatprep.mubr.msk.f32.mxu0 %vm56_vm0, %v5282_v0 }
 0x31a   :  { %4501 = vmatmul.mubr.msk.f32.gmra.mxu1 %vm56_vm0, %v5376_v8 }
 0x31b   :  { %4463 = vmatmul.mubr.msk.f32.gmra.mxu0 %vm56_vm0, %v5288_v14  ;;  %4503 = vmatprep.mubr.msk.f32.mxu1 %vm56_vm0, %v5380_v16 }
 0x31c   :  { %4465 = vmatprep.mubr.msk.f32.mxu0 %vm56_vm0, %v5296_v19 }
 0x31e   :  { %4504 = vmatmul.mubr.msk.f32.gmra.mxu1 %vm56_vm0, %v5390_v17 }
 0x31f   :  { %4466 = vmatmul.mubr.msk.f32.gmra.mxu0 %vm56_vm0, %v5376_v8 }
 0x320   :  { %4517 = vmatprep.mubr.msk.f32.mxu0 %vm56_vm0, %v5141_v24  ;;  %v5406_v24 = vld [vmem:[#allocation7 + $0x118] sm:$0xff] }
 0x323   :  { %4518 = vmatmul.mubr.msk.f32.vlgmr.msra.gmra.mxu0 %vm56_vm0, %v5191_v62 }
 0x324   :  { %4520 = vmatprep.mubr.msk.f32.mxu0 %vm56_vm0, %v5189_v60  ;;  %4592 = vmatpush3.msra.mxu0 %v2545_v37 }
 0x325   :  { %4593 = vmatprep.subr.mxu0 %v2544_v18 }
 0x326   :  { %4594 = vmatpush3.msra.mxu0 %v2544_v18 }
 0x327   :  { %4521 = vmatmul.mubr.msk.f32.gmra.mxu0 %vm56_vm0, %v5203_v63  ;;  %4595 = vmatprep.subr.mxu0 %v2543_v21 }
 0x328   :  { %4523 = vmatprep.mubr.msk.f32.mxu0 %vm56_vm0, %v5201_v36  ;;  %4596 = vmatpush3.msra.mxu0 %v2543_v21 }
 0x329   :  { %4597 = vmatprep.subr.mxu0 %v2542_v22 }
 0x32a   :  { %4598 = vmatpush3.msra.mxu0 %v2542_v22 }
 0x32b   :  { %4524 = vmatmul.mubr.msk.f32.gmra.mxu0 %vm56_vm0, %v5205_v40  ;;  %4673 = vmatprep.subr.mxu0 %v5406_v24 }
 0x32c   :  { %4526 = vmatprep.mubr.msk.f32.mxu0 %vm56_vm0, %v5219_v3 }
 0x32f   :  { %4527 = vmatmul.mubr.msk.f32.gmra.mxu0 %vm56_vm0, %v5234_v30 }
 0x330   :  { %4529 = vmatprep.mubr.msk.f32.mxu0 %vm56_vm0, %v5243_v48 }
 0x333   :  { %4530 = vmatmul.mubr.msk.f32.gmra.mxu0 %vm56_vm0, %v5254_v53 }
 0x334   :  { %4532 = vmatprep.mubr.msk.f32.mxu0 %vm56_vm0, %v5251_v49 }
 0x337   :  { %4533 = vmatmul.mubr.msk.f32.gmra.mxu0 %vm56_vm0, %v5256_v27 }
 0x338   :  { %4535 = vmatprep.mubr.msk.f32.mxu0 %vm56_vm0, %v5271_v2 }
 0x33b   :  { %4536 = vmatmul.mubr.msk.f32.gmra.mxu0 %vm56_vm0, %v5282_v0  ;;  %v515_v23 = vpop.permute.xlu0 %514 }
 0x33c   :  { %4538 = vmatprep.mubr.msk.f32.mxu0 %vm56_vm0, %v5288_v14  ;;  %517 = vst.msk [vmem:[#allocation2 + $0xd0] sm:$0xff] %vm56_vm0, %v515_v23 }
 0x33f   :  { %v4405_v56 = vpop.f32.mrf.mxu1  ;;  %4539 = vmatmul.mubr.msk.f32.gmra.mxu0 %vm56_vm0, %v5296_v19  ;;  %v536_v29 = vpop.permute.xlu0 %535 }
 0x340   :  { %v1146_v28 = vadd.f32 %v4405_v56, %v1124_v26  ;;  %v4367_v25 = vpop.f32.mrf.mxu0  ;;  %4541 = vmatprep.mubr.msk.f32.mxu0 %vm56_vm0, %v5376_v8  ;;  %538 = vst.msk [vmem:[#allocation2 + $0xd8] sm:$0xff] %vm56_vm0, %v536_v29 }
 0x341   :  { %836 = vst.msk [vmem:[#allocation3 + $0x48] sm:$0xff] %vm56_vm0, %v4367_v25  ;;  %v1038_v31 = vpop.f32.mrf.mxu1 }
 0x342   :  { %1168 = vst.msk [vmem:[#allocation3 + $0x38] sm:$0xff] %vm56_vm0, %v1146_v28  ;;  %v1145_v32 = vadd.f32 %v1123_v61, %v1038_v31  ;;  %v758_v41 = vpop.f32.mrf.mxu0 }
 0x343   :  { %835 = vst.msk [vmem:[#allocation3 + $0x40] sm:$0xff] %vm56_vm0, %v758_v41  ;;  %4542 = vmatmul.mubr.msk.f32.gmra.mxu0 %vm56_vm0, %v5380_v16  ;;  %v4408_v43 = vpop.f32.mrf.mxu1  ;;  %v5443_v47 = vld [vmem:[#allocation2 + $0xd0] sm:$0xff] }
 0x344   :  { %1167 = vst.msk [vmem:[#allocation3 + $0x30] sm:$0xff] %vm56_vm0, %v1145_v32  ;;  %v4370_v44 = vpop.f32.mrf.mxu0  ;;  %4544 = vmatprep.mubr.msk.f32.mxu0 %vm56_vm0, %v5390_v17  ;;  %4506 = vmatprep.mubr.msk.f32.mxu1 %vm56_vm0, %v5443_v47 }
 0x345   :  { %838 = vst.msk [vmem:[#allocation3 + $0x58] sm:$0xff] %vm56_vm0, %v4370_v44  ;;  %v1048_v13 = vpop.f32.mrf.mxu1  ;;  %v5603_v44 = vld [vmem:[#allocation2 + $0xf8] sm:$0xff] }
 0x346   :  { %v768_v45 = vpop.f32.mrf.mxu0 }
 0x347   :  { %837 = vst.msk [vmem:[#allocation3 + $0x50] sm:$0xff] %vm56_vm0, %v768_v45  ;;  %4545 = vmatmul.mubr.msk.f32.gmra.mxu0 %vm56_vm0, %v5443_v47  ;;  %v5451_v10 = vld [vmem:[#allocation2 + $0xd8] sm:$0xff]  ;;  %v4411_v39 = vpop.f32.mrf.mxu1  ;;  %v5605_v45 = vld [vmem:[#allocation2 + $0x100] sm:$0xff] }
 0x348   :  { %v1126_v46 = vld [vmem:[#allocation3 + $0x48] sm:$0xff]  ;;  %v4373_v50 = vpop.f32.mrf.mxu0  ;;  %4507 = vmatmul.mubr.msk.f32.gmra.mxu1 %vm56_vm0, %v5451_v10  ;;  %4547 = vmatprep.mubr.msk.f32.mxu0 %vm56_vm0, %v5451_v10 }
 0x349   :  { %v1148_v54 = vadd.f32 %v4408_v43, %v1126_v46  ;;  %840 = vst.msk [vmem:[#allocation3 + $0x68] sm:$0xff] %vm56_vm0, %v4373_v50  ;;  %4558 = vmatprep.mubr.msk.f32.mxu1 %vm56_vm0, %v5191_v62  ;;  %v2877_v62 = vld [vmem:[#allocation7 + $0xe8] sm:$0xff]  ;;  %v1058_v4 = vpop.f32.mrf.mxu1  ;;  %v5595_v43 = vld [vmem:[#allocation2 + $0xf0] sm:$0xff]  ;;  %v5615_v46 = vld [vmem:[#allocation2 + $0x108] sm:$0xff] }
 0x34a   :  { %v1125_v55 = vld [vmem:[#allocation3 + $0x40] sm:$0xff]  ;;  %v778_v57 = vpop.f32.mrf.mxu0 }
 0x34b   :  { %1170 = vst.msk [vmem:[#allocation3 + $0x48] sm:$0xff] %vm56_vm0, %v1148_v54  ;;  %v1147_v58 = vadd.f32 %v1125_v55, %v1048_v13  ;;  %839 = vst.msk [vmem:[#allocation3 + $0x60] sm:$0xff] %vm56_vm0, %v778_v57  ;;  %v5621_v13 = vld [vmem:[#allocation2 + $0x110] sm:$0xff]  ;;  %v1451_v55 = vld [vmem:[#allocation3] sm:$0xff] }
 0x34c   :  { %v1128_v52 = vld [vmem:[#allocation3 + $0x58] sm:$0xff]  ;;  %4559 = vmatmul.mubr.msk.f32.vlgmr.msra.gmra.mxu1 %vm56_vm0, %v5189_v60 }
 0x34d   :  { %1169 = vst.msk [vmem:[#allocation3 + $0x40] sm:$0xff] %vm56_vm0, %v1147_v58  ;;  %v1150_v35 = vadd.f32 %v4411_v39, %v1128_v52  ;;  %4561 = vmatprep.mubr.msk.f32.mxu1 %vm56_vm0, %v5203_v63  ;;  %4633 = vmatpush3.msra.mxu1 %v5344_v15 }
 0x34e   :  { %v1127_v6 = vld [vmem:[#allocation3 + $0x50] sm:$0xff]  ;;  %4634 = vmatprep.subr.mxu1 %v2878_v59 }
 0x34f   :  { %1172 = vst.msk [vmem:[#allocation3 + $0x58] sm:$0xff] %vm56_vm0, %v1150_v35  ;;  %v1149_v7 = vadd.f32 %v1127_v6, %v1058_v4  ;;  %4635 = vmatpush3.msra.mxu1 %v2878_v59  ;;  %v1454_v59 = vld [vmem:[#allocation3 + $0x18] sm:$0xff] }
 0x350   :  { %4562 = vmatmul.mubr.msk.f32.gmra.mxu1 %vm56_vm0, %v5201_v36  ;;  %4636 = vmatprep.subr.mxu1 %v2877_v62  ;;  %v5506_v36 = vld [vmem:[#allocation2 + $0xe8] sm:$0xff] }
 0x351   :  { %1171 = vst.msk [vmem:[#allocation3 + $0x50] sm:$0xff] %vm56_vm0, %v1149_v7  ;;  %4564 = vmatprep.mubr.msk.f32.mxu1 %vm56_vm0, %v5205_v40  ;;  %4637 = vmatpush3.msra.mxu1 %v2877_v62  ;;  %v1130_v11 = vld [vmem:[#allocation3 + $0x68] sm:$0xff]  ;;  %v1453_v62 = vld [vmem:[#allocation3 + $0x10] sm:$0xff] }
 0x352   :  { %4638 = vmatprep.subr.mxu1 %v2876_v9  ;;  %v1129_v37 = vld [vmem:[#allocation3 + $0x60] sm:$0xff] }
 0x353   :  { %4639 = vmatpush3.msra.mxu1 %v2876_v9 }
 0x354   :  { %4565 = vmatmul.mubr.msk.f32.gmra.mxu1 %vm56_vm0, %v5219_v3  ;;  %4714 = vmatprep.subr.mxu1 %v4875_v1 }
 0x355   :  { %4567 = vmatprep.mubr.msk.f32.mxu1 %vm56_vm0, %v5234_v30 }
 0x358   :  { %4568 = vmatmul.mubr.msk.f32.gmra.mxu1 %vm56_vm0, %v5243_v48 }
 0x359   :  { %4570 = vmatprep.mubr.msk.f32.mxu1 %vm56_vm0, %v5254_v53 }
 0x35c   :  { %4571 = vmatmul.mubr.msk.f32.gmra.mxu1 %vm56_vm0, %v5251_v49 }
 0x35d   :  { %4573 = vmatprep.mubr.msk.f32.mxu1 %vm56_vm0, %v5256_v27 }
 0x360   :  { %4574 = vmatmul.mubr.msk.f32.gmra.mxu1 %vm56_vm0, %v5271_v2 }
 0x361   :  { %4576 = vmatprep.mubr.msk.f32.mxu1 %vm56_vm0, %v5282_v0 }
 0x364   :  { %4577 = vmatmul.mubr.msk.f32.gmra.mxu1 %vm56_vm0, %v5288_v14 }
 0x365   :  { %4579 = vmatprep.mubr.msk.f32.mxu1 %vm56_vm0, %v5296_v19 }
 0x368   :  { %4580 = vmatmul.mubr.msk.f32.gmra.mxu1 %vm56_vm0, %v5376_v8 }
 0x369   :  { %4582 = vmatprep.mubr.msk.f32.mxu1 %vm56_vm0, %v5380_v16 }
 0x36c   :  { %v557_v60 = vpop.permute.xlu0 %556  ;;  %4583 = vmatmul.mubr.msk.f32.gmra.mxu1 %vm56_vm0, %v5390_v17 }
 0x36d   :  { %559 = vst.msk [vmem:[#allocation2 + $0xe0] sm:$0xff] %vm56_vm0, %v557_v60  ;;  %4585 = vmatprep.mubr.msk.f32.mxu1 %vm56_vm0, %v5443_v47 }
 0x370   :  { %4586 = vmatmul.mubr.msk.f32.gmra.mxu1 %vm56_vm0, %v5451_v10 }
 0x374   :  { %v5508_v63 = vld [vmem:[#allocation2 + $0xe0] sm:$0xff] }
 0x375   :  { %4548 = vmatmul.mubr.msk.f32.gmra.mxu0 %vm56_vm0, %v5508_v63  ;;  %4588 = vmatprep.mubr.msk.f32.mxu1 %vm56_vm0, %v5508_v63 }
 0x376   :  { %4589 = vmatmul.mubr.msk.f32.gmra.mxu1 %vm56_vm0, %v5506_v36  ;;  %4599 = vmatprep.mubr.msk.f32.mxu0 %vm56_vm0, %v5205_v40 }
 0x377   :  { %4640 = vmatprep.mubr.msk.f32.mxu1 %vm56_vm0, %v5219_v3 }
 0x379   :  { %v4414_v33 = vpop.f32.mrf.mxu1  ;;  %4600 = vmatmul.mubr.msk.f32.vlgmr.msra.gmra.mxu0 %vm56_vm0, %v5219_v3  ;;  %v3210_v3 = vld [vmem:[#allocation7 + $0x100] sm:$0xff] }
 0x37a   :  { %v1152_v20 = vadd.f32 %v4414_v33, %v1130_v11  ;;  %4674 = vmatpush3.msra.mxu0 %v5406_v24  ;;  %4602 = vmatprep.mubr.msk.f32.mxu0 %vm56_vm0, %v5234_v30 }
 0x37b   :  { %4641 = vmatmul.mubr.msk.f32.vlgmr.msra.gmra.mxu1 %vm56_vm0, %v5234_v30  ;;  %v1068_v40 = vpop.f32.mrf.mxu1  ;;  %4675 = vmatprep.subr.mxu0 %v3212_v51 }
 0x37c   :  { %1174 = vst.msk [vmem:[#allocation3 + $0x68] sm:$0xff] %vm56_vm0, %v1152_v20  ;;  %v1151_v38 = vadd.f32 %v1129_v37, %v1068_v40  ;;  %4643 = vmatprep.mubr.msk.f32.mxu1 %vm56_vm0, %v5243_v48  ;;  %4676 = vmatpush3.msra.mxu0 %v3212_v51  ;;  %v1455_v20 = vld [vmem:[#allocation3 + $0x20] sm:$0xff] }
 0x37d   :  { %v4376_v42 = vpop.f32.mrf.mxu0  ;;  %4603 = vmatmul.mubr.msk.f32.gmra.mxu0 %vm56_vm0, %v5243_v48  ;;  %4677 = vmatprep.subr.mxu0 %v3211_v34 }
 0x37e   :  { %1173 = vst.msk [vmem:[#allocation3 + $0x60] sm:$0xff] %vm56_vm0, %v1151_v38  ;;  %842 = vst.msk [vmem:[#allocation3 + $0x78] sm:$0xff] %vm56_vm0, %v4376_v42  ;;  %4605 = vmatprep.mubr.msk.f32.mxu0 %vm56_vm0, %v5254_v53  ;;  %4678 = vmatpush3.msra.mxu0 %v3211_v34 }
 0x37f   :  { %4644 = vmatmul.mubr.msk.f32.gmra.mxu1 %vm56_vm0, %v5254_v53  ;;  %v788_v5 = vpop.f32.mrf.mxu0  ;;  %4679 = vmatprep.subr.mxu0 %v3210_v3 }
 0x380   :  { %841 = vst.msk [vmem:[#allocation3 + $0x70] sm:$0xff] %vm56_vm0, %v788_v5  ;;  %4646 = vmatprep.mubr.msk.f32.mxu1 %vm56_vm0, %v5251_v49  ;;  %4680 = vmatpush3.msra.mxu0 %v3210_v3 }
 0x381   :  { %4606 = vmatmul.mubr.msk.f32.gmra.mxu0 %vm56_vm0, %v5251_v49  ;;  %v4417_v12 = vpop.f32.mrf.mxu1 }
 0x382   :  { %4608 = vmatprep.mubr.msk.f32.mxu0 %vm56_vm0, %v5256_v27  ;;  %v4379_v15 = vpop.f32.mrf.mxu0 }
 0x383   :  { %4647 = vmatmul.mubr.msk.f32.gmra.mxu1 %vm56_vm0, %v5256_v27  ;;  %844 = vst.msk [vmem:[#allocation3 + $0x88] sm:$0xff] %vm56_vm0, %v4379_v15  ;;  %v1078_v24 = vpop.f32.mrf.mxu1 }
 0x384   :  { %4649 = vmatprep.mubr.msk.f32.mxu1 %vm56_vm0, %v5271_v2  ;;  %v798_v21 = vpop.f32.mrf.mxu0 }
 0x385   :  { %v1132_v18 = vld [vmem:[#allocation3 + $0x78] sm:$0xff]  ;;  %4609 = vmatmul.mubr.msk.f32.gmra.mxu0 %vm56_vm0, %v5271_v2  ;;  %843 = vst.msk [vmem:[#allocation3 + $0x80] sm:$0xff] %vm56_vm0, %v798_v21  ;;  %v4420_v29 = vpop.f32.mrf.mxu1 }
 0x386   :  { %v1154_v22 = vadd.f32 %v4417_v12, %v1132_v18  ;;  %4611 = vmatprep.mubr.msk.f32.mxu0 %vm56_vm0, %v5282_v0  ;;  %v4382_v56 = vpop.f32.mrf.mxu0  ;;  %v1458_v12 = vld [vmem:[#allocation3 + $0x38] sm:$0xff] }
 0x387   :  { %v1131_v23 = vld [vmem:[#allocation3 + $0x70] sm:$0xff]  ;;  %4650 = vmatmul.mubr.msk.f32.gmra.mxu1 %vm56_vm0, %v5282_v0  ;;  %846 = vst.msk [vmem:[#allocation3 + $0x98] sm:$0xff] %vm56_vm0, %v4382_v56  ;;  %v1088_v61 = vpop.f32.mrf.mxu1 }
 0x388   :  { %1176 = vst.msk [vmem:[#allocation3 + $0x78] sm:$0xff] %vm56_vm0, %v1154_v22  ;;  %v1153_v26 = vadd.f32 %v1131_v23, %v1078_v24  ;;  %4652 = vmatprep.mubr.msk.f32.mxu1 %vm56_vm0, %v5288_v14  ;;  %v808_v28 = vpop.f32.mrf.mxu0  ;;  %v1457_v24 = vld [vmem:[#allocation3 + $0x30] sm:$0xff] }
 0x389   :  { %4612 = vmatmul.mubr.msk.f32.gmra.mxu0 %vm56_vm0, %v5288_v14  ;;  %845 = vst.msk [vmem:[#allocation3 + $0x90] sm:$0xff] %vm56_vm0, %v808_v28 }
 0x38a   :  { %1175 = vst.msk [vmem:[#allocation3 + $0x70] sm:$0xff] %vm56_vm0, %v1153_v26  ;;  %4614 = vmatprep.mubr.msk.f32.mxu0 %vm56_vm0, %v5296_v19  ;;  %v1134_v25 = vld [vmem:[#allocation3 + $0x88] sm:$0xff] }
 0x38b   :  { %4653 = vmatmul.mubr.msk.f32.gmra.mxu1 %vm56_vm0, %v5296_v19  ;;  %v1156_v31 = vadd.f32 %v4420_v29, %v1134_v25  ;;  %v1460_v25 = vld [vmem:[#allocation3 + $0x48] sm:$0xff] }
 0x38c   :  { %4655 = vmatprep.mubr.msk.f32.mxu1 %vm56_vm0, %v5376_v8  ;;  %v1133_v32 = vld [vmem:[#allocation3 + $0x80] sm:$0xff] }
 0x38d   :  { %4615 = vmatmul.mubr.msk.f32.gmra.mxu0 %vm56_vm0, %v5376_v8  ;;  %1178 = vst.msk [vmem:[#allocation3 + $0x88] sm:$0xff] %vm56_vm0, %v1156_v31  ;;  %v1155_v41 = vadd.f32 %v1133_v32, %v1088_v61 }
 0x38e   :  { %4617 = vmatprep.mubr.msk.f32.mxu0 %vm56_vm0, %v5380_v16 }
 0x38f   :  { %4656 = vmatmul.mubr.msk.f32.gmra.mxu1 %vm56_vm0, %v5380_v16  ;;  %1177 = vst.msk [vmem:[#allocation3 + $0x80] sm:$0xff] %vm56_vm0, %v1155_v41 }
 0x390   :  { %4658 = vmatprep.mubr.msk.f32.mxu1 %vm56_vm0, %v5390_v17 }
 0x391   :  { %4618 = vmatmul.mubr.msk.f32.gmra.mxu0 %vm56_vm0, %v5390_v17 }
 0x392   :  { %4620 = vmatprep.mubr.msk.f32.mxu0 %vm56_vm0, %v5443_v47 }
 0x393   :  { %4659 = vmatmul.mubr.msk.f32.gmra.mxu1 %vm56_vm0, %v5443_v47 }
 0x394   :  { %4661 = vmatprep.mubr.msk.f32.mxu1 %vm56_vm0, %v5451_v10 }
 0x395   :  { %4621 = vmatmul.mubr.msk.f32.gmra.mxu0 %vm56_vm0, %v5451_v10 }
 0x396   :  { %4623 = vmatprep.mubr.msk.f32.mxu0 %vm56_vm0, %v5508_v63 }
 0x397   :  { %4662 = vmatmul.mubr.msk.f32.gmra.mxu1 %vm56_vm0, %v5508_v63 }
 0x398   :  { %4664 = vmatprep.mubr.msk.f32.mxu1 %vm56_vm0, %v5506_v36 }
 0x399   :  { %4624 = vmatmul.mubr.msk.f32.gmra.mxu0 %vm56_vm0, %v5506_v36 }
 0x39a   :  { %4626 = vmatprep.mubr.msk.f32.mxu0 %vm56_vm0, %v5595_v43 }
 0x39b   :  { %4665 = vmatmul.mubr.msk.f32.gmra.mxu1 %vm56_vm0, %v5595_v43 }
 0x39c   :  { %4667 = vmatprep.mubr.msk.f32.mxu1 %vm56_vm0, %v5603_v44 }
 0x39d   :  { %4627 = vmatmul.mubr.msk.f32.gmra.mxu0 %vm56_vm0, %v5603_v44 }
 0x39e   :  { %4629 = vmatprep.mubr.msk.f32.mxu0 %vm56_vm0, %v5605_v45 }
 0x39f   :  { %4668 = vmatmul.mubr.msk.f32.gmra.mxu1 %vm56_vm0, %v5605_v45 }
 0x3a0   :  { %4670 = vmatprep.mubr.msk.f32.mxu1 %vm56_vm0, %v5615_v46 }
 0x3a1   :  { %4630 = vmatmul.mubr.msk.f32.gmra.mxu0 %vm56_vm0, %v5615_v46 }
 0x3a2   :  { %4681 = vmatprep.mubr.msk.f32.mxu0 %vm56_vm0, %v5234_v30 }
 0x3a3   :  { %4671 = vmatmul.mubr.msk.f32.gmra.mxu1 %vm56_vm0, %v5621_v13 }
 0x3a5   :  { %4682 = vmatmul.mubr.msk.f32.vlgmr.msra.gmra.mxu0 %vm56_vm0, %v5243_v48  ;;  %v1136_v48 = vld [vmem:[#allocation3 + $0x98] sm:$0xff] }
 0x3a6   :  { %4684 = vmatprep.mubr.msk.f32.mxu0 %vm56_vm0, %v5254_v53 }
 0x3a9   :  { %4685 = vmatmul.mubr.msk.f32.gmra.mxu0 %vm56_vm0, %v5251_v49 }
 0x3aa   :  { %4687 = vmatprep.mubr.msk.f32.mxu0 %vm56_vm0, %v5256_v27  ;;  %v1135_v27 = vld [vmem:[#allocation3 + $0x90] sm:$0xff] }
 0x3ad   :  { %4688 = vmatmul.mubr.msk.f32.gmra.mxu0 %vm56_vm0, %v5271_v2 }
 0x3ae   :  { %4690 = vmatprep.mubr.msk.f32.mxu0 %vm56_vm0, %v5282_v0  ;;  %v1452_v0 = vld [vmem:[#allocation3 + $0x8] sm:$0xff] }
 0x3b1   :  { %4691 = vmatmul.mubr.msk.f32.gmra.mxu0 %vm56_vm0, %v5288_v14 }
 0x3b2   :  { %v4423_v30 = vpop.f32.mrf.mxu1  ;;  %4693 = vmatprep.mubr.msk.f32.mxu0 %vm56_vm0, %v5296_v19 }
 0x3b3   :  { %v1158_v53 = vadd.f32 %v4423_v30, %v1136_v48  ;;  %v4385_v50 = vpop.f32.mrf.mxu0  ;;  %v1462_v30 = vld [vmem:[#allocation3 + $0x58] sm:$0xff] }
 0x3b4   :  { %848 = vst.msk [vmem:[#allocation3 + $0xa8] sm:$0xff] %vm56_vm0, %v4385_v50  ;;  %v1098_v49 = vpop.f32.mrf.mxu1  ;;  %v3208_v50 = vld [vmem:[#allocation2 + $0x118] sm:$0xff] }
 0x3b5   :  { %1180 = vst.msk [vmem:[#allocation3 + $0x98] sm:$0xff] %vm56_vm0, %v1158_v53  ;;  %v1157_v2 = vadd.f32 %v1135_v27, %v1098_v49  ;;  %v818_v54 = vpop.f32.mrf.mxu0  ;;  %4694 = vmatmul.mubr.msk.f32.gmra.mxu0 %vm56_vm0, %v5376_v8 }
 0x3b6   :  { %847 = vst.msk [vmem:[#allocation3 + $0xa0] sm:$0xff] %vm56_vm0, %v818_v54  ;;  %v4426_v14 = vpop.f32.mrf.mxu1  ;;  %4696 = vmatprep.mubr.msk.f32.mxu0 %vm56_vm0, %v5380_v16 }
 0x3b7   :  { %1179 = vst.msk [vmem:[#allocation3 + $0x90] sm:$0xff] %vm56_vm0, %v1157_v2  ;;  %v4437_v19 = vpop.f32.mrf.mxu0  ;;  %v1461_v2 = vld [vmem:[#allocation3 + $0x50] sm:$0xff] }
 0x3b8   :  { %v1474_v57 = vadd.f32 %v4437_v19, %v1452_v0  ;;  %v1108_v39 = vpop.f32.mrf.mxu1 }
 0x3b9   :  { %v1342_v58 = vpop.f32.mrf.mxu0  ;;  %4697 = vmatmul.mubr.msk.f32.gmra.mxu0 %vm56_vm0, %v5390_v17  ;;  %v1456_v17 = vld [vmem:[#allocation3 + $0x28] sm:$0xff] }
 0x3ba   :  { %1496 = vst.msk [vmem:[#allocation3 + $0x8] sm:$0xff] %vm56_vm0, %v1474_v57  ;;  %v1473_v8 = vadd.f32 %v1451_v55, %v1342_v58  ;;  %v4478_v52 = vpop.f32.mrf.mxu1  ;;  %4699 = vmatprep.mubr.msk.f32.mxu0 %vm56_vm0, %v5443_v47 }
 0x3bb   :  { %v1138_v35 = vld [vmem:[#allocation3 + $0xa8] sm:$0xff]  ;;  %v4440_v16 = vpop.f32.mrf.mxu0 }
 0x3bc   :  { %v1160_v4 = vadd.f32 %v4426_v14, %v1138_v35  ;;  %1495 = vst.msk [vmem:[#allocation3] sm:$0xff] %vm56_vm0, %v1473_v8  ;;  %v1476_v6 = vadd.f32 %v4440_v16, %v1454_v59  ;;  %v1676_v7 = vpop.f32.mrf.mxu1  ;;  %v1464_v59 = vld [vmem:[#allocation3 + $0x68] sm:$0xff] }
 0x3bd   :  { %v1137_v9 = vld [vmem:[#allocation3 + $0xa0] sm:$0xff]  ;;  %v1352_v60 = vpop.f32.mrf.mxu0  ;;  %4700 = vmatmul.mubr.msk.f32.gmra.mxu0 %vm56_vm0, %v5451_v10 }
 0x3be   :  { %1182 = vst.msk [vmem:[#allocation3 + $0xa8] sm:$0xff] %vm56_vm0, %v1160_v4  ;;  %v1159_v51 = vadd.f32 %v1137_v9, %v1108_v39  ;;  %1498 = vst.msk [vmem:[#allocation3 + $0x18] sm:$0xff] %vm56_vm0, %v1476_v6  ;;  %v1475_v47 = vadd.f32 %v1453_v62, %v1352_v60  ;;  %v4481_v33 = vpop.f32.mrf.mxu1  ;;  %4702 = vmatprep.mubr.msk.f32.mxu0 %vm56_vm0, %v5508_v63  ;;  %v1463_v4 = vld [vmem:[#allocation3 + $0x60] sm:$0xff] }
 0x3bf   :  { %v4443_v11 = vpop.f32.mrf.mxu0 }
 0x3c0   :  { %1181 = vst.msk [vmem:[#allocation3 + $0xa0] sm:$0xff] %vm56_vm0, %v1159_v51  ;;  %1497 = vst.msk [vmem:[#allocation3 + $0x10] sm:$0xff] %vm56_vm0, %v1475_v47  ;;  %v1478_v34 = vadd.f32 %v4443_v11, %v1456_v17  ;;  %v1686_v40 = vpop.f32.mrf.mxu1  ;;  %v1466_v51 = vld [vmem:[#allocation3 + $0x78] sm:$0xff] }
 0x3c1   :  { %v1786_v10 = vld [vmem:[#allocation3 + $0x8] sm:$0xff]  ;;  %v1362_v37 = vpop.f32.mrf.mxu0  ;;  %4703 = vmatmul.mubr.msk.f32.gmra.mxu0 %vm56_vm0, %v5506_v36 }
 0x3c2   :  { %v1808_v38 = vadd.f32 %v4478_v52, %v1786_v10  ;;  %1500 = vst.msk [vmem:[#allocation3 + $0x28] sm:$0xff] %vm56_vm0, %v1478_v34  ;;  %v1477_v3 = vadd.f32 %v1455_v20, %v1362_v37  ;;  %v4484_v42 = vpop.f32.mrf.mxu1  ;;  %4705 = vmatprep.mubr.msk.f32.mxu0 %vm56_vm0, %v5595_v43  ;;  %v1468_v10 = vld [vmem:[#allocation3 + $0x88] sm:$0xff] }
 0x3c3   :  { %v1785_v63 = vld [vmem:[#allocation3] sm:$0xff]  ;;  %v4446_v5 = vpop.f32.mrf.mxu0 }
 0x3c4   :  { %1830 = vst.msk [vmem:[#allocation3 + $0x8] sm:$0xff] %vm56_vm0, %v1808_v38  ;;  %v1807_v15 = vadd.f32 %v1785_v63, %v1676_v7  ;;  %1499 = vst.msk [vmem:[#allocation3 + $0x20] sm:$0xff] %vm56_vm0, %v1477_v3  ;;  %v1480_v18 = vadd.f32 %v4446_v5, %v1458_v12  ;;  %v1696_v21 = vpop.f32.mrf.mxu1  ;;  %v1467_v5 = vld [vmem:[#allocation3 + $0x80] sm:$0xff] }
 0x3c5   :  { %v1788_v22 = vld [vmem:[#allocation3 + $0x18] sm:$0xff]  ;;  %v1372_v36 = vpop.f32.mrf.mxu0  ;;  %4706 = vmatmul.mubr.msk.f32.gmra.mxu0 %vm56_vm0, %v5603_v44  ;;  %v1459_v44 = vld [vmem:[#allocation3 + $0x40] sm:$0xff] }
 0x3c6   :  { %1829 = vst.msk [vmem:[#allocation3] sm:$0xff] %vm56_vm0, %v1807_v15  ;;  %v1810_v23 = vadd.f32 %v4481_v33, %v1788_v22  ;;  %1502 = vst.msk [vmem:[#allocation3 + $0x38] sm:$0xff] %vm56_vm0, %v1480_v18  ;;  %v1479_v56 = vadd.f32 %v1457_v24, %v1372_v36  ;;  %v4487_v26 = vpop.f32.mrf.mxu1  ;;  %4708 = vmatprep.mubr.msk.f32.mxu0 %vm56_vm0, %v5605_v45 }
 0x3c7   :  { %v1787_v28 = vld [vmem:[#allocation3 + $0x10] sm:$0xff]  ;;  %v4449_v29 = vpop.f32.mrf.mxu0 }
 0x3c8   :  { %1832 = vst.msk [vmem:[#allocation3 + $0x18] sm:$0xff] %vm56_vm0, %v1810_v23  ;;  %v1809_v31 = vadd.f32 %v1787_v28, %v1686_v40  ;;  %1501 = vst.msk [vmem:[#allocation3 + $0x30] sm:$0xff] %vm56_vm0, %v1479_v56  ;;  %v1482_v61 = vadd.f32 %v4449_v29, %v1460_v25  ;;  %v1706_v32 = vpop.f32.mrf.mxu1  ;;  %v1465_v40 = vld [vmem:[#allocation3 + $0x70] sm:$0xff]  ;;  %v1470_v28 = vld [vmem:[#allocation3 + $0x98] sm:$0xff] }
 0x3c9   :  { %v1790_v41 = vld [vmem:[#allocation3 + $0x28] sm:$0xff]  ;;  %v1382_v43 = vpop.f32.mrf.mxu0  ;;  %4709 = vmatmul.mubr.msk.f32.gmra.mxu0 %vm56_vm0, %v5615_v46 }
 0x3ca   :  { %1831 = vst.msk [vmem:[#allocation3 + $0x10] sm:$0xff] %vm56_vm0, %v1809_v31  ;;  %v1812_v45 = vadd.f32 %v4484_v42, %v1790_v41  ;;  %1504 = vst.msk [vmem:[#allocation3 + $0x48] sm:$0xff] %vm56_vm0, %v1482_v61  ;;  %v1481_v48 = vadd.f32 %v1459_v44, %v1382_v43  ;;  %v4490_v53 = vpop.f32.mrf.mxu1  ;;  %4711 = vmatprep.mubr.msk.f32.mxu0 %vm56_vm0, %v5621_v13 }
 0x3cb   :  { %v1789_v49 = vld [vmem:[#allocation3 + $0x20] sm:$0xff]  ;;  %v4452_v27 = vpop.f32.mrf.mxu0 }
 0x3cc   :  { %1834 = vst.msk [vmem:[#allocation3 + $0x28] sm:$0xff] %vm56_vm0, %v1812_v45  ;;  %v1811_v54 = vadd.f32 %v1789_v49, %v1696_v21  ;;  %1503 = vst.msk [vmem:[#allocation3 + $0x40] sm:$0xff] %vm56_vm0, %v1481_v48  ;;  %v1484_v46 = vadd.f32 %v4452_v27, %v1462_v30  ;;  %v1716_v0 = vpop.f32.mrf.mxu1  ;;  %v1472_v48 = vld [vmem:[#allocation3 + $0xa8] sm:$0xff] }
 0x3cd   :  { %v1792_v14 = vld [vmem:[#allocation3 + $0x38] sm:$0xff]  ;;  %v1392_v19 = vpop.f32.mrf.mxu0  ;;  %4712 = vmatmul.mubr.msk.f32.gmra.mxu0 %vm56_vm0, %v3208_v50 }
 0x3ce   :  { %1833 = vst.msk [vmem:[#allocation3 + $0x20] sm:$0xff] %vm56_vm0, %v1811_v54  ;;  %v1814_v55 = vadd.f32 %v4487_v26, %v1792_v14  ;;  %1506 = vst.msk [vmem:[#allocation3 + $0x58] sm:$0xff] %vm56_vm0, %v1484_v46  ;;  %v1483_v13 = vadd.f32 %v1461_v2, %v1392_v19  ;;  %v4493_v57 = vpop.f32.mrf.mxu1  ;;  %v1471_v2 = vld [vmem:[#allocation3 + $0xa0] sm:$0xff] }
 0x3cf   :  { %v1791_v39 = vld [vmem:[#allocation3 + $0x30] sm:$0xff]  ;;  %v4455_v58 = vpop.f32.mrf.mxu0 }
 0x3d0   :  { %1836 = vst.msk [vmem:[#allocation3 + $0x38] sm:$0xff] %vm56_vm0, %v1814_v55  ;;  %v1813_v8 = vadd.f32 %v1791_v39, %v1706_v32  ;;  %1505 = vst.msk [vmem:[#allocation3 + $0x50] sm:$0xff] %vm56_vm0, %v1483_v13  ;;  %v1486_v52 = vadd.f32 %v4455_v58, %v1464_v59  ;;  %v1726_v35 = vpop.f32.mrf.mxu1  ;;  %v1469_v32 = vld [vmem:[#allocation3 + $0x90] sm:$0xff]  ;;  %v2120_v55 = vld [vmem:[#allocation3 + $0x8] sm:$0xff] }
 0x3d1   :  { %v1794_v16 = vld [vmem:[#allocation3 + $0x48] sm:$0xff]  ;;  %v1402_v62 = vpop.f32.mrf.mxu0  ;;  %v2119_v59 = vld [vmem:[#allocation3] sm:$0xff] }
 0x3d2   :  { %1835 = vst.msk [vmem:[#allocation3 + $0x30] sm:$0xff] %vm56_vm0, %v1813_v8  ;;  %v1816_v6 = vadd.f32 %v4490_v53, %v1794_v16  ;;  %1508 = vst.msk [vmem:[#allocation3 + $0x68] sm:$0xff] %vm56_vm0, %v1486_v52  ;;  %v1485_v7 = vadd.f32 %v1463_v4, %v1402_v62  ;;  %v4496_v9 = vpop.f32.mrf.mxu1  ;;  %v2122_v4 = vld [vmem:[#allocation3 + $0x18] sm:$0xff] }
 0x3d3   :  { %v1793_v60 = vld [vmem:[#allocation3 + $0x40] sm:$0xff]  ;;  %v4458_v17 = vpop.f32.mrf.mxu0 }
 0x3d4   :  { %1838 = vst.msk [vmem:[#allocation3 + $0x48] sm:$0xff] %vm56_vm0, %v1816_v6  ;;  %v1815_v47 = vadd.f32 %v1793_v60, %v1716_v0  ;;  %1507 = vst.msk [vmem:[#allocation3 + $0x60] sm:$0xff] %vm56_vm0, %v1485_v7  ;;  %v1488_v33 = vadd.f32 %v4458_v17, %v1466_v51  ;;  %v1736_v11 = vpop.f32.mrf.mxu1  ;;  %v2121_v60 = vld [vmem:[#allocation3 + $0x10] sm:$0xff] }
 0x3d5   :  { %v1796_v20 = vld [vmem:[#allocation3 + $0x58] sm:$0xff]  ;;  %v1412_v34 = vpop.f32.mrf.mxu0 }
 0x3d6   :  { %1837 = vst.msk [vmem:[#allocation3 + $0x40] sm:$0xff] %vm56_vm0, %v1815_v47  ;;  %v1818_v37 = vadd.f32 %v4493_v57, %v1796_v20  ;;  %1510 = vst.msk [vmem:[#allocation3 + $0x78] sm:$0xff] %vm56_vm0, %v1488_v33  ;;  %v1487_v38 = vadd.f32 %v1465_v40, %v1412_v34  ;;  %v4499_v3 = vpop.f32.mrf.mxu1  ;;  %v2124_v47 = vld [vmem:[#allocation3 + $0x28] sm:$0xff]  ;;  %v2123_v20 = vld [vmem:[#allocation3 + $0x20] sm:$0xff] }
 0x3d7   :  { %v1795_v42 = vld [vmem:[#allocation3 + $0x50] sm:$0xff]  ;;  %v4461_v63 = vpop.f32.mrf.mxu0 }
 0x3d8   :  { %1840 = vst.msk [vmem:[#allocation3 + $0x58] sm:$0xff] %vm56_vm0, %v1818_v37  ;;  %v1817_v12 = vadd.f32 %v1795_v42, %v1726_v35  ;;  %1509 = vst.msk [vmem:[#allocation3 + $0x70] sm:$0xff] %vm56_vm0, %v1487_v38  ;;  %v1490_v15 = vadd.f32 %v4461_v63, %v1468_v10  ;;  %v1746_v18 = vpop.f32.mrf.mxu1  ;;  %v2126_v10 = vld [vmem:[#allocation3 + $0x38] sm:$0xff] }
 0x3d9   :  { %v1798_v21 = vld [vmem:[#allocation3 + $0x68] sm:$0xff]  ;;  %v1422_v22 = vpop.f32.mrf.mxu0 }
 0x3da   :  { %1839 = vst.msk [vmem:[#allocation3 + $0x50] sm:$0xff] %vm56_vm0, %v1817_v12  ;;  %v1820_v36 = vadd.f32 %v4496_v9, %v1798_v21  ;;  %1512 = vst.msk [vmem:[#allocation3 + $0x88] sm:$0xff] %vm56_vm0, %v1490_v15  ;;  %v1489_v24 = vadd.f32 %v1467_v5, %v1422_v22  ;;  %v4502_v56 = vpop.f32.mrf.mxu1 }
 0x3db   :  { %v1797_v23 = vld [vmem:[#allocation3 + $0x60] sm:$0xff]  ;;  %v4464_v26 = vpop.f32.mrf.mxu0  ;;  %v2128_v5 = vld [vmem:[#allocation3 + $0x48] sm:$0xff] }
 0x3dc   :  { %1842 = vst.msk [vmem:[#allocation3 + $0x68] sm:$0xff] %vm56_vm0, %v1820_v36  ;;  %v1819_v29 = vadd.f32 %v1797_v23, %v1736_v11  ;;  %1511 = vst.msk [vmem:[#allocation3 + $0x80] sm:$0xff] %vm56_vm0, %v1489_v24  ;;  %v1492_v25 = vadd.f32 %v4464_v26, %v1470_v28  ;;  %v1756_v30 = vpop.f32.mrf.mxu1 }
 0x3dd   :  { %v1800_v31 = vld [vmem:[#allocation3 + $0x78] sm:$0xff]  ;;  %v1432_v61 = vpop.f32.mrf.mxu0 }
 0x3de   :  { %1841 = vst.msk [vmem:[#allocation3 + $0x60] sm:$0xff] %vm56_vm0, %v1819_v29  ;;  %v1822_v41 = vadd.f32 %v4499_v3, %v1800_v31  ;;  %1514 = vst.msk [vmem:[#allocation3 + $0x98] sm:$0xff] %vm56_vm0, %v1492_v25  ;;  %v1491_v43 = vadd.f32 %v1469_v32, %v1432_v61  ;;  %v4505_v14 = vpop.f32.mrf.mxu1  ;;  %v2125_v3 = vld [vmem:[#allocation3 + $0x30] sm:$0xff] }
 0x3df   :  { %v1799_v44 = vld [vmem:[#allocation3 + $0x70] sm:$0xff]  ;;  %v4467_v45 = vpop.f32.mrf.mxu0  ;;  %v2130_v36 = vld [vmem:[#allocation3 + $0x58] sm:$0xff] }
 0x3e0   :  { %1844 = vst.msk [vmem:[#allocation3 + $0x78] sm:$0xff] %vm56_vm0, %v1822_v41  ;;  %v1821_v53 = vadd.f32 %v1799_v44, %v1746_v18  ;;  %1513 = vst.msk [vmem:[#allocation3 + $0x90] sm:$0xff] %vm56_vm0, %v1491_v43  ;;  %v1494_v50 = vadd.f32 %v4467_v45, %v1472_v48  ;;  %v1766_v35 = vpop.f32.mrf.mxu1  ;;  %v2127_v18 = vld [vmem:[#allocation3 + $0x40] sm:$0xff] }
 0x3e1   :  { %v1802_v49 = vld [vmem:[#allocation3 + $0x88] sm:$0xff]  ;;  %v1442_v27 = vpop.f32.mrf.mxu0 }
 0x3e2   :  { %1843 = vst.msk [vmem:[#allocation3 + $0x70] sm:$0xff] %vm56_vm0, %v1821_v53  ;;  %v1824_v54 = vadd.f32 %v4502_v56, %v1802_v49  ;;  %1516 = vst.msk [vmem:[#allocation3 + $0xa8] sm:$0xff] %vm56_vm0, %v1494_v50  ;;  %v1493_v46 = vadd.f32 %v1471_v2, %v1442_v27  ;;  %v2129_v56 = vld [vmem:[#allocation3 + $0x50] sm:$0xff] }
 0x3e3   :  { %v1801_v0 = vld [vmem:[#allocation3 + $0x80] sm:$0xff]  ;;  %v4519_v19 = vpop.f32.mrf.mxu0  ;;  %v2132_v29 = vld [vmem:[#allocation3 + $0x68] sm:$0xff] }
 0x3e4   :  { %1846 = vst.msk [vmem:[#allocation3 + $0x88] sm:$0xff] %vm56_vm0, %v1824_v54  ;;  %v1823_v13 = vadd.f32 %v1801_v0, %v1756_v30  ;;  %1515 = vst.msk [vmem:[#allocation3 + $0xa0] sm:$0xff] %vm56_vm0, %v1493_v46  ;;  %v2142_v57 = vadd.f32 %v4519_v19, %v2120_v55 }
 0x3e5   :  { %v1804_v39 = vld [vmem:[#allocation3 + $0x98] sm:$0xff]  ;;  %v2010_v58 = vpop.f32.mrf.mxu0  ;;  %v2131_v61 = vld [vmem:[#allocation3 + $0x60] sm:$0xff] }
 0x3e6   :  { %1845 = vst.msk [vmem:[#allocation3 + $0x80] sm:$0xff] %vm56_vm0, %v1823_v13  ;;  %v1826_v8 = vadd.f32 %v4505_v14, %v1804_v39  ;;  %2164 = vst.msk [vmem:[#allocation3 + $0x8] sm:$0xff] %vm56_vm0, %v2142_v57  ;;  %v2141_v52 = vadd.f32 %v2119_v59, %v2010_v58 }
 0x3e7   :  { %v1803_v16 = vld [vmem:[#allocation3 + $0x90] sm:$0xff]  ;;  %v4522_v62 = vpop.f32.mrf.mxu0  ;;  %v2134_v43 = vld [vmem:[#allocation3 + $0x78] sm:$0xff] }
 0x3e8   :  { %1848 = vst.msk [vmem:[#allocation3 + $0x98] sm:$0xff] %vm56_vm0, %v1826_v8  ;;  %v1825_v6 = vadd.f32 %v1803_v16, %v1766_v35  ;;  %2163 = vst.msk [vmem:[#allocation3] sm:$0xff] %vm56_vm0, %v2141_v52  ;;  %v2144_v7 = vadd.f32 %v4522_v62, %v2122_v4 }
 0x3e9   :  { %v2020_v9 = vpop.f32.mrf.mxu0  ;;  %v2133_v45 = vld [vmem:[#allocation3 + $0x70] sm:$0xff]  ;;  %v1806_v55 = vld [vmem:[#allocation3 + $0xa8] sm:$0xff] }
 0x3ea   :  { %1847 = vst.msk [vmem:[#allocation3 + $0x90] sm:$0xff] %vm56_vm0, %v1825_v6  ;;  %2166 = vst.msk [vmem:[#allocation3 + $0x18] sm:$0xff] %vm56_vm0, %v2144_v7  ;;  %v2143_v17 = vadd.f32 %v2121_v60, %v2020_v9 }
 0x3eb   :  { %v4525_v51 = vpop.f32.mrf.mxu0  ;;  %v2136_v50 = vld [vmem:[#allocation3 + $0x88] sm:$0xff]  ;;  %v1805_v8 = vld [vmem:[#allocation3 + $0xa0] sm:$0xff] }
 0x3ec   :  { %2165 = vst.msk [vmem:[#allocation3 + $0x10] sm:$0xff] %vm56_vm0, %v2143_v17  ;;  %v2146_v33 = vadd.f32 %v4525_v51, %v2124_v47 }
 0x3ed   :  { %v2030_v11 = vpop.f32.mrf.mxu0  ;;  %v2135_v2 = vld [vmem:[#allocation3 + $0x80] sm:$0xff]  ;;  %v2454_v16 = vld [vmem:[#allocation3 + $0x8] sm:$0xff] }
 0x3ee   :  { %2168 = vst.msk [vmem:[#allocation3 + $0x28] sm:$0xff] %vm56_vm0, %v2146_v33  ;;  %v2145_v34 = vadd.f32 %v2123_v20, %v2030_v11 }
 0x3ef   :  { %v4528_v40 = vpop.f32.mrf.mxu0  ;;  %v2138_v0 = vld [vmem:[#allocation3 + $0x98] sm:$0xff]  ;;  %v2453_v6 = vld [vmem:[#allocation3] sm:$0xff] }
 0x3f0   :  { %2167 = vst.msk [vmem:[#allocation3 + $0x20] sm:$0xff] %vm56_vm0, %v2145_v34  ;;  %v2148_v37 = vadd.f32 %v4528_v40, %v2126_v10 }
 0x3f1   :  { %v2040_v38 = vpop.f32.mrf.mxu0  ;;  %v2137_v57 = vld [vmem:[#allocation3 + $0x90] sm:$0xff]  ;;  %v2456_v60 = vld [vmem:[#allocation3 + $0x18] sm:$0xff] }
 0x3f2   :  { %2170 = vst.msk [vmem:[#allocation3 + $0x38] sm:$0xff] %vm56_vm0, %v2148_v37  ;;  %v2147_v42 = vadd.f32 %v2125_v3, %v2040_v38 }
 0x3f3   :  { %v4531_v63 = vpop.f32.mrf.mxu0  ;;  %v2455_v47 = vld [vmem:[#allocation3 + $0x10] sm:$0xff] }
 0x3f4   :  { %2169 = vst.msk [vmem:[#allocation3 + $0x30] sm:$0xff] %vm56_vm0, %v2147_v42  ;;  %v2150_v12 = vadd.f32 %v4531_v63, %v2128_v5 }
 0x3f5   :  { %v2050_v15 = vpop.f32.mrf.mxu0  ;;  %v2458_v20 = vld [vmem:[#allocation3 + $0x28] sm:$0xff] }
 0x3f6   :  { %2172 = vst.msk [vmem:[#allocation3 + $0x48] sm:$0xff] %vm56_vm0, %v2150_v12  ;;  %v2149_v21 = vadd.f32 %v2127_v18, %v2050_v15 }
 0x3f7   :  { %v4534_v22 = vpop.f32.mrf.mxu0  ;;  %v2457_v10 = vld [vmem:[#allocation3 + $0x20] sm:$0xff] }
 0x3f8   :  { %2171 = vst.msk [vmem:[#allocation3 + $0x40] sm:$0xff] %vm56_vm0, %v2149_v21  ;;  %v2152_v24 = vadd.f32 %v4534_v22, %v2130_v36 }
 0x3f9   :  { %v2060_v23 = vpop.f32.mrf.mxu0  ;;  %v2460_v3 = vld [vmem:[#allocation3 + $0x38] sm:$0xff] }
 0x3fa   :  { %2174 = vst.msk [vmem:[#allocation3 + $0x58] sm:$0xff] %vm56_vm0, %v2152_v24  ;;  %v2151_v26 = vadd.f32 %v2129_v56, %v2060_v23 }
 0x3fb   :  { %v4537_v28 = vpop.f32.mrf.mxu0  ;;  %v2459_v5 = vld [vmem:[#allocation3 + $0x30] sm:$0xff] }
 0x3fc   :  { %2173 = vst.msk [vmem:[#allocation3 + $0x50] sm:$0xff] %vm56_vm0, %v2151_v26  ;;  %v2154_v25 = vadd.f32 %v4537_v28, %v2132_v29 }
 0x3fd   :  { %v2070_v31 = vpop.f32.mrf.mxu0  ;;  %v2462_v18 = vld [vmem:[#allocation3 + $0x48] sm:$0xff] }
 0x3fe   :  { %2176 = vst.msk [vmem:[#allocation3 + $0x68] sm:$0xff] %vm56_vm0, %v2154_v25  ;;  %v2153_v32 = vadd.f32 %v2131_v61, %v2070_v31 }
 0x3ff   :  { %v4540_v41 = vpop.f32.mrf.mxu0  ;;  %v2461_v36 = vld [vmem:[#allocation3 + $0x40] sm:$0xff] }
 0x400   :  { %2175 = vst.msk [vmem:[#allocation3 + $0x60] sm:$0xff] %vm56_vm0, %v2153_v32  ;;  %v2156_v44 = vadd.f32 %v4540_v41, %v2134_v43 }
 0x401   :  { %v2080_v30 = vpop.f32.mrf.mxu0  ;;  %v2464_v56 = vld [vmem:[#allocation3 + $0x58] sm:$0xff] }
 0x402   :  { %2178 = vst.msk [vmem:[#allocation3 + $0x78] sm:$0xff] %vm56_vm0, %v2156_v44  ;;  %v2155_v48 = vadd.f32 %v2133_v45, %v2080_v30 }
 0x403   :  { %v4543_v53 = vpop.f32.mrf.mxu0  ;;  %v2463_v29 = vld [vmem:[#allocation3 + $0x50] sm:$0xff] }
 0x404   :  { %2177 = vst.msk [vmem:[#allocation3 + $0x70] sm:$0xff] %vm56_vm0, %v2155_v48  ;;  %v2158_v49 = vadd.f32 %v4543_v53, %v2136_v50 }
 0x405   :  { %v2090_v27 = vpop.f32.mrf.mxu0  ;;  %v2466_v61 = vld [vmem:[#allocation3 + $0x68] sm:$0xff] }
 0x406   :  { %2180 = vst.msk [vmem:[#allocation3 + $0x88] sm:$0xff] %vm56_vm0, %v2158_v49  ;;  %v2157_v54 = vadd.f32 %v2135_v2, %v2090_v27 }
 0x407   :  { %v4546_v46 = vpop.f32.mrf.mxu0  ;;  %v2465_v43 = vld [vmem:[#allocation3 + $0x60] sm:$0xff] }
 0x408   :  { %2179 = vst.msk [vmem:[#allocation3 + $0x80] sm:$0xff] %vm56_vm0, %v2157_v54  ;;  %v2160_v14 = vadd.f32 %v4546_v46, %v2138_v0  ;;  %v4508_v19 = vpop.f32.mrf.mxu1 }
 0x409   :  { %v2100_v13 = vpop.f32.mrf.mxu0  ;;  %v1828_v39 = vadd.f32 %v4508_v19, %v1806_v55  ;;  %v2468_v45 = vld [vmem:[#allocation3 + $0x78] sm:$0xff] }
 0x40a   :  { %2182 = vst.msk [vmem:[#allocation3 + $0x98] sm:$0xff] %vm56_vm0, %v2160_v14  ;;  %v2159_v58 = vadd.f32 %v2137_v57, %v2100_v13  ;;  %v1776_v59 = vpop.f32.mrf.mxu1 }
 0x40b   :  { %1850 = vst.msk [vmem:[#allocation3 + $0xa8] sm:$0xff] %vm56_vm0, %v1828_v39  ;;  %v1827_v52 = vadd.f32 %v1805_v8, %v1776_v59  ;;  %v2467_v50 = vld [vmem:[#allocation3 + $0x70] sm:$0xff] }
 0x40c   :  { %2181 = vst.msk [vmem:[#allocation3 + $0x90] sm:$0xff] %vm56_vm0, %v2159_v58  ;;  %v4560_v35 = vpop.f32.mrf.mxu1 }
 0x40d   :  { %1849 = vst.msk [vmem:[#allocation3 + $0xa0] sm:$0xff] %vm56_vm0, %v1827_v52  ;;  %v2476_v62 = vadd.f32 %v4560_v35, %v2454_v16  ;;  %v2470_v2 = vld [vmem:[#allocation3 + $0x88] sm:$0xff] }
 0x40e   :  { %v2344_v4 = vpop.f32.mrf.mxu1 }
 0x40f   :  { %2498 = vst.msk [vmem:[#allocation3 + $0x8] sm:$0xff] %vm56_vm0, %v2476_v62  ;;  %v2475_v7 = vadd.f32 %v2453_v6, %v2344_v4  ;;  %v2469_v0 = vld [vmem:[#allocation3 + $0x80] sm:$0xff] }
 0x410   :  { %v4563_v9 = vpop.f32.mrf.mxu1 }
 0x411   :  { %2497 = vst.msk [vmem:[#allocation3] sm:$0xff] %vm56_vm0, %v2475_v7  ;;  %v2478_v17 = vadd.f32 %v4563_v9, %v2456_v60  ;;  %v2472_v55 = vld [vmem:[#allocation3 + $0x98] sm:$0xff] }
 0x412   :  { %v2354_v51 = vpop.f32.mrf.mxu1  ;;  %v2140_v8 = vld [vmem:[#allocation3 + $0xa8] sm:$0xff] }
 0x413   :  { %2500 = vst.msk [vmem:[#allocation3 + $0x18] sm:$0xff] %vm56_vm0, %v2478_v17  ;;  %v2477_v33 = vadd.f32 %v2455_v47, %v2354_v51  ;;  %v2471_v39 = vld [vmem:[#allocation3 + $0x90] sm:$0xff] }
 0x414   :  { %v4566_v11 = vpop.f32.mrf.mxu1  ;;  %v2139_v62 = vld [vmem:[#allocation3 + $0xa0] sm:$0xff] }
 0x415   :  { %2499 = vst.msk [vmem:[#allocation3 + $0x10] sm:$0xff] %vm56_vm0, %v2477_v33  ;;  %v2480_v34 = vadd.f32 %v4566_v11, %v2458_v20 }
 0x416   :  { %v2364_v40 = vpop.f32.mrf.mxu1  ;;  %v2788_v9 = vld [vmem:[#allocation3 + $0x8] sm:$0xff] }
 0x417   :  { %2502 = vst.msk [vmem:[#allocation3 + $0x28] sm:$0xff] %vm56_vm0, %v2480_v34  ;;  %v2479_v37 = vadd.f32 %v2457_v10, %v2364_v40 }
 0x418   :  { %v4569_v38 = vpop.f32.mrf.mxu1  ;;  %v2787_v47 = vld [vmem:[#allocation3] sm:$0xff] }
 0x419   :  { %2501 = vst.msk [vmem:[#allocation3 + $0x20] sm:$0xff] %vm56_vm0, %v2479_v37  ;;  %v2482_v42 = vadd.f32 %v4569_v38, %v2460_v3 }
 0x41a   :  { %v2374_v63 = vpop.f32.mrf.mxu1  ;;  %v2790_v34 = vld [vmem:[#allocation3 + $0x18] sm:$0xff] }
 0x41b   :  { %2504 = vst.msk [vmem:[#allocation3 + $0x38] sm:$0xff] %vm56_vm0, %v2482_v42  ;;  %v2481_v12 = vadd.f32 %v2459_v5, %v2374_v63 }
 0x41c   :  { %v4572_v15 = vpop.f32.mrf.mxu1  ;;  %v2789_v3 = vld [vmem:[#allocation3 + $0x10] sm:$0xff] }
 0x41d   :  { %2503 = vst.msk [vmem:[#allocation3 + $0x30] sm:$0xff] %vm56_vm0, %v2481_v12  ;;  %v2484_v21 = vadd.f32 %v4572_v15, %v2462_v18 }
 0x41e   :  { %v2384_v22 = vpop.f32.mrf.mxu1  ;;  %v2792_v18 = vld [vmem:[#allocation3 + $0x28] sm:$0xff] }
 0x41f   :  { %2506 = vst.msk [vmem:[#allocation3 + $0x48] sm:$0xff] %vm56_vm0, %v2484_v21  ;;  %v2483_v24 = vadd.f32 %v2461_v36, %v2384_v22 }
 0x420   :  { %v4575_v23 = vpop.f32.mrf.mxu1 }
 0x421   :  { %2505 = vst.msk [vmem:[#allocation3 + $0x40] sm:$0xff] %vm56_vm0, %v2483_v24  ;;  %v2486_v26 = vadd.f32 %v4575_v23, %v2464_v56  ;;  %v2791_v56 = vld [vmem:[#allocation3 + $0x20] sm:$0xff] }
 0x422   :  { %v2394_v28 = vpop.f32.mrf.mxu1 }
 0x423   :  { %2508 = vst.msk [vmem:[#allocation3 + $0x58] sm:$0xff] %vm56_vm0, %v2486_v26  ;;  %v2485_v25 = vadd.f32 %v2463_v29, %v2394_v28 }
 0x424   :  { %v4578_v31 = vpop.f32.mrf.mxu1 }
 0x425   :  { %2507 = vst.msk [vmem:[#allocation3 + $0x50] sm:$0xff] %vm56_vm0, %v2485_v25  ;;  %v2488_v32 = vadd.f32 %v4578_v31, %v2466_v61  ;;  %v2794_v61 = vld [vmem:[#allocation3 + $0x38] sm:$0xff] }
 0x426   :  { %v2404_v41 = vpop.f32.mrf.mxu1 }
 0x427   :  { %2510 = vst.msk [vmem:[#allocation3 + $0x68] sm:$0xff] %vm56_vm0, %v2488_v32  ;;  %v2487_v44 = vadd.f32 %v2465_v43, %v2404_v41 }
 0x428   :  { %v4581_v30 = vpop.f32.mrf.mxu1 }
 0x429   :  { %2509 = vst.msk [vmem:[#allocation3 + $0x60] sm:$0xff] %vm56_vm0, %v2487_v44  ;;  %v2490_v48 = vadd.f32 %v4581_v30, %v2468_v45  ;;  %v2793_v45 = vld [vmem:[#allocation3 + $0x30] sm:$0xff] }
 0x42a   :  { %v2414_v53 = vpop.f32.mrf.mxu1 }
 0x42b   :  { %2512 = vst.msk [vmem:[#allocation3 + $0x78] sm:$0xff] %vm56_vm0, %v2490_v48  ;;  %v2489_v49 = vadd.f32 %v2467_v50, %v2414_v53 }
 0x42c   :  { %v4584_v27 = vpop.f32.mrf.mxu1 }
 0x42d   :  { %2511 = vst.msk [vmem:[#allocation3 + $0x70] sm:$0xff] %vm56_vm0, %v2489_v49  ;;  %v2492_v54 = vadd.f32 %v4584_v27, %v2470_v2  ;;  %v2796_v2 = vld [vmem:[#allocation3 + $0x48] sm:$0xff] }
 0x42e   :  { %v2424_v46 = vpop.f32.mrf.mxu1 }
 0x42f   :  { %2514 = vst.msk [vmem:[#allocation3 + $0x88] sm:$0xff] %vm56_vm0, %v2492_v54  ;;  %v2491_v14 = vadd.f32 %v2469_v0, %v2424_v46 }
 0x430   :  { %v4587_v19 = vpop.f32.mrf.mxu1 }
 0x431   :  { %2513 = vst.msk [vmem:[#allocation3 + $0x80] sm:$0xff] %vm56_vm0, %v2491_v14  ;;  %v2494_v13 = vadd.f32 %v4587_v19, %v2472_v55  ;;  %v2795_v55 = vld [vmem:[#allocation3 + $0x40] sm:$0xff] }
 0x432   :  { %v2434_v57 = vpop.f32.mrf.mxu1 }
 0x433   :  { %2516 = vst.msk [vmem:[#allocation3 + $0x98] sm:$0xff] %vm56_vm0, %v2494_v13  ;;  %v2493_v58 = vadd.f32 %v2471_v39, %v2434_v57 }
 0x435   :  { %v4549_v59 = vpop.f32.mrf.mxu0  ;;  %2515 = vst.msk [vmem:[#allocation3 + $0x90] sm:$0xff] %vm56_vm0, %v2493_v58 }
 0x436   :  { %v2162_v52 = vadd.f32 %v4549_v59, %v2140_v8  ;;  %v4590_v35 = vpop.f32.mrf.mxu1  ;;  %v2798_v8 = vld [vmem:[#allocation3 + $0x58] sm:$0xff] }
 0x437   :  { %v2110_v16 = vpop.f32.mrf.mxu0 }
 0x438   :  { %2184 = vst.msk [vmem:[#allocation3 + $0xa8] sm:$0xff] %vm56_vm0, %v2162_v52  ;;  %v2161_v4 = vadd.f32 %v2139_v62, %v2110_v16  ;;  %v2444_v6 = vpop.f32.mrf.mxu1 }
 0x439   :  { %v4601_v7 = vpop.f32.mrf.mxu0 }
 0x43a   :  { %2183 = vst.msk [vmem:[#allocation3 + $0xa0] sm:$0xff] %vm56_vm0, %v2161_v4  ;;  %v2810_v60 = vadd.f32 %v4601_v7, %v2788_v9 }
 0x43b   :  { %v4642_v17 = vpop.f32.mrf.mxu1  ;;  %v2678_v51 = vpop.f32.mrf.mxu0 }
 0x43c   :  { %2832 = vst.msk [vmem:[#allocation3 + $0x8] sm:$0xff] %vm56_vm0, %v2810_v60  ;;  %v2809_v33 = vadd.f32 %v2787_v47, %v2678_v51  ;;  %v2800_v47 = vld [vmem:[#allocation3 + $0x68] sm:$0xff] }
 0x43d   :  { %v3012_v11 = vpop.f32.mrf.mxu1  ;;  %v4604_v20 = vpop.f32.mrf.mxu0 }
 0x43e   :  { %2831 = vst.msk [vmem:[#allocation3] sm:$0xff] %vm56_vm0, %v2809_v33  ;;  %v2812_v40 = vadd.f32 %v4604_v20, %v2790_v34 }
 0x43f   :  { %v2474_v10 = vld [vmem:[#allocation3 + $0xa8] sm:$0xff]  ;;  %v4645_v37 = vpop.f32.mrf.mxu1  ;;  %v2688_v38 = vpop.f32.mrf.mxu0 }
 0x440   :  { %v2496_v42 = vadd.f32 %v4590_v35, %v2474_v10  ;;  %2834 = vst.msk [vmem:[#allocation3 + $0x18] sm:$0xff] %vm56_vm0, %v2812_v40  ;;  %v2811_v63 = vadd.f32 %v2789_v3, %v2688_v38  ;;  %v2799_v10 = vld [vmem:[#allocation3 + $0x60] sm:$0xff] }
 0x441   :  { %v2473_v5 = vld [vmem:[#allocation3 + $0xa0] sm:$0xff]  ;;  %v3022_v12 = vpop.f32.mrf.mxu1  ;;  %v4607_v15 = vpop.f32.mrf.mxu0 }
 0x442   :  { %2518 = vst.msk [vmem:[#allocation3 + $0xa8] sm:$0xff] %vm56_vm0, %v2496_v42  ;;  %v2495_v21 = vadd.f32 %v2473_v5, %v2444_v6  ;;  %2833 = vst.msk [vmem:[#allocation3 + $0x10] sm:$0xff] %vm56_vm0, %v2811_v63  ;;  %v2814_v22 = vadd.f32 %v4607_v15, %v2792_v18  ;;  %v2797_v6 = vld [vmem:[#allocation3 + $0x50] sm:$0xff]  ;;  %v2802_v5 = vld [vmem:[#allocation3 + $0x78] sm:$0xff] }
 0x443   :  { %v3122_v36 = vld [vmem:[#allocation3 + $0x8] sm:$0xff]  ;;  %v4648_v24 = vpop.f32.mrf.mxu1  ;;  %v2698_v23 = vpop.f32.mrf.mxu0 }
 0x444   :  { %2517 = vst.msk [vmem:[#allocation3 + $0xa0] sm:$0xff] %vm56_vm0, %v2495_v21  ;;  %v3144_v26 = vadd.f32 %v4642_v17, %v3122_v36  ;;  %2836 = vst.msk [vmem:[#allocation3 + $0x28] sm:$0xff] %vm56_vm0, %v2814_v22  ;;  %v2813_v28 = vadd.f32 %v2791_v56, %v2698_v23  ;;  %v2801_v36 = vld [vmem:[#allocation3 + $0x70] sm:$0xff] }
 0x445   :  { %v3121_v29 = vld [vmem:[#allocation3] sm:$0xff]  ;;  %v3032_v25 = vpop.f32.mrf.mxu1  ;;  %v4610_v31 = vpop.f32.mrf.mxu0 }
 0x446   :  { %3166 = vst.msk [vmem:[#allocation3 + $0x8] sm:$0xff] %vm56_vm0, %v3144_v26  ;;  %v3143_v32 = vadd.f32 %v3121_v29, %v3012_v11  ;;  %2835 = vst.msk [vmem:[#allocation3 + $0x20] sm:$0xff] %vm56_vm0, %v2813_v28  ;;  %v2816_v41 = vadd.f32 %v4610_v31, %v2794_v61  ;;  %v2804_v29 = vld [vmem:[#allocation3 + $0x88] sm:$0xff] }
 0x447   :  { %v3124_v43 = vld [vmem:[#allocation3 + $0x18] sm:$0xff]  ;;  %v4651_v44 = vpop.f32.mrf.mxu1  ;;  %v2708_v30 = vpop.f32.mrf.mxu0 }
 0x448   :  { %3165 = vst.msk [vmem:[#allocation3] sm:$0xff] %vm56_vm0, %v3143_v32  ;;  %v3146_v48 = vadd.f32 %v4645_v37, %v3124_v43  ;;  %2838 = vst.msk [vmem:[#allocation3 + $0x38] sm:$0xff] %vm56_vm0, %v2816_v41  ;;  %v2815_v53 = vadd.f32 %v2793_v45, %v2708_v30  ;;  %v2803_v41 = vld [vmem:[#allocation3 + $0x80] sm:$0xff] }
 0x449   :  { %v3123_v50 = vld [vmem:[#allocation3 + $0x10] sm:$0xff]  ;;  %v3042_v49 = vpop.f32.mrf.mxu1  ;;  %v4613_v27 = vpop.f32.mrf.mxu0 }
 0x44a   :  { %3168 = vst.msk [vmem:[#allocation3 + $0x18] sm:$0xff] %vm56_vm0, %v3146_v48  ;;  %v3145_v54 = vadd.f32 %v3123_v50, %v3022_v12  ;;  %2837 = vst.msk [vmem:[#allocation3 + $0x30] sm:$0xff] %vm56_vm0, %v2815_v53  ;;  %v2818_v46 = vadd.f32 %v4613_v27, %v2796_v2  ;;  %v2806_v53 = vld [vmem:[#allocation3 + $0x98] sm:$0xff] }
 0x44b   :  { %v3126_v0 = vld [vmem:[#allocation3 + $0x28] sm:$0xff]  ;;  %v4654_v14 = vpop.f32.mrf.mxu1  ;;  %v2718_v19 = vpop.f32.mrf.mxu0 }
 0x44c   :  { %3167 = vst.msk [vmem:[#allocation3 + $0x10] sm:$0xff] %vm56_vm0, %v3145_v54  ;;  %v3148_v13 = vadd.f32 %v4648_v24, %v3126_v0  ;;  %2840 = vst.msk [vmem:[#allocation3 + $0x48] sm:$0xff] %vm56_vm0, %v2818_v46  ;;  %v2817_v57 = vadd.f32 %v2795_v55, %v2718_v19  ;;  %v2805_v46 = vld [vmem:[#allocation3 + $0x90] sm:$0xff] }
 0x44d   :  { %v3125_v39 = vld [vmem:[#allocation3 + $0x20] sm:$0xff]  ;;  %v3052_v58 = vpop.f32.mrf.mxu1  ;;  %v4616_v59 = vpop.f32.mrf.mxu0 }
 0x44e   :  { %3170 = vst.msk [vmem:[#allocation3 + $0x28] sm:$0xff] %vm56_vm0, %v3148_v13  ;;  %v3147_v52 = vadd.f32 %v3125_v39, %v3032_v25  ;;  %2839 = vst.msk [vmem:[#allocation3 + $0x40] sm:$0xff] %vm56_vm0, %v2817_v57  ;;  %v2820_v35 = vadd.f32 %v4616_v59, %v2798_v8  ;;  %v2808_v57 = vld [vmem:[#allocation3 + $0xa8] sm:$0xff]  ;;  %v2807_v8 = vld [vmem:[#allocation3 + $0xa0] sm:$0xff] }
 0x44f   :  { %v3128_v16 = vld [vmem:[#allocation3 + $0x38] sm:$0xff]  ;;  %v4657_v62 = vpop.f32.mrf.mxu1  ;;  %v2728_v4 = vpop.f32.mrf.mxu0 }
 0x450   :  { %3169 = vst.msk [vmem:[#allocation3 + $0x20] sm:$0xff] %vm56_vm0, %v3147_v52  ;;  %v3150_v7 = vadd.f32 %v4651_v44, %v3128_v16  ;;  %2842 = vst.msk [vmem:[#allocation3 + $0x58] sm:$0xff] %vm56_vm0, %v2820_v35  ;;  %v2819_v9 = vadd.f32 %v2797_v6, %v2728_v4 }
 0x451   :  { %v3127_v60 = vld [vmem:[#allocation3 + $0x30] sm:$0xff]  ;;  %v3062_v17 = vpop.f32.mrf.mxu1  ;;  %v4619_v51 = vpop.f32.mrf.mxu0 }
 0x452   :  { %3172 = vst.msk [vmem:[#allocation3 + $0x38] sm:$0xff] %vm56_vm0, %v3150_v7  ;;  %v3149_v33 = vadd.f32 %v3127_v60, %v3042_v49  ;;  %2841 = vst.msk [vmem:[#allocation3 + $0x50] sm:$0xff] %vm56_vm0, %v2819_v9  ;;  %v2822_v11 = vadd.f32 %v4619_v51, %v2800_v47  ;;  %v3456_v7 = vld [vmem:[#allocation3 + $0x8] sm:$0xff]  ;;  %v3455_v47 = vld [vmem:[#allocation3] sm:$0xff] }
 0x453   :  { %v3130_v20 = vld [vmem:[#allocation3 + $0x48] sm:$0xff]  ;;  %v4660_v34 = vpop.f32.mrf.mxu1  ;;  %v2738_v40 = vpop.f32.mrf.mxu0 }
 0x454   :  { %3171 = vst.msk [vmem:[#allocation3 + $0x30] sm:$0xff] %vm56_vm0, %v3149_v33  ;;  %v3152_v37 = vadd.f32 %v4654_v14, %v3130_v20  ;;  %2844 = vst.msk [vmem:[#allocation3 + $0x68] sm:$0xff] %vm56_vm0, %v2822_v11  ;;  %v2821_v38 = vadd.f32 %v2799_v10, %v2738_v40  ;;  %v3458_v10 = vld [vmem:[#allocation3 + $0x18] sm:$0xff] }
 0x455   :  { %v3129_v3 = vld [vmem:[#allocation3 + $0x40] sm:$0xff]  ;;  %v3072_v42 = vpop.f32.mrf.mxu1  ;;  %v4622_v63 = vpop.f32.mrf.mxu0 }
 0x456   :  { %3174 = vst.msk [vmem:[#allocation3 + $0x48] sm:$0xff] %vm56_vm0, %v3152_v37  ;;  %v3151_v12 = vadd.f32 %v3129_v3, %v3052_v58  ;;  %2843 = vst.msk [vmem:[#allocation3 + $0x60] sm:$0xff] %vm56_vm0, %v2821_v38  ;;  %v2824_v15 = vadd.f32 %v4622_v63, %v2802_v5  ;;  %v3457_v63 = vld [vmem:[#allocation3 + $0x10] sm:$0xff] }
 0x457   :  { %v3132_v18 = vld [vmem:[#allocation3 + $0x58] sm:$0xff]  ;;  %v4663_v21 = vpop.f32.mrf.mxu1  ;;  %v2748_v22 = vpop.f32.mrf.mxu0 }
 0x458   :  { %3173 = vst.msk [vmem:[#allocation3 + $0x40] sm:$0xff] %vm56_vm0, %v3151_v12  ;;  %v3154_v24 = vadd.f32 %v4657_v62, %v3132_v18  ;;  %2846 = vst.msk [vmem:[#allocation3 + $0x78] sm:$0xff] %vm56_vm0, %v2824_v15  ;;  %v2823_v23 = vadd.f32 %v2801_v36, %v2748_v22  ;;  %v3460_v22 = vld [vmem:[#allocation3 + $0x28] sm:$0xff] }
 0x459   :  { %v3131_v56 = vld [vmem:[#allocation3 + $0x50] sm:$0xff]  ;;  %v3082_v26 = vpop.f32.mrf.mxu1  ;;  %v4625_v28 = vpop.f32.mrf.mxu0 }
 0x45a   :  { %3176 = vst.msk [vmem:[#allocation3 + $0x58] sm:$0xff] %vm56_vm0, %v3154_v24  ;;  %v3153_v25 = vadd.f32 %v3131_v56, %v3062_v17  ;;  %2845 = vst.msk [vmem:[#allocation3 + $0x70] sm:$0xff] %vm56_vm0, %v2823_v23  ;;  %v2826_v31 = vadd.f32 %v4625_v28, %v2804_v29  ;;  %v3459_v56 = vld [vmem:[#allocation3 + $0x20] sm:$0xff]  ;;  %v3462_v29 = vld [vmem:[#allocation3 + $0x38] sm:$0xff] }
 0x45b   :  { %v3134_v61 = vld [vmem:[#allocation3 + $0x68] sm:$0xff]  ;;  %v2758_v32 = vpop.f32.mrf.mxu0  ;;  %v4666_v43 = vpop.f32.mrf.mxu1 }
 0x45c   :  { %3175 = vst.msk [vmem:[#allocation3 + $0x50] sm:$0xff] %vm56_vm0, %v3153_v25  ;;  %v3156_v44 = vadd.f32 %v4660_v34, %v3134_v61  ;;  %2848 = vst.msk [vmem:[#allocation3 + $0x88] sm:$0xff] %vm56_vm0, %v2826_v31  ;;  %v2825_v30 = vadd.f32 %v2803_v41, %v2758_v32  ;;  %v3461_v61 = vld [vmem:[#allocation3 + $0x30] sm:$0xff] }
 0x45d   :  { %v3133_v45 = vld [vmem:[#allocation3 + $0x60] sm:$0xff]  ;;  %v4628_v48 = vpop.f32.mrf.mxu0  ;;  %v3092_v50 = vpop.f32.mrf.mxu1 }
 0x45e   :  { %3178 = vst.msk [vmem:[#allocation3 + $0x68] sm:$0xff] %vm56_vm0, %v3156_v44  ;;  %v3155_v49 = vadd.f32 %v3133_v45, %v3072_v42  ;;  %2847 = vst.msk [vmem:[#allocation3 + $0x80] sm:$0xff] %vm56_vm0, %v2825_v30  ;;  %v2828_v27 = vadd.f32 %v4628_v48, %v2806_v53 }
 0x45f   :  { %v3136_v2 = vld [vmem:[#allocation3 + $0x78] sm:$0xff]  ;;  %v2768_v54 = vpop.f32.mrf.mxu0  ;;  %v4669_v0 = vpop.f32.mrf.mxu1  ;;  %v3463_v45 = vld [vmem:[#allocation3 + $0x40] sm:$0xff] }
 0x460   :  { %3177 = vst.msk [vmem:[#allocation3 + $0x60] sm:$0xff] %vm56_vm0, %v3155_v49  ;;  %v3158_v14 = vadd.f32 %v4663_v21, %v3136_v2  ;;  %2850 = vst.msk [vmem:[#allocation3 + $0x98] sm:$0xff] %vm56_vm0, %v2828_v27  ;;  %v2827_v19 = vadd.f32 %v2805_v46, %v2768_v54 }
 0x461   :  { %v3135_v55 = vld [vmem:[#allocation3 + $0x70] sm:$0xff]  ;;  %v4631_v13 = vpop.f32.mrf.mxu0  ;;  %v3102_v35 = vpop.f32.mrf.mxu1 }
 0x462   :  { %3180 = vst.msk [vmem:[#allocation3 + $0x78] sm:$0xff] %vm56_vm0, %v3158_v14  ;;  %v3157_v39 = vadd.f32 %v3135_v55, %v3082_v26  ;;  %2849 = vst.msk [vmem:[#allocation3 + $0x90] sm:$0xff] %vm56_vm0, %v2827_v19  ;;  %v2830_v58 = vadd.f32 %v4631_v13, %v2808_v57 }
 0x463   :  { %v2778_v59 = vpop.f32.mrf.mxu0  ;;  %v3138_v52 = vld [vmem:[#allocation3 + $0x88] sm:$0xff]  ;;  %v4672_v33 = vpop.f32.mrf.mxu1  ;;  %v3465_v2 = vld [vmem:[#allocation3 + $0x50] sm:$0xff] }
 0x464   :  { %3179 = vst.msk [vmem:[#allocation3 + $0x70] sm:$0xff] %vm56_vm0, %v3157_v39  ;;  %2852 = vst.msk [vmem:[#allocation3 + $0xa8] sm:$0xff] %vm56_vm0, %v2830_v58  ;;  %v2829_v16 = vadd.f32 %v2807_v8, %v2778_v59  ;;  %v3160_v62 = vadd.f32 %v4666_v43, %v3138_v52  ;;  %v3464_v43 = vld [vmem:[#allocation3 + $0x48] sm:$0xff] }
 0x465   :  { %v3137_v4 = vld [vmem:[#allocation3 + $0x80] sm:$0xff]  ;;  %v4683_v6 = vpop.f32.mrf.mxu0  ;;  %v3112_v5 = vpop.f32.mrf.mxu1 }
 0x466   :  { %2851 = vst.msk [vmem:[#allocation3 + $0xa0] sm:$0xff] %vm56_vm0, %v2829_v16  ;;  %3182 = vst.msk [vmem:[#allocation3 + $0x88] sm:$0xff] %vm56_vm0, %v3160_v62  ;;  %v3159_v9 = vadd.f32 %v3137_v4, %v3092_v50  ;;  %v3478_v60 = vadd.f32 %v4683_v6, %v3456_v7  ;;  %v3466_v50 = vld [vmem:[#allocation3 + $0x58] sm:$0xff] }
 0x467   :  { %v3140_v17 = vld [vmem:[#allocation3 + $0x98] sm:$0xff]  ;;  %v3346_v51 = vpop.f32.mrf.mxu0  ;;  %v3467_v55 = vld [vmem:[#allocation3 + $0x60] sm:$0xff] }
 0x468   :  { %3181 = vst.msk [vmem:[#allocation3 + $0x80] sm:$0xff] %vm56_vm0, %v3159_v9  ;;  %3500 = vst.msk [vmem:[#allocation3 + $0x8] sm:$0xff] %vm56_vm0, %v3478_v60  ;;  %v3162_v11 = vadd.f32 %v4669_v0, %v3140_v17  ;;  %v3477_v20 = vadd.f32 %v3455_v47, %v3346_v51  ;;  %v3468_v0 = vld [vmem:[#allocation3 + $0x68] sm:$0xff] }
 0x469   :  { %v3139_v34 = vld [vmem:[#allocation3 + $0x90] sm:$0xff]  ;;  %v4686_v40 = vpop.f32.mrf.mxu0  ;;  %v3470_v39 = vld [vmem:[#allocation3 + $0x78] sm:$0xff] }
 0x46a   :  { %3184 = vst.msk [vmem:[#allocation3 + $0x98] sm:$0xff] %vm56_vm0, %v3162_v11  ;;  %3499 = vst.msk [vmem:[#allocation3] sm:$0xff] %vm56_vm0, %v3477_v20  ;;  %v3161_v37 = vadd.f32 %v3139_v34, %v3102_v35  ;;  %v3480_v38 = vadd.f32 %v4686_v40, %v3458_v10 }
 0x46b   :  { %v3142_v3 = vld [vmem:[#allocation3 + $0xa8] sm:$0xff]  ;;  %v3356_v42 = vpop.f32.mrf.mxu0  ;;  %v3469_v8 = vld [vmem:[#allocation3 + $0x70] sm:$0xff] }
 0x46c   :  { %3183 = vst.msk [vmem:[#allocation3 + $0x90] sm:$0xff] %vm56_vm0, %v3161_v37  ;;  %3502 = vst.msk [vmem:[#allocation3 + $0x18] sm:$0xff] %vm56_vm0, %v3480_v38  ;;  %v3164_v12 = vadd.f32 %v4672_v33, %v3142_v3  ;;  %v3479_v15 = vadd.f32 %v3457_v63, %v3356_v42  ;;  %v5833_v3 = vld [vmem:[%s5990_s4] ss:$0 sm:$0xff] }
 0x46d   :  { %v3141_v18 = vld [vmem:[#allocation3 + $0xa0] sm:$0xff]  ;;  %v4689_v21 = vpop.f32.mrf.mxu0  ;;  %v3472_v16 = vld [vmem:[#allocation3 + $0x88] sm:$0xff] }
 0x46e   :  { %3186 = vst.msk [vmem:[#allocation3 + $0xa8] sm:$0xff] %vm56_vm0, %v3164_v12  ;;  %3501 = vst.msk [vmem:[#allocation3 + $0x10] sm:$0xff] %vm56_vm0, %v3479_v15  ;;  %v3163_v36 = vadd.f32 %v3141_v18, %v3112_v5  ;;  %v3482_v24 = vadd.f32 %v4689_v21, %v3460_v22 }
 0x46f   :  { %v3366_v23 = vpop.f32.mrf.mxu0  ;;  %v3471_v6 = vld [vmem:[#allocation3 + $0x80] sm:$0xff] }
 0x470   :  { %3185 = vst.msk [vmem:[#allocation3 + $0xa0] sm:$0xff] %vm56_vm0, %v3163_v36  ;;  %3504 = vst.msk [vmem:[#allocation3 + $0x28] sm:$0xff] %vm56_vm0, %v3482_v24  ;;  %v3481_v26 = vadd.f32 %v3459_v56, %v3366_v23 }
 0x471   :  { %v4692_v28 = vpop.f32.mrf.mxu0  ;;  %v3474_v60 = vld [vmem:[#allocation3 + $0x98] sm:$0xff] }
 0x472   :  { %3503 = vst.msk [vmem:[#allocation3 + $0x20] sm:$0xff] %vm56_vm0, %v3481_v26  ;;  %v3484_v25 = vadd.f32 %v4692_v28, %v3462_v29 }
 0x473   :  { %v3376_v31 = vpop.f32.mrf.mxu0  ;;  %v3473_v47 = vld [vmem:[#allocation3 + $0x90] sm:$0xff] }
 0x474   :  { %3506 = vst.msk [vmem:[#allocation3 + $0x38] sm:$0xff] %vm56_vm0, %v3484_v25  ;;  %v3483_v32 = vadd.f32 %v3461_v61, %v3376_v31 }
 0x475   :  { %v4695_v41 = vpop.f32.mrf.mxu0  ;;  %v3476_v20 = vld [vmem:[#allocation3 + $0xa8] sm:$0xff] }
 0x476   :  { %3505 = vst.msk [vmem:[#allocation3 + $0x30] sm:$0xff] %vm56_vm0, %v3483_v32  ;;  %v3486_v44 = vadd.f32 %v4695_v41, %v3464_v43 }
 0x477   :  { %v3386_v30 = vpop.f32.mrf.mxu0  ;;  %v3475_v10 = vld [vmem:[#allocation3 + $0xa0] sm:$0xff] }
 0x478   :  { %3508 = vst.msk [vmem:[#allocation3 + $0x48] sm:$0xff] %vm56_vm0, %v3486_v44  ;;  %v3485_v48 = vadd.f32 %v3463_v45, %v3386_v30 }
 0x479   :  { %v4698_v53 = vpop.f32.mrf.mxu0 }
 0x47a   :  { %3507 = vst.msk [vmem:[#allocation3 + $0x40] sm:$0xff] %vm56_vm0, %v3485_v48  ;;  %v3488_v49 = vadd.f32 %v4698_v53, %v3466_v50 }
 0x47b   :  { %v3396_v27 = vpop.f32.mrf.mxu0  ;;  %v3526_v30 = vld [vmem:[#allocation3 + $0x38] sm:$0xff] }
 0x47c   :  { %3510 = vst.msk [vmem:[#allocation3 + $0x58] sm:$0xff] %vm56_vm0, %v3488_v49  ;;  %v3487_v54 = vadd.f32 %v3465_v2, %v3396_v27 }
 0x47d   :  { %v4701_v46 = vpop.f32.mrf.mxu0 }
 0x47e   :  { %3509 = vst.msk [vmem:[#allocation3 + $0x50] sm:$0xff] %vm56_vm0, %v3487_v54  ;;  %v3490_v14 = vadd.f32 %v4701_v46, %v3468_v0 }
 0x47f   :  { %v3406_v19 = vpop.f32.mrf.mxu0  ;;  %v3528_v24 = vld [vmem:[#allocation3 + $0x48] sm:$0xff] }
 0x480   :  { %3512 = vst.msk [vmem:[#allocation3 + $0x68] sm:$0xff] %vm56_vm0, %v3490_v14  ;;  %v3489_v13 = vadd.f32 %v3467_v55, %v3406_v19  ;;  %v3551_v31 = vadd.f32 %v5833_v3, %v3528_v24  ;;  %v3549_v14 = vadd.f32 %v5833_v3, %v3526_v30 }
 0x481   :  { %v4704_v57 = vpop.f32.mrf.mxu0 }
 0x482   :  { %3511 = vst.msk [vmem:[#allocation3 + $0x60] sm:$0xff] %vm56_vm0, %v3489_v13  ;;  %v3492_v58 = vadd.f32 %v4704_v57, %v3470_v39  ;;  %v3583_v0 = vmul.f32 0.2, %v3551_v31  ;;  %vm3567_vm8 = vcmp.ge.f32.partialorder %v3551_v31, 0.0  ;;  %v3524_v13 = vld [vmem:[#allocation3 + $0x18] sm:$0xff]  ;;  %vm3565_vm10 = vcmp.ge.f32.partialorder %v3549_v14, 0.0 }
 0x483   :  { %v3416_v59 = vpop.f32.mrf.mxu0 }
 0x484   :  { %3514 = vst.msk [vmem:[#allocation3 + $0x78] sm:$0xff] %vm56_vm0, %v3492_v58  ;;  %v3491_v52 = vadd.f32 %v3469_v8, %v3416_v59 }
 0x485   :  { %v4707_v35 = vpop.f32.mrf.mxu0 }
 0x486   :  { %3513 = vst.msk [vmem:[#allocation3 + $0x70] sm:$0xff] %vm56_vm0, %v3491_v52  ;;  %v3494_v62 = vadd.f32 %v4707_v35, %v3472_v16  ;;  %v3527_v52 = vld [vmem:[#allocation3 + $0x40] sm:$0xff]  ;;  %v5870_v35 = vsel %vm3567_vm8, %v3551_v31, %v3583_v0  ;;  %v3581_v16 = vmul.f32 0.2, %v3549_v14 }
 0x487   :  { %v3426_v4 = vpop.f32.mrf.mxu0  ;;  %v3530_v5 = vld [vmem:[#allocation3 + $0x68] sm:$0xff] }
 0x488   :  { %3516 = vst.msk [vmem:[#allocation3 + $0x88] sm:$0xff] %vm56_vm0, %v3494_v62  ;;  %v3493_v7 = vadd.f32 %v3471_v6, %v3426_v4  ;;  %v3553_v18 = vadd.f32 %v5833_v3, %v3530_v5  ;;  %v3547_v62 = vadd.f32 %v5833_v3, %v3524_v13 }
 0x489   :  { %v4710_v9 = vpop.f32.mrf.mxu0  ;;  %v3529_v54 = vld [vmem:[#allocation3 + $0x60] sm:$0xff] }
 0x48a   :  { %3515 = vst.msk [vmem:[#allocation3 + $0x80] sm:$0xff] %vm56_vm0, %v3493_v7  ;;  %v3496_v17 = vadd.f32 %v4710_v9, %v3474_v60  ;;  %v3585_v25 = vmul.f32 0.2, %v3553_v18  ;;  %vm3569_vm6 = vcmp.ge.f32.partialorder %v3553_v18, 0.0  ;;  %v3552_v58 = vadd.f32 %v5833_v3, %v3529_v54  ;;  %v3522_v7 = vld [vmem:[#allocation3 + $0x8] sm:$0xff] }
 0x48b   :  { %v3436_v51 = vpop.f32.mrf.mxu0  ;;  %v3532_v38 = vld [vmem:[#allocation3 + $0x78] sm:$0xff]  ;;  %vm3563_vm12 = vcmp.ge.f32.partialorder %v3547_v62, 0.0 }
 0x48c   :  { %3518 = vst.msk [vmem:[#allocation3 + $0x98] sm:$0xff] %vm56_vm0, %v3496_v17  ;;  %v3495_v33 = vadd.f32 %v3473_v47, %v3436_v51  ;;  %v3555_v63 = vadd.f32 %v5833_v3, %v3532_v38  ;;  %v5858_v46 = vsel %vm3569_vm6, %v3553_v18, %v3585_v25  ;;  %v3584_v60 = vmul.f32 0.2, %v3552_v58 }
 0x48d   :  { %v4713_v11 = vpop.f32.mrf.mxu0  ;;  %v3531_v61 = vld [vmem:[#allocation3 + $0x70] sm:$0xff]  ;;  %v3617_v8 = vmul.f32 %v5858_v46, %v5858_v46  ;;  %v3550_v17 = vadd.f32 %v5833_v3, %v3527_v52  ;;  %v3615_v47 = vmul.f32 %v5870_v35, %v5870_v35  ;;  %vm3568_vm11 = vcmp.ge.f32.partialorder %v3552_v58, 0.0 }
 0x48e   :  { %3517 = vst.msk [vmem:[#allocation3 + $0x90] sm:$0xff] %vm56_vm0, %v3495_v33  ;;  %v3498_v34 = vadd.f32 %v4713_v11, %v3476_v20  ;;  %v3587_v36 = vmul.f32 0.2, %v3555_v63  ;;  %vm3571_vm2 = vcmp.ge.f32.partialorder %v3555_v63, 0.0  ;;  %v3554_v50 = vadd.f32 %v5833_v3, %v3531_v61  ;;  %v3525_v33 = vld [vmem:[#allocation3 + $0x30] sm:$0xff] }
 0x48f   :  { %v3446_v40 = vpop.f32.mrf.mxu0  ;;  %v3651_v51 = vsel %vm56_vm0, %v3617_v8, 0.0  ;;  %v5882_v11 = vsel %vm3565_vm10, %v3549_v14, %v3581_v16  ;;  %v3579_v20 = vmul.f32 0.2, %v3547_v62  ;;  %v3582_v38 = vmul.f32 0.2, %v3550_v17 }
 0x490   :  { %3520 = vst.msk [vmem:[#allocation3 + $0xa8] sm:$0xff] %vm56_vm0, %v3498_v34  ;;  %v3497_v37 = vadd.f32 %v3475_v10, %v3446_v40  ;;  %v5844_v43 = vsel %vm3571_vm2, %v3555_v63, %v3587_v36  ;;  %v3586_v39 = vmul.f32 0.2, %v3554_v50  ;;  %vm3570_vm9 = vcmp.ge.f32.partialorder %v3554_v50, 0.0 }
 0x491   :  { %v3619_v2 = vmul.f32 %v5844_v43, %v5844_v43  ;;  %v3545_v34 = vadd.f32 %v5833_v3, %v3522_v7  ;;  %v3645_v63 = vsel %vm56_vm0, %v3615_v47, 0.0  ;;  %v3613_v5 = vmul.f32 %v5882_v11, %v5882_v11 }
 0x492   :  { %3519 = vst.msk [vmem:[#allocation3 + $0xa0] sm:$0xff] %vm56_vm0, %v3497_v37  ;;  %v5876_v9 = vsel %vm3570_vm9, %v3554_v50, %v3586_v39  ;;  %v5888_v37 = vsel %vm3568_vm11, %v3552_v58, %v3584_v60  ;;  %vm3566_vm13 = vcmp.ge.f32.partialorder %v3550_v17, 0.0  ;;  %v3737_v39 = vld [vmem:[#allocation4] sm:$0x1]  ;;  %v4879_v58 = vmov 0  }
 0x493   :  { %v3534_v42 = vld [vmem:[#allocation3 + $0x98] sm:$0xff]  ;;  %v3657_v59 = vsel %vm56_vm0, %v3619_v2, 0.0  ;;  %v3618_v10 = vmul.f32 %v5876_v9, %v5876_v9  ;;  %v3577_v18 = vmul.f32 0.2, %v3545_v34  ;;  %vm3561_vm14 = vcmp.ge.f32.partialorder %v3545_v34, 0.0  ;;  %4760 = vset.pattern.permute.xlu0 %v4879_v58 }
 0x494   :  { %v3557_v12 = vadd.f32 %v5833_v3, %v3534_v42  ;;  %v3548_v42 = vadd.f32 %v5833_v3, %v3525_v33  ;;  %v5899_v36 = vsel %vm3566_vm13, %v3550_v17, %v3582_v38 }
 0x495   :  { %v3533_v21 = vld [vmem:[#allocation3 + $0x90] sm:$0xff]  ;;  %v3614_v31 = vmul.f32 %v5899_v36, %v5899_v36 }
 0x496   :  { %v3589_v56 = vmul.f32 0.2, %v3557_v12  ;;  %v3556_v29 = vadd.f32 %v5833_v3, %v3533_v21  ;;  %vm3573_vm4 = vcmp.ge.f32.partialorder %v3557_v12, 0.0  ;;  %v3654_v21 = vsel %vm56_vm0, %v3618_v10, 0.0 }
 0x497   :  { %v3536_v15 = vld [vmem:[#allocation3 + $0xa8] sm:$0xff]  ;;  %v3580_v24 = vmul.f32 0.2, %v3548_v42  ;;  %vm3564_vm15 = vcmp.ge.f32.partialorder %v3548_v42, 0.0  ;;  %v3642_v50 = vsel %vm56_vm0, %v3614_v31, 0.0 }
 0x498   :  { %v3559_v22 = vadd.f32 %v5833_v3, %v3536_v15  ;;  %v5850_v48 = vsel %vm3573_vm4, %v3557_v12, %v3589_v56  ;;  %v3588_v53 = vmul.f32 0.2, %v3556_v29  ;;  %vm3572_vm7 = vcmp.ge.f32.partialorder %v3556_v29, 0.0  ;;  %v3523_v12 = vld [vmem:[#allocation3 + $0x10] sm:$0xff] }
 0x499   :  { %v3535_v23 = vld [vmem:[#allocation3 + $0xa0] sm:$0xff]  ;;  %v3621_v55 = vmul.f32 %v5850_v48, %v5850_v48  ;;  %v5894_v15 = vsel %vm3563_vm12, %v3547_v62, %v3579_v20  ;;  %v3639_v56 = vsel %vm56_vm0, %v3613_v5, 0.0  ;;  %v5910_v61 = vsel %vm3564_vm15, %v3548_v42, %v3580_v24 }
 0x49a   :  { %vm3575_vm3 = vcmp.ge.f32.partialorder %v3559_v22, 0.0  ;;  %v3591_v26 = vmul.f32 0.2, %v3559_v22  ;;  %v3558_v28 = vadd.f32 %v5833_v3, %v3535_v23  ;;  %v5864_v57 = vsel %vm3572_vm7, %v3556_v29, %v3588_v53 }
 0x49b   :  { %v3663_v4 = vsel %vm56_vm0, %v3621_v55, 0.0  ;;  %v3620_v6 = vmul.f32 %v5864_v57, %v5864_v57  ;;  %v3546_v23 = vadd.f32 %v5833_v3, %v3523_v12  ;;  %v5905_v29 = vsel %vm3561_vm14, %v3545_v34, %v3577_v18 }
 0x49c   :  { %v5842_v32 = vsel %vm3575_vm3, %v3559_v22, %v3591_v26  ;;  %vm3574_vm5 = vcmp.ge.f32.partialorder %v3558_v28, 0.0  ;;  %v3590_v41 = vmul.f32 0.2, %v3558_v28  ;;  %v3616_v22 = vmul.f32 %v5888_v37, %v5888_v37 }
 0x49d   :  { %v3623_v44 = vmul.f32 %v5842_v32, %v5842_v32  ;;  %v3660_v40 = vsel %vm56_vm0, %v3620_v6, 0.0  ;;  %v3611_v26 = vmul.f32 %v5894_v15, %v5894_v15  ;;  %v3609_v53 = vmul.f32 %v5905_v29, %v5905_v29 }
 0x49e   :  { %v5848_v45 = vsel %vm3574_vm5, %v3558_v28, %v3590_v41  ;;  %v3521_v28 = vld [vmem:[#allocation3] sm:$0xff]  ;;  %v3648_v25 = vsel %vm56_vm0, %v3616_v22, 0.0  ;;  %v3578_v41 = vmul.f32 0.2, %v3546_v23  ;;  %vm3562_vm1 = vcmp.ge.f32.partialorder %v3546_v23, 0.0 }
 0x49f   :  { %v3669_v49 = vsel %vm56_vm0, %v3623_v44, 0.0  ;;  %v3622_v27 = vmul.f32 %v5848_v45, %v5848_v45  ;;  %v3544_v44 = vadd.f32 %v5833_v3, %v3521_v28  ;;  %v3633_v30 = vsel %vm56_vm0, %v3611_v26, 0.0 }
 0x4a0   :  { %3670 = vadd.xlane.f32.xlu0 %v3669_v49  ;;  %v3612_v49 = vmul.f32 %v5910_v61, %v5910_v61  ;;  %v3627_v54 = vsel %vm56_vm0, %v3609_v53, 0.0  ;;  %vm4878_vm3 = vmmov 0  }
 0x4a1   :  { %v3666_v19 = vsel %vm56_vm0, %v3622_v27, 0.0  ;;  %v5919_v27 = vsel %vm3562_vm1, %v3546_v23, %v3578_v41  ;;  %v3576_v2 = vmul.f32 0.2, %v3544_v44  ;;  %vm3560_vm2 = vcmp.ge.f32.partialorder %v3544_v44, 0.0  ;;  %4746 = vmatprep.mubr.msk.f32.mxu1 %vm4878_vm3, %v4875_v1 }
 0x4a2   :  { %3667 = vadd.xlane.f32.xlu1 %v3666_v19  ;;  %v3636_v3 = vsel %vm56_vm0, %v3612_v49, 0.0  ;;  %v3610_v0 = vmul.f32 %v5919_v27, %v5919_v27 }
 0x4a3   :  { %v5925_v14 = vsel %vm3560_vm2, %v3544_v44, %v3576_v2 }
 0x4a4   :  { %3658 = vadd.xlane.f32.xlu0 %v3657_v59  ;;  %v3630_v19 = vsel %vm56_vm0, %v3610_v0, 0.0  ;;  %v3608_v55 = vmul.f32 %v5925_v14, %v5925_v14 }
 0x4a6   :  { %3664 = vadd.xlane.f32.xlu1 %v3663_v4  ;;  %v3624_v13 = vsel %vm56_vm0, %v3608_v55, 0.0 }
 0x4a8   :  { %3652 = vadd.xlane.f32.xlu0 %v3651_v51 }
 0x4aa   :  { %3661 = vadd.xlane.f32.xlu1 %v3660_v40 }
 0x4ac   :  { %3646 = vadd.xlane.f32.xlu0 %v3645_v63 }
 0x4ae   :  { %3655 = vadd.xlane.f32.xlu1 %v3654_v21 }
 0x4b0   :  { %3640 = vadd.xlane.f32.xlu0 %v3639_v56 }
 0x4b2   :  { %3649 = vadd.xlane.f32.xlu1 %v3648_v25 }
 0x4b4   :  { %3634 = vadd.xlane.f32.xlu0 %v3633_v30 }
 0x4b6   :  { %3643 = vadd.xlane.f32.xlu1 %v3642_v50 }
 0x4b8   :  { %3628 = vadd.xlane.f32.xlu0 %v3627_v54 }
 0x4ba   :  { %3637 = vadd.xlane.f32.xlu1 %v3636_v3 }
 0x4be   :  { %3631 = vadd.xlane.f32.xlu1 %v3630_v19 }
 0x4c2   :  { %3625 = vadd.xlane.f32.xlu1 %v3624_v13 }
 0x4ce   :  { %3740 = vperm.xlu0 %4760, %v3737_v39  }
 0x529   :  { %v3671_v59 = vpop.xlane.xlu0 %3670 }
 0x52a   :  { %v3687_v8 = vmul.f32 0.03125, %v3671_v59 }
 0x52b   :  { %v3668_v52 = vpop.xlane.xlu1 %3667 }
 0x52c   :  { %v3703_v16 = vadd.f32 1e-08, %v3687_v8  ;;  %v3686_v62 = vmul.f32 0.03125, %v3668_v52 }
 0x52d   :  { %v3659_v60 = vpop.xlane.xlu0 %3658 }
 0x52e   :  { %4793 = vrsqrt.f32 %v3703_v16  ;;  %v3702_v4 = vadd.f32 1e-08, %v3686_v62  ;;  %v3683_v47 = vmul.f32 0.03125, %v3659_v60 }
 0x52f   :  { %v3665_v6 = vpop.xlane.xlu1 %3664 }
 0x530   :  { %4795 = vrsqrt.f32 %v3702_v4  ;;  %v3685_v7 = vmul.f32 0.03125, %v3665_v6  ;;  %v3699_v40 = vadd.f32 1e-08, %v3683_v47 }
 0x531   :  { %v3653_v38 = vpop.xlane.xlu0 %3652 }
 0x532   :  { %v3701_v17 = vadd.f32 1e-08, %v3685_v7  ;;  %v3681_v63 = vmul.f32 0.03125, %v3653_v38 }
 0x533   :  { %v3662_v51 = vpop.xlane.xlu1 %3661 }
 0x534   :  { %4797 = vrsqrt.f32 %v3701_v17  ;;  %v3684_v33 = vmul.f32 0.03125, %v3662_v51  ;;  %v3697_v22 = vadd.f32 1e-08, %v3681_v63 }
 0x535   :  { %v3647_v26 = vpop.xlane.xlu0 %3646 }
 0x536   :  { %v3700_v20 = vadd.f32 1e-08, %v3684_v33  ;;  %v3679_v28 = vmul.f32 0.03125, %v3647_v26 }
 0x537   :  { %v3656_v34 = vpop.xlane.xlu1 %3655 }
 0x538   :  { %4799 = vrsqrt.f32 %v3700_v20  ;;  %v3682_v10 = vmul.f32 0.03125, %v3656_v34  ;;  %v3695_v44 = vadd.f32 1e-08, %v3679_v28 }
 0x539   :  { %4801 = vrsqrt.f32 %v3699_v40  ;;  %v3641_v50 = vpop.xlane.xlu0 %3640 }
 0x53a   :  { %v3698_v5 = vadd.f32 1e-08, %v3682_v10  ;;  %v3677_v49 = vmul.f32 0.03125, %v3641_v50 }
 0x53b   :  { %v4794_v42 = vpop.eup %4793  ;;  %v3650_v21 = vpop.xlane.xlu1 %3649 }
 0x53c   :  { %v3735_v12 = vmul.f32 %v4794_v42, %v5842_v32  ;;  %4803 = vrsqrt.f32 %v3698_v5  ;;  %v3680_v24 = vmul.f32 0.03125, %v3650_v21  ;;  %v3693_v0 = vadd.f32 1e-08, %v3677_v49 }
 0x53d   :  { %v4796_v18 = vpop.eup %4795  ;;  %4805 = vrsqrt.f32 %v3697_v22  ;;  %v3635_v13 = vpop.xlane.xlu0 %3634  ;;  %v3743_v5 = vlaneseq }
 0x53e   :  { %4715 = vmatpush3.xpose.msk.msra.mxu1 %vm56_vm0, %v3735_v12  ;;  %v3734_v23 = vmul.f32 %v4796_v18, %v5848_v45  ;;  %v3696_v32 = vadd.f32 1e-08, %v3680_v24  ;;  %v3675_v39 = vmul.f32 0.03125, %v3635_v13 }
 0x53f   :  { %4716 = vmatprep.subr.mxu1 %v4875_v1  ;;  %v3644_v41 = vpop.xlane.xlu1 %3643  ;;  %v3744_v12 = vshrl.u32 %v3743_v5, 7 }
 0x540   :  { %4807 = vrsqrt.f32 %v3696_v32  ;;  %v3678_v45 = vmul.f32 0.03125, %v3644_v41  ;;  %v3691_v52 = vadd.f32 1e-08, %v3675_v39 }
 0x541   :  { %v4798_v56 = vpop.eup %4797  ;;  %4809 = vrsqrt.f32 %v3695_v44  ;;  %v3629_v4 = vpop.xlane.xlu0 %3628  ;;  %v3745_v18 = vsub.s32 0, %v3744_v12 }
 0x542   :  { %4717 = vmatpush3.xpose.msk.msra.mxu1 %vm56_vm0, %v3734_v23  ;;  %v3733_v25 = vmul.f32 %v4798_v56, %v5850_v48  ;;  %v3694_v48 = vadd.f32 1e-08, %v3678_v45  ;;  %v3673_v6 = vmul.f32 0.03125, %v3629_v4 }
 0x543   :  { %4718 = vmatprep.subr.mxu1 %v4875_v1  ;;  %v3638_v3 = vpop.xlane.xlu1 %3637 }
 0x544   :  { %4811 = vrsqrt.f32 %v3694_v48  ;;  %v3689_v51 = vadd.f32 1e-08, %v3673_v6 }
 0x545   :  { %v4800_v31 = vpop.eup %4799  ;;  %4813 = vrsqrt.f32 %v3693_v0 }
 0x546   :  { %4719 = vmatpush3.xpose.msk.msra.mxu1 %vm56_vm0, %v3733_v25  ;;  %v3732_v30 = vmul.f32 %v4800_v31, %v5864_v57  ;;  %v4802_v53 = vpop.eup %4801  ;;  %v3676_v57 = vmul.f32 0.03125, %v3638_v3 }
 0x547   :  { %4720 = vmatprep.subr.mxu1 %v4875_v1  ;;  %v3731_v2 = vmul.f32 %v4802_v53, %v5844_v43  ;;  %v3632_v8 = vpop.xlane.xlu1 %3631 }
 0x548   :  { %v3692_v43 = vadd.f32 1e-08, %v3676_v57 }
 0x549   :  { %v4804_v54 = vpop.eup %4803  ;;  %v3741_v21 = vpop.permute.xlu0 %3740 }
 0x54a   :  { %4721 = vmatpush3.xpose.msk.msra.mxu1 %vm56_vm0, %v3732_v30  ;;  %v3730_v19 = vmul.f32 %v4804_v54, %v5876_v9  ;;  %v4806_v55 = vpop.eup %4805  ;;  %4815 = vrsqrt.f32 %v3692_v43  ;;  %v3674_v9 = vmul.f32 0.03125, %v3632_v8 }
 0x54b   :  { %4722 = vmatprep.subr.mxu1 %v4875_v1  ;;  %v3729_v58 = vmul.f32 %v4806_v55, %v5858_v46  ;;  %4817 = vrsqrt.f32 %v3691_v52  ;;  %v3626_v17 = vpop.xlane.xlu1 %3625 }
 0x54c   :  { %v3690_v46 = vadd.f32 1e-08, %v3674_v9 }
 0x54d   :  { %v4808_v59 = vpop.eup %4807 }
 0x54e   :  { %4723 = vmatpush3.xpose.msk.msra.mxu1 %vm56_vm0, %v3731_v2  ;;  %v3728_v16 = vmul.f32 %v4808_v59, %v5888_v37  ;;  %v4810_v62 = vpop.eup %4809  ;;  %4819 = vrsqrt.f32 %v3690_v46  ;;  %v3672_v37 = vmul.f32 0.03125, %v3626_v17 }
 0x54f   :  { %4724 = vmatprep.subr.mxu1 %v4875_v1  ;;  %v3727_v7 = vmul.f32 %v4810_v62, %v5870_v35  ;;  %4821 = vrsqrt.f32 %v3689_v51 }
 0x550   :  { %v3688_v20 = vadd.f32 1e-08, %v3672_v37 }
 0x551   :  { %v4812_v60 = vpop.eup %4811 }
 0x552   :  { %4725 = vmatpush3.xpose.msk.msra.mxu1 %vm56_vm0, %v3730_v19  ;;  %v3726_v47 = vmul.f32 %v4812_v60, %v5899_v36  ;;  %v4814_v33 = vpop.eup %4813  ;;  %4823 = vrsqrt.f32 %v3688_v20 }
 0x553   :  { %4726 = vmatprep.subr.mxu1 %v4875_v1  ;;  %v3725_v35 = vmul.f32 %v4814_v33, %v5882_v11 }
 0x556   :  { %4727 = vmatpush3.xpose.msk.msra.mxu1 %vm56_vm0, %v3729_v58 }
 0x557   :  { %4728 = vmatprep.subr.mxu1 %v4875_v1  ;;  %v4816_v34 = vpop.eup %4815 }
 0x558   :  { %v3724_v40 = vmul.f32 %v4816_v34, %v5910_v61  ;;  %v4818_v10 = vpop.eup %4817 }
 0x559   :  { %v3723_v36 = vmul.f32 %v4818_v10, %v5894_v15 }
 0x55a   :  { %4729 = vmatpush3.xpose.msk.msra.mxu1 %vm56_vm0, %v3728_v16 }
 0x55b   :  { %4730 = vmatprep.subr.mxu1 %v4875_v1  ;;  %v4820_v38 = vpop.eup %4819 }
 0x55c   :  { %v3722_v11 = vmul.f32 %v4820_v38, %v5919_v27  ;;  %v4822_v42 = vpop.eup %4821  ;;  %v3736_v27 = vld [vmem:[%s5991_s5] sm:$0x1] }
 0x55d   :  { %v3721_v61 = vmul.f32 %v4822_v42, %v5905_v29  ;;  %v3746_v29 = vrot.slane %v3741_v21, %v3745_v18 }
 0x55e   :  { %4731 = vmatpush3.xpose.msk.msra.mxu1 %vm56_vm0, %v3727_v7 }
 0x55f   :  { %4732 = vmatprep.subr.mxu1 %v4875_v1  ;;  %v4824_v63 = vpop.eup %4823 }
 0x560   :  { %v3720_v15 = vmul.f32 %v4824_v63, %v5925_v14 }
 0x562   :  { %4733 = vmatpush3.xpose.msk.msra.mxu1 %vm56_vm0, %v3726_v47 }
 0x563   :  { %4734 = vmatprep.subr.mxu1 %v4875_v1 }
 0x566   :  { %4735 = vmatpush3.xpose.msk.msra.mxu1 %vm56_vm0, %v3725_v35 }
 0x567   :  { %4736 = vmatprep.subr.mxu1 %v4875_v1 }
 0x56a   :  { %4737 = vmatpush3.xpose.msk.msra.mxu1 %vm56_vm0, %v3724_v40 }
 0x56b   :  { %4738 = vmatprep.subr.mxu1 %v4875_v1 }
 0x56e   :  { %4739 = vmatpush3.xpose.msk.msra.mxu1 %vm56_vm0, %v3723_v36 }
 0x56f   :  { %4740 = vmatprep.subr.mxu1 %v4875_v1 }
 0x572   :  { %4741 = vmatpush3.xpose.msk.msra.mxu1 %vm56_vm0, %v3722_v11 }
 0x573   :  { %4742 = vmatprep.subr.mxu1 %v4875_v1 }
 0x576   :  { %4743 = vmatpush3.xpose.msk.msra.mxu1 %vm56_vm0, %v3721_v61 }
 0x577   :  { %4744 = vmatprep.subr.mxu1 %v4875_v1 }
 0x57a   :  { %4745 = vmatpush3.xpose.msk.msra.mxu1 %vm56_vm0, %v3720_v15 }
 0x57d   :  { %4747 = vmatmul.mubr.msk.f32.vlgmr.msra.gmra.mxu1 %vm56_vm0, %v3736_v27 }
 0x63d   :  { %v3864_v22 = vpop.f32.mrf.mxu1 }
 0x63e   :  { %v3865_v24 = vadd.f32 %v3864_v22, %v3746_v29 }
 0x63f   :  { %v4748_v23 = vpop.f32.mrf.mxu1 }
 0x640   :  { %3868 = vst [vmem:[%s5993_s7] sm:$0x1] %v3865_v24 }
 0x641   :  { %3873 = vsyncpa [#allocation6], 1 }
 0x642   :  { %3874 = vsyncpa [#allocation8], 1 }

</bundles_post_ra>
